<compile_context>
chip_gen: v7x
topology: tpu7x:2x2x1
jax: 0.10.0
libtpu: 0.0.40
codegen_flags: <defaults>
</compile_context>

<pallas_src>
from functools import partial

import numpy as np

import jax
import jax.numpy as jnp
from jax import lax
from jax.experimental import pallas as pl
from jax.experimental.pallas import tpu as pltpu


# ----------------------------------------------------------------------------
# Config & static dimensions (kernel is specialized / fully unrolled for these)
# ----------------------------------------------------------------------------
CFG = dict(
    in_channels=4,
    spatial_size=8,
    conv_filters=[8, 16],
    conv_kernel_size=3,
    max_pool_positions=[True, False],
    max_pool_sizes=[2, 2],
    max_pool_strides=[2, 2],
    fc_units=[32],
)

C0 = CFG["in_channels"]             # 4   conv1 in-channels
S0 = CFG["spatial_size"]            # 8   input spatial size
K = CFG["conv_kernel_size"]         # 3
C1 = CFG["conv_filters"][0]         # 8   conv1 out-channels
S1 = S0 - (K - 1)                   # 6   conv1 output spatial
PZ = CFG["max_pool_sizes"][0]       # 2   pool window
PS = CFG["max_pool_strides"][0]     # 2   pool stride
P1 = (S1 - PZ) // PS + 1            # 3   pooled spatial
C2 = CFG["conv_filters"][1]         # 16  conv2 out-channels
S2 = P1 - (K - 1)                   # 1   conv2 output spatial
F1 = CFG["fc_units"][0]             # 32  hidden FC width
assert S2 == 1 and PZ == 2 and PS == 2 and CFG["max_pool_positions"] == [True, False]

LIN = S0 * S0 * C0                  # 256  conv1 input lanes  (h, w, cin)
LOUT = S1 * S1 * C1                 # 288  conv1 output lanes (ho, wo, cout)
HPW = LOUT - S1 * C1                # 240  width after H-pool shift
WPW = HPW - C1                      # 232  width after W-pool shift

# packed "tail" operand row offsets (biases + pre-transposed FC weights)
TB1, TB2, TBF1, TBF2 = 0, 1, 2, 3
TWF1 = 8                            # wf1 rows (sublane-aligned start)
TWF2 = TWF1 + C2                    # 24  wf2 rows
TAIL_ROWS = TWF2 + F1               # 56


# ----------------------------------------------------------------------------
# Fused Pallas kernel: conv1 -> ReLU -> maxpool -> conv2 -> ReLU -> fc1 -> fc2
# ----------------------------------------------------------------------------
def _cnn_fused_kernel(x_ref, t1_ref, w2p_ref, tail_ref, o_ref):
    """Whole forward for B samples; all intermediates stay in vregs/VMEM.

    x_ref   : (S0, B, S0*S0*C0)   input slab: D on leading dim, batch on
                                  sublanes, lanes = (h, w, cin)
    t1_ref  : (K, LIN, LOUT)      conv1 Toeplitz-over-(H,W) weight per kd
    w2p_ref : (P1, WPW, C2)       conv2 zero-padded partial weights per pd
    tail_ref: (TAIL_ROWS, LOUT)   packed biases + pre-transposed FC weights
    o_ref   : (B, 1)              per-sample scalar outputs for this block
    """
    B = o_ref.shape[0]

    # Hoisted loads/broadcasts (done once per grid step, not per inner loop).
    b1 = jnp.broadcast_to(tail_ref[TB1:TB1 + 1, :], (B, LOUT))
    b2 = tail_ref[TB2:TB2 + 1, 0:C2]
    bf1 = tail_ref[TBF1:TBF1 + 1, 0:F1]
    bf2 = tail_ref[TBF2:TBF2 + 1, 0:1]
    wf1 = tail_ref[TWF1:TWF1 + C2, 0:F1]          # (C2, F1)
    wf2 = tail_ref[TWF2:TWF2 + F1, 0:1]           # (F1, 1)

    h2 = None
    for pd in range(P1):                          # pooled D index
        m = None
        for dd in range(PZ):                      # pool window offset along D
            do = PS * pd + dd                     # conv1 output D-row
            s = None
            for kd in range(K):
                # (B, 256) @ (256, 288): rows = samples, lanes = (ho, wo, cout)
                d = jnp.dot(x_ref[do + kd], t1_ref[kd],
                            preferred_element_type=jnp.float32)
                s = d if s is None else s + d     # pure dot chain (MRB-friendly)
            y = jnp.maximum(s + b1, 0.0)          # conv1 bias + ReLU
            m = y if m is None else jnp.maximum(m, y)   # max-pool over D
        # Max-pool over H then W as lane-shifted maxima; the "pick the valid
        # (ho,wo)=(even,even) lanes" gather is folded into zero-padded conv2
        # weight rows, so no concatenates / lane gathers are needed.
        hp = jnp.maximum(m[:, :HPW], m[:, S1 * C1:])    # (B, 240)
        wp = jnp.maximum(hp[:, :WPW], hp[:, C1:])       # (B, 232)
        d2 = jnp.dot(wp, w2p_ref[pd], preferred_element_type=jnp.float32)
        h2 = d2 if h2 is None else h2 + d2        # conv2 partial contraction
    h2 = jnp.maximum(h2 + b2, 0.0)                # conv2 bias + ReLU    (B, C2)
    h = jnp.maximum(jnp.dot(h2, wf1, preferred_element_type=jnp.float32) + bf1,
                    0.0)                          # fc1 + ReLU           (B, F1)
    o_ref[...] = (jnp.dot(h, wf2, preferred_element_type=jnp.float32)
                  + bf2)                          # fc2                  (B, 1)


# ----------------------------------------------------------------------------
# Parameter preparation (one-time, host-side) + forward wrapper
# ----------------------------------------------------------------------------
def prepare_operands(params):
    """Convert torch-layout params to kernel operands (done once, not per call)."""
    (w1, b1), (w2, b2) = params["convs"]
    (wf1, bf1), (wf2, bf2) = params["fcs"]
    w1 = np.asarray(w1, np.float32)      # (C1, C0, K, K, K)
    b1 = np.asarray(b1, np.float32)
    w2 = np.asarray(w2, np.float32)      # (C2, C1, K, K, K)
    b2 = np.asarray(b2, np.float32)
    wf1 = np.asarray(wf1, np.float32)    # torch (out=F1, in=C2)
    bf1 = np.asarray(bf1, np.float32)
    wf2 = np.asarray(wf2, np.float32)    # torch (out=1, in=F1)
    bf2 = np.asarray(bf2, np.float32)

    # conv1 as K Toeplitz-over-(H, W) matrices (one per kd):
    # rows = (h, w, cin) input lanes, cols = (ho, wo, cout) output lanes.
    t1 = np.zeros((K, LIN, LOUT), np.float32)
    for kd in range(K):
        for kh in range(K):
            for kw in range(K):
                wk = w1[:, :, kd, kh, kw].T                    # (cin, cout)
                for ho in range(S1):
                    r0 = (ho + kh) * S0 * C0
                    c0 = ho * S1 * C1
                    for wo in range(S1):
                        r = r0 + (wo + kw) * C0
                        c = c0 + wo * C1
                        t1[kd, r:r + C0, c:c + C1] = wk

    # conv2 (spatial-1 output) as P1 zero-padded partials over the un-gathered
    # pooled rows: only rows at (ho, wo) = (2*ph, 2*pw) are non-zero.
    w2p = np.zeros((P1, WPW, C2), np.float32)
    for pd in range(P1):
        for ph in range(P1):
            for pw in range(P1):
                r = (PS * ph) * S1 * C1 + (PS * pw) * C1
                w2p[pd, r:r + C1, :] = w2[:, :, pd, ph, pw].T  # (c1, cout)

    # packed tail: all biases + pre-transposed FC weights in one operand.
    tail = np.zeros((TAIL_ROWS, LOUT), np.float32)
    tail[TB1, :] = np.tile(b1, S1 * S1)
    tail[TB2, 0:C2] = b2
    tail[TBF1, 0:F1] = bf1
    tail[TBF2, 0] = bf2[0]
    tail[TWF1:TWF1 + C2, 0:F1] = wf1.T            # (C2, F1)
    tail[TWF2:TWF2 + F1, 0] = wf2.reshape(-1)     # (F1,) column

    return tuple(jnp.asarray(a) for a in (t1, w2p, tail))


@partial(jax.jit, static_argnames=("block_batch",))
def forward_pallas(operands, x_ncdhw, block_batch=8):
    """x_ncdhw: (N, C, D, H, W) float32, as PyTorch would receive it."""
    assert block_batch % 8 == 0
    t1, w2p, tail = operands
    n = x_ncdhw.shape[0]
    bb = block_batch
    pad = -n % bb
    if pad:
        x_ncdhw = jnp.pad(x_ncdhw, ((0, pad),) + ((0, 0),) * 4)
    n_pad = n + pad

    # NCDHW -> (D, N, H*W*C): batch on sublanes, (h, w, cin) merged on lanes.
    # TODO(synk): supply this layout straight from the data pipeline (or fuse
    #             via allow_input_fusion) to avoid the standalone HBM transpose.
    xp = jnp.transpose(x_ncdhw, (2, 0, 3, 4, 1)).reshape(S0, n_pad, LIN)

    out = pl.pallas_call(
        _cnn_fused_kernel,
        out_shape=jax.ShapeDtypeStruct((n_pad, 1), jnp.float32),
        grid=(n_pad // bb,),
        in_specs=[
            pl.BlockSpec((S0, bb, LIN), lambda i: (0, i, 0)),
            pl.BlockSpec((K, LIN, LOUT), lambda i: (0, 0, 0)),
            pl.BlockSpec((P1, WPW, C2), lambda i: (0, 0, 0)),
            pl.BlockSpec((TAIL_ROWS, LOUT), lambda i: (0, 0)),
        ],
        out_specs=pl.BlockSpec((bb, 1), lambda i: (i, 0)),
        compiler_params=pltpu.CompilerParams(
            dimension_semantics=("parallel",)),   # >=2 steps -> both v7x TCs busy
    )(xp, t1, w2p, tail)
    return out[:n]


# ----------------------------------------------------------------------------
# Torch-layout parameter init + pure-JAX reference (mirrors the PyTorch forward)
# ----------------------------------------------------------------------------
def init_params(key, cfg):
    params = {"convs": [], "fcs": []}
    in_ch = cfg["in_channels"]
    spatial = cfg["spatial_size"]
    k = cfg["conv_kernel_size"]
    for i, cout in enumerate(cfg["conv_filters"]):
        key, kw_, kb_ = jax.random.split(key, 3)
        w = 0.1 * jax.random.normal(kw_, (cout, in_ch, k, k, k), jnp.float32)
        b = 0.1 * jax.random.normal(kb_, (cout,), jnp.float32)
        params["convs"].append((w, b))
        spatial -= k - 1
        if cfg["max_pool_positions"][i]:
            spatial = (spatial - cfg["max_pool_sizes"][i]) // cfg["max_pool_strides"][i] + 1
        in_ch = cout
    in_features = in_ch * spatial ** 3
    for units in cfg["fc_units"] + [1]:
        key, kw_, kb_ = jax.random.split(key, 3)
        w = 0.1 * jax.random.normal(kw_, (units, in_features), jnp.float32)  # torch (out, in)
        b = 0.1 * jax.random.normal(kb_, (units,), jnp.float32)
        params["fcs"].append((w, b))
        in_features = units
    return params


def forward_reference(params, x_ncdhw, cfg):
    x = x_ncdhw
    for i, (w, b) in enumerate(params["convs"]):
        x = lax.conv_general_dilated(
            x, w, window_strides=(1, 1, 1), padding="VALID",
            dimension_numbers=("NCDHW", "OIDHW", "NCDHW"))
        x = jnp.maximum(x + b[None, :, None, None, None], 0.0)
        if cfg["max_pool_positions"][i]:
            s, st = cfg["max_pool_sizes"][i], cfg["max_pool_strides"][i]
            x = lax.reduce_window(x, -jnp.inf, lax.max,
                                  (1, 1, s, s, s), (1, 1, st, st, st), "VALID")
    x = x.reshape(x.shape[0], -1)
    n_fc = len(params["fcs"])
    for j, (w, b) in enumerate(params["fcs"]):
        x = x @ w.T + b
        if j != n_fc - 1:
            x = jnp.maximum(x, 0.0)
    return x


if __name__ == "__main__":
    key = jax.random.PRNGKey(0)
    key, kx = jax.random.split(key)
    N = 16
    x = jax.random.normal(kx, (N, C0, S0, S0, S0), jnp.float32)
    params = init_params(key, CFG)
    operands = prepare_operands(params)           # one-time weight transform

    out = forward_pallas(operands, x, block_batch=8)   # 2 grid steps of 8 samples
    out = jax.block_until_ready(out)

    ref = forward_reference(params, x, CFG)
    assert out.shape == (N, 1), out.shape
    assert jnp.allclose(out, ref, atol=2e-4, rtol=2e-4), (out, ref)
    print("KERNEL_OK")
</pallas_src>

<mosaic_0001>
module attributes {stable_mosaic.version = 11 : i64} {
  func.func @_cnn_fused_kernel(%arg0: i32, %arg1: memref<8x8x256xf32, #tpu.memory_space<vmem>>, %arg2: memref<3x256x288xf32, #tpu.memory_space<vmem>>, %arg3: memref<3x232x16xf32, #tpu.memory_space<vmem>>, %arg4: memref<56x288xf32, #tpu.memory_space<vmem>>, %arg5: memref<8x1xf32, #tpu.memory_space<vmem>>) attributes {dimension_semantics = [#tpu.dimension_semantics<parallel>], iteration_bounds = array<i64: 2>, scalar_prefetch = 0 : i64, scratch_operands = 0 : i64, tpu.core_type = #tpu.core_type<tc>, window_params = [{transform_indices = @transform_0, window_bounds = array<i64: 8, 8, 256>}, {pipeline_mode = #tpu.pipeline_mode<synchronous>, transform_indices = @transform_1, window_bounds = array<i64: 3, 256, 288>}, {pipeline_mode = #tpu.pipeline_mode<synchronous>, transform_indices = @transform_2, window_bounds = array<i64: 3, 232, 16>}, {pipeline_mode = #tpu.pipeline_mode<synchronous>, transform_indices = @transform_3, window_bounds = array<i64: 56, 288>}, {transform_indices = @transform_4, window_bounds = array<i64: 8, 1>}]} {
    %c0 = arith.constant 0 : index
    %c0_0 = arith.constant 0 : index
    %0 = vector.load %arg4[%c0, %c0_0] : memref<56x288xf32, #tpu.memory_space<vmem>>, vector<1x288xf32>
    %1 = vector.shape_cast %0 : vector<1x288xf32> to vector<1x288xf32>
    %2 = vector.broadcast %1 : vector<1x288xf32> to vector<8x288xf32>
    %c1 = arith.constant 1 : index
    %c0_1 = arith.constant 0 : index
    %3 = vector.load %arg4[%c1, %c0_1] : memref<56x288xf32, #tpu.memory_space<vmem>>, vector<1x16xf32>
    %c2 = arith.constant 2 : index
    %c0_2 = arith.constant 0 : index
    %4 = vector.load %arg4[%c2, %c0_2] : memref<56x288xf32, #tpu.memory_space<vmem>>, vector<1x32xf32>
    %c3 = arith.constant 3 : index
    %c0_3 = arith.constant 0 : index
    %5 = vector.load %arg4[%c3, %c0_3] : memref<56x288xf32, #tpu.memory_space<vmem>>, vector<1x1xf32>
    %c8 = arith.constant 8 : index
    %c0_4 = arith.constant 0 : index
    %6 = vector.load %arg4[%c8, %c0_4] : memref<56x288xf32, #tpu.memory_space<vmem>>, vector<16x32xf32>
    %c24 = arith.constant 24 : index
    %c0_5 = arith.constant 0 : index
    %7 = vector.load %arg4[%c24, %c0_5] : memref<56x288xf32, #tpu.memory_space<vmem>>, vector<32x1xf32>
    %c0_6 = arith.constant 0 : index
    %c0_7 = arith.constant 0 : index
    %c0_8 = arith.constant 0 : index
    %8 = vector.load %arg1[%c0_6, %c0_7, %c0_8] : memref<8x8x256xf32, #tpu.memory_space<vmem>>, vector<1x8x256xf32>
    %9 = vector.shape_cast %8 : vector<1x8x256xf32> to vector<8x256xf32>
    %c0_9 = arith.constant 0 : index
    %c0_10 = arith.constant 0 : index
    %c0_11 = arith.constant 0 : index
    %10 = vector.load %arg2[%c0_9, %c0_10, %c0_11] : memref<3x256x288xf32, #tpu.memory_space<vmem>>, vector<1x256x288xf32>
    %11 = vector.shape_cast %10 : vector<1x256x288xf32> to vector<256x288xf32>
    %cst = arith.constant dense<0.000000e+00> : vector<8x288xf32>
    %12 = tpu.matmul %9, %11, %cst {dimension_numbers = #tpu.dot_dimension_numbers<[1], [0], [0], [1], [0, 0, 1, 1], [], []>} : vector<8x256xf32>, vector<256x288xf32>, vector<8x288xf32> -> vector<8x288xf32>
    %c1_12 = arith.constant 1 : index
    %c0_13 = arith.constant 0 : index
    %c0_14 = arith.constant 0 : index
    %13 = vector.load %arg1[%c1_12, %c0_13, %c0_14] : memref<8x8x256xf32, #tpu.memory_space<vmem>>, vector<1x8x256xf32>
    %14 = vector.shape_cast %13 : vector<1x8x256xf32> to vector<8x256xf32>
    %c1_15 = arith.constant 1 : index
    %c0_16 = arith.constant 0 : index
    %c0_17 = arith.constant 0 : index
    %15 = vector.load %arg2[%c1_15, %c0_16, %c0_17] : memref<3x256x288xf32, #tpu.memory_space<vmem>>, vector<1x256x288xf32>
    %16 = vector.shape_cast %15 : vector<1x256x288xf32> to vector<256x288xf32>
    %cst_18 = arith.constant dense<0.000000e+00> : vector<8x288xf32>
    %17 = tpu.matmul %14, %16, %cst_18 {dimension_numbers = #tpu.dot_dimension_numbers<[1], [0], [0], [1], [0, 0, 1, 1], [], []>} : vector<8x256xf32>, vector<256x288xf32>, vector<8x288xf32> -> vector<8x288xf32>
    %18 = arith.addf %12, %17 : vector<8x288xf32>
    %c2_19 = arith.constant 2 : index
    %c0_20 = arith.constant 0 : index
    %c0_21 = arith.constant 0 : index
    %19 = vector.load %arg1[%c2_19, %c0_20, %c0_21] : memref<8x8x256xf32, #tpu.memory_space<vmem>>, vector<1x8x256xf32>
    %20 = vector.shape_cast %19 : vector<1x8x256xf32> to vector<8x256xf32>
    %c2_22 = arith.constant 2 : index
    %c0_23 = arith.constant 0 : index
    %c0_24 = arith.constant 0 : index
    %21 = vector.load %arg2[%c2_22, %c0_23, %c0_24] : memref<3x256x288xf32, #tpu.memory_space<vmem>>, vector<1x256x288xf32>
    %22 = vector.shape_cast %21 : vector<1x256x288xf32> to vector<256x288xf32>
    %cst_25 = arith.constant dense<0.000000e+00> : vector<8x288xf32>
    %23 = tpu.matmul %20, %22, %cst_25 {dimension_numbers = #tpu.dot_dimension_numbers<[1], [0], [0], [1], [0, 0, 1, 1], [], []>} : vector<8x256xf32>, vector<256x288xf32>, vector<8x288xf32> -> vector<8x288xf32>
    %24 = arith.addf %18, %23 : vector<8x288xf32>
    %25 = arith.addf %24, %2 : vector<8x288xf32>
    %cst_26 = arith.constant 0.000000e+00 : f32
    %26 = vector.broadcast %cst_26 : f32 to vector<8x288xf32>
    %27 = arith.maximumf %25, %26 : vector<8x288xf32>
    %c1_27 = arith.constant 1 : index
    %c0_28 = arith.constant 0 : index
    %c0_29 = arith.constant 0 : index
    %28 = vector.load %arg1[%c1_27, %c0_28, %c0_29] : memref<8x8x256xf32, #tpu.memory_space<vmem>>, vector<1x8x256xf32>
    %29 = vector.shape_cast %28 : vector<1x8x256xf32> to vector<8x256xf32>
    %c0_30 = arith.constant 0 : index
    %c0_31 = arith.constant 0 : index
    %c0_32 = arith.constant 0 : index
    %30 = vector.load %arg2[%c0_30, %c0_31, %c0_32] : memref<3x256x288xf32, #tpu.memory_space<vmem>>, vector<1x256x288xf32>
    %31 = vector.shape_cast %30 : vector<1x256x288xf32> to vector<256x288xf32>
    %cst_33 = arith.constant dense<0.000000e+00> : vector<8x288xf32>
    %32 = tpu.matmul %29, %31, %cst_33 {dimension_numbers = #tpu.dot_dimension_numbers<[1], [0], [0], [1], [0, 0, 1, 1], [], []>} : vector<8x256xf32>, vector<256x288xf32>, vector<8x288xf32> -> vector<8x288xf32>
    %c2_34 = arith.constant 2 : index
    %c0_35 = arith.constant 0 : index
    %c0_36 = arith.constant 0 : index
    %33 = vector.load %arg1[%c2_34, %c0_35, %c0_36] : memref<8x8x256xf32, #tpu.memory_space<vmem>>, vector<1x8x256xf32>
    %34 = vector.shape_cast %33 : vector<1x8x256xf32> to vector<8x256xf32>
    %c1_37 = arith.constant 1 : index
    %c0_38 = arith.constant 0 : index
    %c0_39 = arith.constant 0 : index
    %35 = vector.load %arg2[%c1_37, %c0_38, %c0_39] : memref<3x256x288xf32, #tpu.memory_space<vmem>>, vector<1x256x288xf32>
    %36 = vector.shape_cast %35 : vector<1x256x288xf32> to vector<256x288xf32>
    %cst_40 = arith.constant dense<0.000000e+00> : vector<8x288xf32>
    %37 = tpu.matmul %34, %36, %cst_40 {dimension_numbers = #tpu.dot_dimension_numbers<[1], [0], [0], [1], [0, 0, 1, 1], [], []>} : vector<8x256xf32>, vector<256x288xf32>, vector<8x288xf32> -> vector<8x288xf32>
    %38 = arith.addf %32, %37 : vector<8x288xf32>
    %c3_41 = arith.constant 3 : index
    %c0_42 = arith.constant 0 : index
    %c0_43 = arith.constant 0 : index
    %39 = vector.load %arg1[%c3_41, %c0_42, %c0_43] : memref<8x8x256xf32, #tpu.memory_space<vmem>>, vector<1x8x256xf32>
    %40 = vector.shape_cast %39 : vector<1x8x256xf32> to vector<8x256xf32>
    %c2_44 = arith.constant 2 : index
    %c0_45 = arith.constant 0 : index
    %c0_46 = arith.constant 0 : index
    %41 = vector.load %arg2[%c2_44, %c0_45, %c0_46] : memref<3x256x288xf32, #tpu.memory_space<vmem>>, vector<1x256x288xf32>
    %42 = vector.shape_cast %41 : vector<1x256x288xf32> to vector<256x288xf32>
    %cst_47 = arith.constant dense<0.000000e+00> : vector<8x288xf32>
    %43 = tpu.matmul %40, %42, %cst_47 {dimension_numbers = #tpu.dot_dimension_numbers<[1], [0], [0], [1], [0, 0, 1, 1], [], []>} : vector<8x256xf32>, vector<256x288xf32>, vector<8x288xf32> -> vector<8x288xf32>
    %44 = arith.addf %38, %43 : vector<8x288xf32>
    %45 = arith.addf %44, %2 : vector<8x288xf32>
    %cst_48 = arith.constant 0.000000e+00 : f32
    %46 = vector.broadcast %cst_48 : f32 to vector<8x288xf32>
    %47 = arith.maximumf %45, %46 : vector<8x288xf32>
    %48 = arith.maximumf %27, %47 : vector<8x288xf32>
    %49 = vector.extract_strided_slice %48 {offsets = [0, 0], sizes = [8, 240], strides = [1, 1]} : vector<8x288xf32> to vector<8x240xf32>
    %50 = vector.extract_strided_slice %48 {offsets = [0, 48], sizes = [8, 240], strides = [1, 1]} : vector<8x288xf32> to vector<8x240xf32>
    %51 = arith.maximumf %49, %50 : vector<8x240xf32>
    %52 = vector.extract_strided_slice %51 {offsets = [0, 0], sizes = [8, 232], strides = [1, 1]} : vector<8x240xf32> to vector<8x232xf32>
    %53 = vector.extract_strided_slice %51 {offsets = [0, 8], sizes = [8, 232], strides = [1, 1]} : vector<8x240xf32> to vector<8x232xf32>
    %54 = arith.maximumf %52, %53 : vector<8x232xf32>
    %c0_49 = arith.constant 0 : index
    %c0_50 = arith.constant 0 : index
    %c0_51 = arith.constant 0 : index
    %55 = vector.load %arg3[%c0_49, %c0_50, %c0_51] : memref<3x232x16xf32, #tpu.memory_space<vmem>>, vector<1x232x16xf32>
    %56 = vector.shape_cast %55 : vector<1x232x16xf32> to vector<232x16xf32>
    %cst_52 = arith.constant dense<0.000000e+00> : vector<8x16xf32>
    %57 = tpu.matmul %54, %56, %cst_52 {dimension_numbers = #tpu.dot_dimension_numbers<[1], [0], [0], [1], [0, 0, 1, 1], [], []>} : vector<8x232xf32>, vector<232x16xf32>, vector<8x16xf32> -> vector<8x16xf32>
    %c2_53 = arith.constant 2 : index
    %c0_54 = arith.constant 0 : index
    %c0_55 = arith.constant 0 : index
    %58 = vector.load %arg1[%c2_53, %c0_54, %c0_55] : memref<8x8x256xf32, #tpu.memory_space<vmem>>, vector<1x8x256xf32>
    %59 = vector.shape_cast %58 : vector<1x8x256xf32> to vector<8x256xf32>
    %c0_56 = arith.constant 0 : index
    %c0_57 = arith.constant 0 : index
    %c0_58 = arith.constant 0 : index
    %60 = vector.load %arg2[%c0_56, %c0_57, %c0_58] : memref<3x256x288xf32, #tpu.memory_space<vmem>>, vector<1x256x288xf32>
    %61 = vector.shape_cast %60 : vector<1x256x288xf32> to vector<256x288xf32>
    %cst_59 = arith.constant dense<0.000000e+00> : vector<8x288xf32>
    %62 = tpu.matmul %59, %61, %cst_59 {dimension_numbers = #tpu.dot_dimension_numbers<[1], [0], [0], [1], [0, 0, 1, 1], [], []>} : vector<8x256xf32>, vector<256x288xf32>, vector<8x288xf32> -> vector<8x288xf32>
    %c3_60 = arith.constant 3 : index
    %c0_61 = arith.constant 0 : index
    %c0_62 = arith.constant 0 : index
    %63 = vector.load %arg1[%c3_60, %c0_61, %c0_62] : memref<8x8x256xf32, #tpu.memory_space<vmem>>, vector<1x8x256xf32>
    %64 = vector.shape_cast %63 : vector<1x8x256xf32> to vector<8x256xf32>
    %c1_63 = arith.constant 1 : index
    %c0_64 = arith.constant 0 : index
    %c0_65 = arith.constant 0 : index
    %65 = vector.load %arg2[%c1_63, %c0_64, %c0_65] : memref<3x256x288xf32, #tpu.memory_space<vmem>>, vector<1x256x288xf32>
    %66 = vector.shape_cast %65 : vector<1x256x288xf32> to vector<256x288xf32>
    %cst_66 = arith.constant dense<0.000000e+00> : vector<8x288xf32>
    %67 = tpu.matmul %64, %66, %cst_66 {dimension_numbers = #tpu.dot_dimension_numbers<[1], [0], [0], [1], [0, 0, 1, 1], [], []>} : vector<8x256xf32>, vector<256x288xf32>, vector<8x288xf32> -> vector<8x288xf32>
    %68 = arith.addf %62, %67 : vector<8x288xf32>
    %c4 = arith.constant 4 : index
    %c0_67 = arith.constant 0 : index
    %c0_68 = arith.constant 0 : index
    %69 = vector.load %arg1[%c4, %c0_67, %c0_68] : memref<8x8x256xf32, #tpu.memory_space<vmem>>, vector<1x8x256xf32>
    %70 = vector.shape_cast %69 : vector<1x8x256xf32> to vector<8x256xf32>
    %c2_69 = arith.constant 2 : index
    %c0_70 = arith.constant 0 : index
    %c0_71 = arith.constant 0 : index
    %71 = vector.load %arg2[%c2_69, %c0_70, %c0_71] : memref<3x256x288xf32, #tpu.memory_space<vmem>>, vector<1x256x288xf32>
    %72 = vector.shape_cast %71 : vector<1x256x288xf32> to vector<256x288xf32>
    %cst_72 = arith.constant dense<0.000000e+00> : vector<8x288xf32>
    %73 = tpu.matmul %70, %72, %cst_72 {dimension_numbers = #tpu.dot_dimension_numbers<[1], [0], [0], [1], [0, 0, 1, 1], [], []>} : vector<8x256xf32>, vector<256x288xf32>, vector<8x288xf32> -> vector<8x288xf32>
    %74 = arith.addf %68, %73 : vector<8x288xf32>
    %75 = arith.addf %74, %2 : vector<8x288xf32>
    %cst_73 = arith.constant 0.000000e+00 : f32
    %76 = vector.broadcast %cst_73 : f32 to vector<8x288xf32>
    %77 = arith.maximumf %75, %76 : vector<8x288xf32>
    %c3_74 = arith.constant 3 : index
    %c0_75 = arith.constant 0 : index
    %c0_76 = arith.constant 0 : index
    %78 = vector.load %arg1[%c3_74, %c0_75, %c0_76] : memref<8x8x256xf32, #tpu.memory_space<vmem>>, vector<1x8x256xf32>
    %79 = vector.shape_cast %78 : vector<1x8x256xf32> to vector<8x256xf32>
    %c0_77 = arith.constant 0 : index
    %c0_78 = arith.constant 0 : index
    %c0_79 = arith.constant 0 : index
    %80 = vector.load %arg2[%c0_77, %c0_78, %c0_79] : memref<3x256x288xf32, #tpu.memory_space<vmem>>, vector<1x256x288xf32>
    %81 = vector.shape_cast %80 : vector<1x256x288xf32> to vector<256x288xf32>
    %cst_80 = arith.constant dense<0.000000e+00> : vector<8x288xf32>
    %82 = tpu.matmul %79, %81, %cst_80 {dimension_numbers = #tpu.dot_dimension_numbers<[1], [0], [0], [1], [0, 0, 1, 1], [], []>} : vector<8x256xf32>, vector<256x288xf32>, vector<8x288xf32> -> vector<8x288xf32>
    %c4_81 = arith.constant 4 : index
    %c0_82 = arith.constant 0 : index
    %c0_83 = arith.constant 0 : index
    %83 = vector.load %arg1[%c4_81, %c0_82, %c0_83] : memref<8x8x256xf32, #tpu.memory_space<vmem>>, vector<1x8x256xf32>
    %84 = vector.shape_cast %83 : vector<1x8x256xf32> to vector<8x256xf32>
    %c1_84 = arith.constant 1 : index
    %c0_85 = arith.constant 0 : index
    %c0_86 = arith.constant 0 : index
    %85 = vector.load %arg2[%c1_84, %c0_85, %c0_86] : memref<3x256x288xf32, #tpu.memory_space<vmem>>, vector<1x256x288xf32>
    %86 = vector.shape_cast %85 : vector<1x256x288xf32> to vector<256x288xf32>
    %cst_87 = arith.constant dense<0.000000e+00> : vector<8x288xf32>
    %87 = tpu.matmul %84, %86, %cst_87 {dimension_numbers = #tpu.dot_dimension_numbers<[1], [0], [0], [1], [0, 0, 1, 1], [], []>} : vector<8x256xf32>, vector<256x288xf32>, vector<8x288xf32> -> vector<8x288xf32>
    %88 = arith.addf %82, %87 : vector<8x288xf32>
    %c5 = arith.constant 5 : index
    %c0_88 = arith.constant 0 : index
    %c0_89 = arith.constant 0 : index
    %89 = vector.load %arg1[%c5, %c0_88, %c0_89] : memref<8x8x256xf32, #tpu.memory_space<vmem>>, vector<1x8x256xf32>
    %90 = vector.shape_cast %89 : vector<1x8x256xf32> to vector<8x256xf32>
    %c2_90 = arith.constant 2 : index
    %c0_91 = arith.constant 0 : index
    %c0_92 = arith.constant 0 : index
    %91 = vector.load %arg2[%c2_90, %c0_91, %c0_92] : memref<3x256x288xf32, #tpu.memory_space<vmem>>, vector<1x256x288xf32>
    %92 = vector.shape_cast %91 : vector<1x256x288xf32> to vector<256x288xf32>
    %cst_93 = arith.constant dense<0.000000e+00> : vector<8x288xf32>
    %93 = tpu.matmul %90, %92, %cst_93 {dimension_numbers = #tpu.dot_dimension_numbers<[1], [0], [0], [1], [0, 0, 1, 1], [], []>} : vector<8x256xf32>, vector<256x288xf32>, vector<8x288xf32> -> vector<8x288xf32>
    %94 = arith.addf %88, %93 : vector<8x288xf32>
    %95 = arith.addf %94, %2 : vector<8x288xf32>
    %cst_94 = arith.constant 0.000000e+00 : f32
    %96 = vector.broadcast %cst_94 : f32 to vector<8x288xf32>
    %97 = arith.maximumf %95, %96 : vector<8x288xf32>
    %98 = arith.maximumf %77, %97 : vector<8x288xf32>
    %99 = vector.extract_strided_slice %98 {offsets = [0, 0], sizes = [8, 240], strides = [1, 1]} : vector<8x288xf32> to vector<8x240xf32>
    %100 = vector.extract_strided_slice %98 {offsets = [0, 48], sizes = [8, 240], strides = [1, 1]} : vector<8x288xf32> to vector<8x240xf32>
    %101 = arith.maximumf %99, %100 : vector<8x240xf32>
    %102 = vector.extract_strided_slice %101 {offsets = [0, 0], sizes = [8, 232], strides = [1, 1]} : vector<8x240xf32> to vector<8x232xf32>
    %103 = vector.extract_strided_slice %101 {offsets = [0, 8], sizes = [8, 232], strides = [1, 1]} : vector<8x240xf32> to vector<8x232xf32>
    %104 = arith.maximumf %102, %103 : vector<8x232xf32>
    %c1_95 = arith.constant 1 : index
    %c0_96 = arith.constant 0 : index
    %c0_97 = arith.constant 0 : index
    %105 = vector.load %arg3[%c1_95, %c0_96, %c0_97] : memref<3x232x16xf32, #tpu.memory_space<vmem>>, vector<1x232x16xf32>
    %106 = vector.shape_cast %105 : vector<1x232x16xf32> to vector<232x16xf32>
    %cst_98 = arith.constant dense<0.000000e+00> : vector<8x16xf32>
    %107 = tpu.matmul %104, %106, %cst_98 {dimension_numbers = #tpu.dot_dimension_numbers<[1], [0], [0], [1], [0, 0, 1, 1], [], []>} : vector<8x232xf32>, vector<232x16xf32>, vector<8x16xf32> -> vector<8x16xf32>
    %108 = arith.addf %57, %107 : vector<8x16xf32>
    %c4_99 = arith.constant 4 : index
    %c0_100 = arith.constant 0 : index
    %c0_101 = arith.constant 0 : index
    %109 = vector.load %arg1[%c4_99, %c0_100, %c0_101] : memref<8x8x256xf32, #tpu.memory_space<vmem>>, vector<1x8x256xf32>
    %110 = vector.shape_cast %109 : vector<1x8x256xf32> to vector<8x256xf32>
    %c0_102 = arith.constant 0 : index
    %c0_103 = arith.constant 0 : index
    %c0_104 = arith.constant 0 : index
    %111 = vector.load %arg2[%c0_102, %c0_103, %c0_104] : memref<3x256x288xf32, #tpu.memory_space<vmem>>, vector<1x256x288xf32>
    %112 = vector.shape_cast %111 : vector<1x256x288xf32> to vector<256x288xf32>
    %cst_105 = arith.constant dense<0.000000e+00> : vector<8x288xf32>
    %113 = tpu.matmul %110, %112, %cst_105 {dimension_numbers = #tpu.dot_dimension_numbers<[1], [0], [0], [1], [0, 0, 1, 1], [], []>} : vector<8x256xf32>, vector<256x288xf32>, vector<8x288xf32> -> vector<8x288xf32>
    %c5_106 = arith.constant 5 : index
    %c0_107 = arith.constant 0 : index
    %c0_108 = arith.constant 0 : index
    %114 = vector.load %arg1[%c5_106, %c0_107, %c0_108] : memref<8x8x256xf32, #tpu.memory_space<vmem>>, vector<1x8x256xf32>
    %115 = vector.shape_cast %114 : vector<1x8x256xf32> to vector<8x256xf32>
    %c1_109 = arith.constant 1 : index
    %c0_110 = arith.constant 0 : index
    %c0_111 = arith.constant 0 : index
    %116 = vector.load %arg2[%c1_109, %c0_110, %c0_111] : memref<3x256x288xf32, #tpu.memory_space<vmem>>, vector<1x256x288xf32>
    %117 = vector.shape_cast %116 : vector<1x256x288xf32> to vector<256x288xf32>
    %cst_112 = arith.constant dense<0.000000e+00> : vector<8x288xf32>
    %118 = tpu.matmul %115, %117, %cst_112 {dimension_numbers = #tpu.dot_dimension_numbers<[1], [0], [0], [1], [0, 0, 1, 1], [], []>} : vector<8x256xf32>, vector<256x288xf32>, vector<8x288xf32> -> vector<8x288xf32>
    %119 = arith.addf %113, %118 : vector<8x288xf32>
    %c6 = arith.constant 6 : index
    %c0_113 = arith.constant 0 : index
    %c0_114 = arith.constant 0 : index
    %120 = vector.load %arg1[%c6, %c0_113, %c0_114] : memref<8x8x256xf32, #tpu.memory_space<vmem>>, vector<1x8x256xf32>
    %121 = vector.shape_cast %120 : vector<1x8x256xf32> to vector<8x256xf32>
    %c2_115 = arith.constant 2 : index
    %c0_116 = arith.constant 0 : index
    %c0_117 = arith.constant 0 : index
    %122 = vector.load %arg2[%c2_115, %c0_116, %c0_117] : memref<3x256x288xf32, #tpu.memory_space<vmem>>, vector<1x256x288xf32>
    %123 = vector.shape_cast %122 : vector<1x256x288xf32> to vector<256x288xf32>
    %cst_118 = arith.constant dense<0.000000e+00> : vector<8x288xf32>
    %124 = tpu.matmul %121, %123, %cst_118 {dimension_numbers = #tpu.dot_dimension_numbers<[1], [0], [0], [1], [0, 0, 1, 1], [], []>} : vector<8x256xf32>, vector<256x288xf32>, vector<8x288xf32> -> vector<8x288xf32>
    %125 = arith.addf %119, %124 : vector<8x288xf32>
    %126 = arith.addf %125, %2 : vector<8x288xf32>
    %cst_119 = arith.constant 0.000000e+00 : f32
    %127 = vector.broadcast %cst_119 : f32 to vector<8x288xf32>
    %128 = arith.maximumf %126, %127 : vector<8x288xf32>
    %c5_120 = arith.constant 5 : index
    %c0_121 = arith.constant 0 : index
    %c0_122 = arith.constant 0 : index
    %129 = vector.load %arg1[%c5_120, %c0_121, %c0_122] : memref<8x8x256xf32, #tpu.memory_space<vmem>>, vector<1x8x256xf32>
    %130 = vector.shape_cast %129 : vector<1x8x256xf32> to vector<8x256xf32>
    %c0_123 = arith.constant 0 : index
    %c0_124 = arith.constant 0 : index
    %c0_125 = arith.constant 0 : index
    %131 = vector.load %arg2[%c0_123, %c0_124, %c0_125] : memref<3x256x288xf32, #tpu.memory_space<vmem>>, vector<1x256x288xf32>
    %132 = vector.shape_cast %131 : vector<1x256x288xf32> to vector<256x288xf32>
    %cst_126 = arith.constant dense<0.000000e+00> : vector<8x288xf32>
    %133 = tpu.matmul %130, %132, %cst_126 {dimension_numbers = #tpu.dot_dimension_numbers<[1], [0], [0], [1], [0, 0, 1, 1], [], []>} : vector<8x256xf32>, vector<256x288xf32>, vector<8x288xf32> -> vector<8x288xf32>
    %c6_127 = arith.constant 6 : index
    %c0_128 = arith.constant 0 : index
    %c0_129 = arith.constant 0 : index
    %134 = vector.load %arg1[%c6_127, %c0_128, %c0_129] : memref<8x8x256xf32, #tpu.memory_space<vmem>>, vector<1x8x256xf32>
    %135 = vector.shape_cast %134 : vector<1x8x256xf32> to vector<8x256xf32>
    %c1_130 = arith.constant 1 : index
    %c0_131 = arith.constant 0 : index
    %c0_132 = arith.constant 0 : index
    %136 = vector.load %arg2[%c1_130, %c0_131, %c0_132] : memref<3x256x288xf32, #tpu.memory_space<vmem>>, vector<1x256x288xf32>
    %137 = vector.shape_cast %136 : vector<1x256x288xf32> to vector<256x288xf32>
    %cst_133 = arith.constant dense<0.000000e+00> : vector<8x288xf32>
    %138 = tpu.matmul %135, %137, %cst_133 {dimension_numbers = #tpu.dot_dimension_numbers<[1], [0], [0], [1], [0, 0, 1, 1], [], []>} : vector<8x256xf32>, vector<256x288xf32>, vector<8x288xf32> -> vector<8x288xf32>
    %139 = arith.addf %133, %138 : vector<8x288xf32>
    %c7 = arith.constant 7 : index
    %c0_134 = arith.constant 0 : index
    %c0_135 = arith.constant 0 : index
    %140 = vector.load %arg1[%c7, %c0_134, %c0_135] : memref<8x8x256xf32, #tpu.memory_space<vmem>>, vector<1x8x256xf32>
    %141 = vector.shape_cast %140 : vector<1x8x256xf32> to vector<8x256xf32>
    %c2_136 = arith.constant 2 : index
    %c0_137 = arith.constant 0 : index
    %c0_138 = arith.constant 0 : index
    %142 = vector.load %arg2[%c2_136, %c0_137, %c0_138] : memref<3x256x288xf32, #tpu.memory_space<vmem>>, vector<1x256x288xf32>
    %143 = vector.shape_cast %142 : vector<1x256x288xf32> to vector<256x288xf32>
    %cst_139 = arith.constant dense<0.000000e+00> : vector<8x288xf32>
    %144 = tpu.matmul %141, %143, %cst_139 {dimension_numbers = #tpu.dot_dimension_numbers<[1], [0], [0], [1], [0, 0, 1, 1], [], []>} : vector<8x256xf32>, vector<256x288xf32>, vector<8x288xf32> -> vector<8x288xf32>
    %145 = arith.addf %139, %144 : vector<8x288xf32>
    %146 = arith.addf %145, %2 : vector<8x288xf32>
    %cst_140 = arith.constant 0.000000e+00 : f32
    %147 = vector.broadcast %cst_140 : f32 to vector<8x288xf32>
    %148 = arith.maximumf %146, %147 : vector<8x288xf32>
    %149 = arith.maximumf %128, %148 : vector<8x288xf32>
    %150 = vector.extract_strided_slice %149 {offsets = [0, 0], sizes = [8, 240], strides = [1, 1]} : vector<8x288xf32> to vector<8x240xf32>
    %151 = vector.extract_strided_slice %149 {offsets = [0, 48], sizes = [8, 240], strides = [1, 1]} : vector<8x288xf32> to vector<8x240xf32>
    %152 = arith.maximumf %150, %151 : vector<8x240xf32>
    %153 = vector.extract_strided_slice %152 {offsets = [0, 0], sizes = [8, 232], strides = [1, 1]} : vector<8x240xf32> to vector<8x232xf32>
    %154 = vector.extract_strided_slice %152 {offsets = [0, 8], sizes = [8, 232], strides = [1, 1]} : vector<8x240xf32> to vector<8x232xf32>
    %155 = arith.maximumf %153, %154 : vector<8x232xf32>
    %c2_141 = arith.constant 2 : index
    %c0_142 = arith.constant 0 : index
    %c0_143 = arith.constant 0 : index
    %156 = vector.load %arg3[%c2_141, %c0_142, %c0_143] : memref<3x232x16xf32, #tpu.memory_space<vmem>>, vector<1x232x16xf32>
    %157 = vector.shape_cast %156 : vector<1x232x16xf32> to vector<232x16xf32>
    %cst_144 = arith.constant dense<0.000000e+00> : vector<8x16xf32>
    %158 = tpu.matmul %155, %157, %cst_144 {dimension_numbers = #tpu.dot_dimension_numbers<[1], [0], [0], [1], [0, 0, 1, 1], [], []>} : vector<8x232xf32>, vector<232x16xf32>, vector<8x16xf32> -> vector<8x16xf32>
    %159 = arith.addf %108, %158 : vector<8x16xf32>
    %160 = vector.broadcast %3 : vector<1x16xf32> to vector<8x16xf32>
    %161 = arith.addf %159, %160 : vector<8x16xf32>
    %cst_145 = arith.constant 0.000000e+00 : f32
    %162 = vector.broadcast %cst_145 : f32 to vector<8x16xf32>
    %163 = arith.maximumf %161, %162 : vector<8x16xf32>
    %cst_146 = arith.constant dense<0.000000e+00> : vector<8x32xf32>
    %164 = tpu.matmul %163, %6, %cst_146 {dimension_numbers = #tpu.dot_dimension_numbers<[1], [0], [0], [1], [0, 0, 1, 1], [], []>} : vector<8x16xf32>, vector<16x32xf32>, vector<8x32xf32> -> vector<8x32xf32>
    %165 = vector.broadcast %4 : vector<1x32xf32> to vector<8x32xf32>
    %166 = arith.addf %164, %165 : vector<8x32xf32>
    %cst_147 = arith.constant 0.000000e+00 : f32
    %167 = vector.broadcast %cst_147 : f32 to vector<8x32xf32>
    %168 = arith.maximumf %166, %167 : vector<8x32xf32>
    %cst_148 = arith.constant dense<0.000000e+00> : vector<8x1xf32>
    %169 = tpu.matmul %168, %7, %cst_148 {dimension_numbers = #tpu.dot_dimension_numbers<[1], [0], [0], [1], [0, 0, 1, 1], [], []>} : vector<8x32xf32>, vector<32x1xf32>, vector<8x1xf32> -> vector<8x1xf32>
    %170 = vector.broadcast %5 : vector<1x1xf32> to vector<8x1xf32>
    %171 = arith.addf %169, %170 : vector<8x1xf32>
    %c0_149 = arith.constant 0 : index
    %c0_150 = arith.constant 0 : index
    %172 = vector.load %arg5[%c0_149, %c0_150] : memref<8x1xf32, #tpu.memory_space<vmem>>, vector<8x1xf32>
    tpu.vector_store %arg5[%c0_149, %c0_150], %171 {strides = array<i32>} : memref<8x1xf32, #tpu.memory_space<vmem>>, vector<8x1xf32>,
    return
  }
  func.func @transform_0(%arg0: i32) -> (i32, i32, i32) {
    %c0_i32 = arith.constant 0 : i32
    %c0_i32_0 = arith.constant 0 : i32
    %c0_i32_1 = arith.constant 0 : i32
    return %c0_i32, %arg0, %c0_i32_0 : i32, i32, i32
  }
  func.func @transform_1(%arg0: i32) -> (i32, i32, i32) {
    %c0_i32 = arith.constant 0 : i32
    %c0_i32_0 = arith.constant 0 : i32
    %c0_i32_1 = arith.constant 0 : i32
    %c0_i32_2 = arith.constant 0 : i32
    return %c0_i32, %c0_i32_0, %c0_i32_1 : i32, i32, i32
  }
  func.func @transform_2(%arg0: i32) -> (i32, i32, i32) {
    %c0_i32 = arith.constant 0 : i32
    %c0_i32_0 = arith.constant 0 : i32
    %c0_i32_1 = arith.constant 0 : i32
    %c0_i32_2 = arith.constant 0 : i32
    return %c0_i32, %c0_i32_0, %c0_i32_1 : i32, i32, i32
  }
  func.func @transform_3(%arg0: i32) -> (i32, i32) {
    %c0_i32 = arith.constant 0 : i32
    %c0_i32_0 = arith.constant 0 : i32
    %c0_i32_1 = arith.constant 0 : i32
    return %c0_i32, %c0_i32_0 : i32, i32
  }
  func.func @transform_4(%arg0: i32) -> (i32, i32) {
    %c0_i32 = arith.constant 0 : i32
    %c0_i32_0 = arith.constant 0 : i32
    return %arg0, %c0_i32 : i32, i32
  }
}

</mosaic_0001>

<bundles_post_ra>
// kernel: forward_pallas.1
= control target key start
LH: loop header
LB: loop body
LE: loop exit
PB: predicated region body
PF: predicated region fallthrough
CT: control target
= control target key end

     0   :  { %s6703_s15 = smov 0   ;;  %s6705_s16 = smov 0   ;;  %s9385_s0 = inlined_call_operand.vmem [shape: f32[8,16,256], index: 0, kind: input, shape index: {}]   ;;  %s9386_s1 = inlined_call_operand.vmem [shape: f32[3,256,288], index: 1, kind: input, shape index: {}]   ;;  %s9387_s2 = inlined_call_operand.vmem [shape: f32[3,232,16], index: 2, kind: input, shape index: {}]   ;;  %s9388_s3 = inlined_call_operand.vmem [shape: f32[56,288], index: 3, kind: input, shape index: {}]   ;;  %s9389_s4 = inlined_call_operand.vmem [shape: f32[16,1], index: 4, kind: output, shape index: {}]  }
   0x1   :  { %s6707_s17 = smov 0  }
   0x2 LB: > { %s3788_s18 = sadd.s32 4294967295, %s6671_s17   ;;  %s6720_s19 = sadd.s32 1, %s6671_s17   ;;  %s6671_s17 = sphi %s6707_s17, %s10418_s17   ;;  %s6667_s16 = sphi %s6705_s16, %s10417_s16   ;;  %s6663_s15 = sphi %s6703_s15, %s10416_s15  }
   0x3   : > { %s18_s20 = ssub.s32 %s6671_s17, %s6720_s19  ;;  %s21_s21 = sadd.s32 1, %s6667_s16 }
   0x4   : > { %p19_p0 = scmp.eq.s32.totalorder %s18_s20, 0  ;;  %p28_p1 = scmp.ne.s32.totalorder %s6667_s16, %s6663_s15 }
   0x5   : > { %p29_p2 = scmp.eq.s32.totalorder %s6671_s17, 0  ;;  %p3791_p4 = scmp.ge.s32.totalorder %s6671_s17, 2 }
   0x6   : > { %s6729_s22 = scalar_select %p19_p0, %s6667_s16, %s21_s21  }
   0x7   : > { %p30_p3 = por %p29_p2, %p28_p1  ;;  %152 = sbr.rel (%p3791_p4) target bundleno = 26 (0x1a), region = 28 }
   0xe   : > { %155 = sbr.rel (!%p30_p3) target bundleno = 26 (0x1a), region = 32  ;;  %s157_s23 = sand.u32 (%p30_p3), 1, %s6667_s16  }
   0xf   : > { %s4069_s24 = sshll.u32 (%p30_p3), %s6671_s17, 4  ;;  %s3792_s25 = sshll.u32 (%p30_p3), %s157_s23, 7 }
  0x10   : > { %s6737_s28 = scalar_lea.vmem (%p30_p3), %s9385_s0, %s4069_s24  ;;  %s159_s29 = scalar_lea.vmem (%p30_p3), [#allocation2], %s3792_s25 }
  0x11   : > { %v175_v0 = vld [vmem:[%s6737_s28] sm:$0xff] (%p30_p3)  ;;  %v177_v1 = vld [vmem:[%s6737_s28 + $0x8] sm:$0xff] (%p30_p3) }
  0x12   : > { %v179_v2 = vld [vmem:[%s6737_s28 + $0x20] sm:$0xff] (%p30_p3)  ;;  %176 = vst [vmem:[%s159_s29] sm:$0xff] (%p30_p3), %v175_v0  ;;  %178 = vst [vmem:[%s159_s29 + $0x8] sm:$0xff] (%p30_p3), %v177_v1  ;;  %v181_v3 = vld [vmem:[%s6737_s28 + $0x28] sm:$0xff] (%p30_p3) }
  0x13   : > { %180 = vst [vmem:[%s159_s29 + $0x10] sm:$0xff] (%p30_p3), %v179_v2  ;;  %v183_v4 = vld [vmem:[%s6737_s28 + $0x40] sm:$0xff] (%p30_p3)  ;;  %v185_v5 = vld [vmem:[%s6737_s28 + $0x48] sm:$0xff] (%p30_p3)  ;;  %182 = vst [vmem:[%s159_s29 + $0x18] sm:$0xff] (%p30_p3), %v181_v3 }
  0x14   : > { %184 = vst [vmem:[%s159_s29 + $0x20] sm:$0xff] (%p30_p3), %v183_v4  ;;  %186 = vst [vmem:[%s159_s29 + $0x28] sm:$0xff] (%p30_p3), %v185_v5  ;;  %v187_v6 = vld [vmem:[%s6737_s28 + $0x60] sm:$0xff] (%p30_p3)  ;;  %v189_v7 = vld [vmem:[%s6737_s28 + $0x68] sm:$0xff] (%p30_p3) }
  0x15   : > { %v191_v8 = vld [vmem:[%s6737_s28 + $0x80] sm:$0xff]  ;;  %188 = vst [vmem:[%s159_s29 + $0x30] sm:$0xff] %v187_v6  ;;  %190 = vst [vmem:[%s159_s29 + $0x38] sm:$0xff] %v189_v7  ;;  %v193_v9 = vld [vmem:[%s6737_s28 + $0x88] sm:$0xff] }
  0x16   : > { %192 = vst [vmem:[%s159_s29 + $0x40] sm:$0xff] %v191_v8  ;;  %v195_v10 = vld [vmem:[%s6737_s28 + $0xa0] sm:$0xff]  ;;  %v197_v11 = vld [vmem:[%s6737_s28 + $0xa8] sm:$0xff]  ;;  %194 = vst [vmem:[%s159_s29 + $0x48] sm:$0xff] %v193_v9 }
  0x17   : > { %196 = vst [vmem:[%s159_s29 + $0x50] sm:$0xff] %v195_v10  ;;  %198 = vst [vmem:[%s159_s29 + $0x58] sm:$0xff] %v197_v11  ;;  %v199_v12 = vld [vmem:[%s6737_s28 + $0xc0] sm:$0xff]  ;;  %v201_v13 = vld [vmem:[%s6737_s28 + $0xc8] sm:$0xff] }
  0x18   : > { %v203_v14 = vld [vmem:[%s6737_s28 + $0xe0] sm:$0xff]  ;;  %200 = vst [vmem:[%s159_s29 + $0x60] sm:$0xff] %v199_v12  ;;  %202 = vst [vmem:[%s159_s29 + $0x68] sm:$0xff] %v201_v13  ;;  %v205_v15 = vld [vmem:[%s6737_s28 + $0xe8] sm:$0xff] }
  0x19   : > { %204 = vst [vmem:[%s159_s29 + $0x70] sm:$0xff] %v203_v14  ;;  %206 = vst [vmem:[%s159_s29 + $0x78] sm:$0xff] %v205_v15 }
  0x1a PF: > { %p3795_p5 = scmp.ge.s32.totalorder %s6671_s17, 1  ;;  %p211_p6 = scmp.lt.s32.totalorder %s6671_s17, 3 }
  0x1c   : > { %p212_p7 = pnand %p3795_p5, %p211_p6 }
  0x1e   : > { %215 = sbr.rel (%p212_p7) target bundleno = 2560 (0xa00), region = 55 }
  0x25   : > { %v3801_v16 = vld [vmem:[%s9386_s1 + $0x308] sm:$0xff]  ;;  %v3804_v17 = vld [vmem:[%s9386_s1 + $0x320] sm:$0xff]  ;;  %v3850_v18 = vld [vmem:[%s9386_s1 + $0x490] sm:$0xff]  ;;  %s218_s21 = sand.u32 1, %s6663_s15   ;;  %s6673_s15 = smov 80   ;;  %vm1449_vm0 = vcmask 654336  }
  0x26   : > { %v6766_v19 = vpack.c.bf16 %v3804_v17, %v3801_v16  ;;  %v3853_v20 = vld [vmem:[%s9386_s1 + $0x4a8] sm:$0xff]  ;;  %v3800_v21 = vld [vmem:[%s9386_s1 + $0x300] sm:$0xff]  ;;  %v3803_v22 = vld [vmem:[%s9386_s1 + $0x318] sm:$0xff]  ;;  %s3796_s12 = sshll.u32 %s218_s21, 7  ;;  %s6676_s30 = smov 120   ;;  %vm1462_vm1 = vcmask 982016  }
  0x27   : > { %v6777_v23 = vpack.c.bf16 %v3853_v20, %v3850_v18  ;;  %v6779_v24 = vpack.c.bf16 %v3803_v22, %v3800_v21  ;;  %v3802_v25 = vld [vmem:[%s9386_s1 + $0x310] sm:$0xff]  ;;  %v3805_v26 = vld [vmem:[%s9386_s1 + $0x328] sm:$0xff]  ;;  %v3807_v27 = vld [vmem:[%s9386_s1 + $0x338] sm:$0xff]  ;;  %s6994_s20 = scalar_lea.vmem [#allocation2], %s3796_s12  ;;  %vm2426_vm2 = vcmask 850944   ;;  %vm6677_vm3 = vmmov 0  }
  0x28   : > { %9818 = vst [vmem:[#allocation3_spill] sm:$0xff] %v6766_v19  ;;  %4727 = vmatprep.subr.bf16.mxu0 %v6766_v19  ;;  %v6791_v28 = vpack.c.bf16 %v3805_v26, %v3802_v25  ;;  %v3810_v29 = vld [vmem:[%s9386_s1 + $0x350] sm:$0xff]  ;;  %v3856_v30 = vld [vmem:[%s9386_s1 + $0x4c0] sm:$0xff]  ;;  %v3859_v31 = vld [vmem:[%s9386_s1 + $0x4d8] sm:$0xff]  ;;  %vm3578_vm4 = vcmask 130048   ;;  %vm3653_vm5 = vcmask 261120  }
  0x29   : > { %9819 = vst [vmem:[#allocation4_spill] sm:$0xff] %v6777_v23  ;;  %9820 = vst [vmem:[#allocation5_spill] sm:$0xff] %v6779_v24  ;;  %4791 = vmatprep.subr.bf16.mxu1 %v6777_v23  ;;  %4729 = vmatpush1.bf16.msra.mxu0 %v6779_v24  ;;  %v6804_v32 = vpack.c.bf16 %v3810_v29, %v3807_v27  ;;  %v6806_v33 = vpack.c.bf16 %v3859_v31, %v3856_v30  ;;  %v3806_v34 = vld [vmem:[%s9386_s1 + $0x330] sm:$0xff]  ;;  %v3809_v35 = vld [vmem:[%s9386_s1 + $0x348] sm:$0xff]  ;;  %p242_p8 = scmp.lt.s32.totalorder %s3788_s18, 1  ;;  %vm3727_vm6 = vcmask 7168  }
  0x2a   : > { %9821 = vst [vmem:[#allocation6_spill] sm:$0xff] %v6791_v28  ;;  %v3808_v36 = vld [vmem:[%s9386_s1 + $0x340] sm:$0xff]  ;;  %4793 = vmatpush3.bf16.msra.mxu1 %v6791_v28  ;;  %v6818_v37 = vpack.c.bf16 %v3809_v35, %v3806_v34  ;;  %v3811_v38 = vld [vmem:[%s9386_s1 + $0x358] sm:$0xff]  ;;  %v3813_v39 = vld [vmem:[%s9386_s1 + $0x368] sm:$0xff] }
  0x2b   : > { %9822 = vst [vmem:[#allocation7_spill] sm:$0xff] %v6804_v32  ;;  %9823 = vst [vmem:[#allocation8_spill] sm:$0xff] %v6806_v33  ;;  %v3816_v40 = vld [vmem:[%s9386_s1 + $0x380] sm:$0xff]  ;;  %4731 = vmatprep.subr.bf16.mxu0 %v6804_v32  ;;  %4795 = vmatprep.subr.bf16.mxu1 %v6806_v33  ;;  %v6831_v41 = vpack.c.bf16 %v3811_v38, %v3808_v36  ;;  %v3862_v43 = vld [vmem:[%s9386_s1 + $0x4f0] sm:$0xff]  ;;  %s10420_s18 = smov (!%p242_p8, %s3788_s18), 1 }
  0x2c   : > { %9824 = vst [vmem:[#allocation9_spill] sm:$0xff] %v6818_v37  ;;  %v6833_v42 = vpack.c.bf16 %v3816_v40, %v3813_v39  ;;  %v3865_v44 = vld [vmem:[%s9386_s1 + $0x508] sm:$0xff]  ;;  %v3812_v45 = vld [vmem:[%s9386_s1 + $0x360] sm:$0xff]  ;;  %v3815_v47 = vld [vmem:[%s9386_s1 + $0x378] sm:$0xff]  ;;  %s3797_s28 = sshll.u32 %s10420_s18, 3 }
  0x2d   : > { %9825 = vst [vmem:[#allocation10_spill] sm:$0xff] %v6831_v41  ;;  %v6844_v46 = vpack.c.bf16 %v3865_v44, %v3862_v43  ;;  %v3814_v48 = vld [vmem:[%s9386_s1 + $0x370] sm:$0xff]  ;;  %v3817_v49 = vld [vmem:[%s9386_s1 + $0x388] sm:$0xff]  ;;  %4733 = vmatpush1.bf16.msra.mxu0 %v6818_v37  ;;  %v6856_v50 = vpack.c.bf16 %v3815_v47, %v3812_v45  ;;  %v3819_v51 = vld [vmem:[%s9386_s1 + $0x398] sm:$0xff]  ;;  %s245_s8 = scalar_lea.vmem %s9389_s4, %s3797_s28 }
  0x2e   : > { %9826 = vst [vmem:[#allocation11_spill] sm:$0xff] %v6833_v42  ;;  %v3822_v52 = vld [vmem:[%s9386_s1 + $0x3b0] sm:$0xff]  ;;  %v3868_v53 = vld [vmem:[%s9386_s1 + $0x520] sm:$0xff]  ;;  %4797 = vmatpush3.bf16.msra.mxu1 %v6831_v41  ;;  %4735 = vmatprep.subr.bf16.mxu0 %v6833_v42  ;;  %v6869_v54 = vpack.c.bf16 %v3817_v49, %v3814_v48  ;;  %v3871_v56 = vld [vmem:[%s9386_s1 + $0x538] sm:$0xff] }
  0x2f   : > { %9827 = vst [vmem:[#allocation12_spill] sm:$0xff] %v6844_v46  ;;  %9828 = vst [vmem:[#allocation13_spill] sm:$0xff] %v6856_v50  ;;  %v6871_v55 = vpack.c.bf16 %v3822_v52, %v3819_v51  ;;  %v3818_v57 = vld [vmem:[%s9386_s1 + $0x390] sm:$0xff]  ;;  %v3821_v58 = vld [vmem:[%s9386_s1 + $0x3a8] sm:$0xff]  ;;  %4799 = vmatprep.subr.bf16.mxu1 %v6844_v46  ;;  %v6883_v59 = vpack.c.bf16 %v3871_v56, %v3868_v53 }
  0x30   : > { %9829 = vst [vmem:[#allocation14_spill] sm:$0xff] %v6869_v54  ;;  %v3820_v60 = vld [vmem:[%s9386_s1 + $0x3a0] sm:$0xff]  ;;  %v3823_v61 = vld [vmem:[%s9386_s1 + $0x3b8] sm:$0xff]  ;;  %v3825_v62 = vld [vmem:[%s9386_s1 + $0x3c8] sm:$0xff]  ;;  %v6904_v2 = vpack.c.bf16 %v3821_v58, %v3818_v57 }
  0x31   : > { %9830 = vst [vmem:[#allocation15_spill] sm:$0xff] %v6871_v55  ;;  %9831 = vst [vmem:[#allocation16_spill] sm:$0xff] %v6883_v59  ;;  %v3828_v63 = vld [vmem:[%s9386_s1 + $0x3e0] sm:$0xff]  ;;  %v3874_v0 = vld [vmem:[%s9386_s1 + $0x550] sm:$0xff]  ;;  %4737 = vmatpush1.bf16.msra.mxu0 %v6856_v50  ;;  %v6909_v3 = vpack.c.bf16 %v3823_v61, %v3820_v60 }
  0x32   : > { %v3877_v1 = vld [vmem:[%s9386_s1 + $0x568] sm:$0xff]  ;;  %9832 = vst [vmem:[#allocation17_spill] sm:$0xff] %v6904_v2  ;;  %4801 = vmatpush3.bf16.msra.mxu1 %v6869_v54  ;;  %4739 = vmatprep.subr.bf16.mxu0 %v6871_v55  ;;  %v6911_v4 = vpack.c.bf16 %v3828_v63, %v3825_v62  ;;  %v3824_v5 = vld [vmem:[%s9386_s1 + $0x3c0] sm:$0xff]  ;;  %v3827_v6 = vld [vmem:[%s9386_s1 + $0x3d8] sm:$0xff] }
  0x33   : > { %9833 = vst [vmem:[#allocation18_spill] sm:$0xff] %v6909_v3  ;;  %v3826_v7 = vld [vmem:[%s9386_s1 + $0x3d0] sm:$0xff]  ;;  %4803 = vmatprep.subr.bf16.mxu1 %v6883_v59  ;;  %v6923_v8 = vpack.c.bf16 %v3877_v1, %v3874_v0  ;;  %v3829_v9 = vld [vmem:[%s9386_s1 + $0x3e8] sm:$0xff]  ;;  %v3831_v10 = vld [vmem:[%s9386_s1 + $0x3f8] sm:$0xff]  ;;  %v6941_v14 = vpack.c.bf16 %v3827_v6, %v3824_v5 }
  0x34   : > { %9834 = vst [vmem:[#allocation19_spill] sm:$0xff] %v6911_v4  ;;  %v3834_v11 = vld [vmem:[%s9386_s1 + $0x410] sm:$0xff]  ;;  %v3880_v12 = vld [vmem:[%s9386_s1 + $0x580] sm:$0xff]  ;;  %v3883_v13 = vld [vmem:[%s9386_s1 + $0x598] sm:$0xff]  ;;  %v6945_v15 = vpack.c.bf16 %v3829_v9, %v3826_v7 }
  0x35   : > { %9835 = vst [vmem:[#allocation20_spill] sm:$0xff] %v6923_v8  ;;  %4741 = vmatpush1.bf16.msra.mxu0 %v6904_v2  ;;  %9836 = vst [vmem:[#allocation21_spill] sm:$0xff] %v6941_v14  ;;  %v6947_v16 = vpack.c.bf16 %v3834_v11, %v3831_v10  ;;  %v3830_v17 = vld [vmem:[%s9386_s1 + $0x3f0] sm:$0xff]  ;;  %v3833_v18 = vld [vmem:[%s9386_s1 + $0x408] sm:$0xff]  ;;  %v6959_v21 = vpack.c.bf16 %v3883_v13, %v3880_v12 }
  0x36   : > { %4805 = vmatpush3.bf16.msra.mxu1 %v6909_v3  ;;  %4743 = vmatprep.subr.bf16.mxu0 %v6911_v4  ;;  %9837 = vst [vmem:[#allocation22_spill] sm:$0xff] %v6945_v15  ;;  %v3832_v20 = vld [vmem:[%s9386_s1 + $0x400] sm:$0xff]  ;;  %v3835_v22 = vld [vmem:[%s9386_s1 + $0x418] sm:$0xff]  ;;  %v3837_v25 = vld [vmem:[%s9386_s1 + $0x428] sm:$0xff]  ;;  %v6977_v30 = vpack.c.bf16 %v3833_v18, %v3830_v17 }
  0x37   : > { %9838 = vst [vmem:[#allocation23_spill] sm:$0xff] %v6947_v16  ;;  %4807 = vmatprep.subr.bf16.mxu1 %v6923_v8  ;;  %9839 = vst [vmem:[#allocation24_spill] sm:$0xff] %v6959_v21  ;;  %v3840_v26 = vld [vmem:[%s9386_s1 + $0x440] sm:$0xff]  ;;  %v3886_v27 = vld [vmem:[%s9386_s1 + $0x5b0] sm:$0xff]  ;;  %v6984_v34 = vpack.c.bf16 %v3835_v22, %v3832_v20 }
  0x38   : > { %v3889_v29 = vld [vmem:[%s9386_s1 + $0x5c8] sm:$0xff]  ;;  %9840 = vst [vmem:[#allocation25_spill] sm:$0xff] %v6977_v30  ;;  %v3836_v31 = vld [vmem:[%s9386_s1 + $0x420] sm:$0xff]  ;;  %v6986_v35 = vpack.c.bf16 %v3840_v26, %v3837_v25  ;;  %v3839_v36 = vld [vmem:[%s9386_s1 + $0x438] sm:$0xff] }
  0x39   : > { %4745 = vmatpush1.bf16.msra.mxu0 %v6941_v14  ;;  %9841 = vst [vmem:[#allocation26_spill] sm:$0xff] %v6984_v34  ;;  %v3838_v38 = vld [vmem:[%s9386_s1 + $0x430] sm:$0xff]  ;;  %v3799_v39 = vld [vmem:[%s6994_s20 + $0x18] sm:$0xff]  ;;  %v6998_v40 = vpack.c.bf16 %v3889_v29, %v3886_v27  ;;  %v3841_v43 = vld [vmem:[%s9386_s1 + $0x448] sm:$0xff]  ;;  %v7016_v49 = vpack.c.bf16 %v3839_v36, %v3836_v31 }
  0x3a   : > { %4809 = vmatpush3.bf16.msra.mxu1 %v6945_v15  ;;  %4747 = vmatprep.subr.bf16.mxu0 %v6947_v16  ;;  %9842 = vst [vmem:[#allocation27_spill] sm:$0xff] %v6986_v35  ;;  %v3843_v44 = vld [vmem:[%s9386_s1 + $0x458] sm:$0xff]  ;;  %v3846_v45 = vld [vmem:[%s9386_s1 + $0x470] sm:$0xff]  ;;  %v3892_v47 = vld [vmem:[%s9386_s1 + $0x5e0] sm:$0xff]  ;;  %v7020_v51 = vpack.c.bf16 %v3841_v43, %v3838_v38 }
  0x3b   : > { %4811 = vmatprep.subr.bf16.mxu1 %v6959_v21  ;;  %9843 = vst [vmem:[#allocation28_spill] sm:$0xff] %v6998_v40  ;;  %605 = vmatprep.mubr.f32.mxu1 %v3799_v39  ;;  %v3895_v48 = vld [vmem:[%s9386_s1 + $0x5f8] sm:$0xff]  ;;  %9844 = vst [vmem:[#allocation29_spill] sm:$0xff] %v7016_v49  ;;  %v7022_v52 = vpack.c.bf16 %v3846_v45, %v3843_v44  ;;  %v3842_v53 = vld [vmem:[%s9386_s1 + $0x450] sm:$0xff] }
  0x3c   : > { %534 = vmatprep.mubr.f32.mxu0 %v3799_v39  ;;  %9845 = vst [vmem:[#allocation30_spill] sm:$0xff] %v7020_v51  ;;  %v3845_v56 = vld [vmem:[%s9386_s1 + $0x468] sm:$0xff]  ;;  %v3844_v57 = vld [vmem:[%s9386_s1 + $0x460] sm:$0xff]  ;;  %v7034_v58 = vpack.c.bf16 %v3895_v48, %v3892_v47  ;;  %v3847_v60 = vld [vmem:[%s9386_s1 + $0x478] sm:$0xff] }
  0x3d   : > { %4749 = vmatpush1.bf16.msra.mxu0 %v6977_v30  ;;  %9846 = vst [vmem:[#allocation31_spill] sm:$0xff] %v7022_v52  ;;  %v3849_v61 = vld [vmem:[%s9386_s1 + $0x488] sm:$0xff]  ;;  %v3852_v62 = vld [vmem:[%s9386_s1 + $0x4a0] sm:$0xff]  ;;  %v324_v63 = vld [vmem:[%s9386_s1 + $0x190] sm:$0xff]  ;;  %v7052_v1 = vpack.c.bf16 %v3845_v56, %v3842_v53  ;;  %v7056_v5 = vpack.c.bf16 %v3847_v60, %v3844_v57 }
  0x3e   : > { %4813 = vmatpush3.bf16.msra.mxu1 %v6984_v34  ;;  %4751 = vmatprep.subr.bf16.mxu0 %v6986_v35  ;;  %9847 = vst [vmem:[#allocation32_spill] sm:$0xff] %v7034_v58  ;;  %v327_v0 = vld [vmem:[%s9386_s1 + $0x1a8] sm:$0xff]  ;;  %v7058_v6 = vpack.c.bf16 %v3852_v62, %v3849_v61  ;;  %v3848_v7 = vld [vmem:[%s9386_s1 + $0x480] sm:$0xff]  ;;  %v3851_v9 = vld [vmem:[%s9386_s1 + $0x498] sm:$0xff] }
  0x3f   : > { %4815 = vmatprep.subr.bf16.mxu1 %v6998_v40  ;;  %9848 = vst [vmem:[#allocation33_spill] sm:$0xff] %v7052_v1  ;;  %9849 = vst [vmem:[#allocation34_spill] sm:$0xff] %v7056_v5  ;;  %v276_v10 = vld [vmem:[%s9386_s1 + $0x10] sm:$0xff]  ;;  %v7070_v11 = vpack.c.bf16 %v327_v0, %v324_v63  ;;  %v279_v12 = vld [vmem:[%s9386_s1 + $0x28] sm:$0xff]  ;;  %v7091_v25 = vpack.c.bf16 %v3851_v9, %v3848_v7 }
  0x40   : > { %9850 = vst [vmem:[#allocation35_spill] sm:$0xff] %v7058_v6  ;;  %v3855_v13 = vld [vmem:[%s9386_s1 + $0x4b8] sm:$0xff]  ;;  %v3858_v17 = vld [vmem:[%s9386_s1 + $0x4d0] sm:$0xff]  ;;  %v330_v18 = vld [vmem:[%s9386_s1 + $0x1c0] sm:$0xff]  ;;  %v7095_v26 = vpack.c.bf16 %v279_v12, %v276_v10 }
  0x41   : > { %4753 = vmatpush1.bf16.msra.mxu0 %v7016_v49  ;;  %9851 = vst [vmem:[#allocation36_spill] sm:$0xff] %v7070_v11  ;;  %v333_v20 = vld [vmem:[%s9386_s1 + $0x1d8] sm:$0xff]  ;;  %v7089_v22 = vld [vmem:[%s6994_s20 + $0x10] sm:$0xff]  ;;  %9852 = vst [vmem:[#allocation37_spill] sm:$0xff] %v7091_v25  ;;  %v7097_v27 = vpack.c.bf16 %v3858_v17, %v3855_v13 }
  0x42   : > { %4817 = vmatpush3.bf16.msra.mxu1 %v7020_v51  ;;  %4755 = vmatprep.subr.bf16.mxu0 %v7022_v52  ;;  %9853 = vst [vmem:[#allocation38_spill] sm:$0xff] %v7095_v26  ;;  %v3854_v29 = vld [vmem:[%s9386_s1 + $0x4b0] sm:$0xff]  ;;  %v3857_v31 = vld [vmem:[%s9386_s1 + $0x4c8] sm:$0xff]  ;;  %v282_v36 = vld [vmem:[%s9386_s1 + $0x40] sm:$0xff]  ;;  %v7109_v38 = vpack.c.bf16 %v333_v20, %v330_v18 }
  0x43   : > { %4819 = vmatprep.subr.bf16.mxu1 %v7034_v58  ;;  %9854 = vst [vmem:[#allocation39_spill] sm:$0xff] %v7097_v27  ;;  %v285_v39 = vld [vmem:[%s9386_s1 + $0x58] sm:$0xff]  ;;  %v3861_v43 = vld [vmem:[%s9386_s1 + $0x4e8] sm:$0xff]  ;;  %v3864_v44 = vld [vmem:[%s9386_s1 + $0x500] sm:$0xff]  ;;  %v7128_v48 = vpack.c.bf16 %v3857_v31, %v3854_v29 }
  0x44   : > { %9855 = vst [vmem:[#allocation40_spill] sm:$0xff] %v7109_v38  ;;  %v336_v45 = vld [vmem:[%s9386_s1 + $0x1f0] sm:$0xff]  ;;  %v339_v47 = vld [vmem:[%s9386_s1 + $0x208] sm:$0xff]  ;;  %v7132_v53 = vpack.c.bf16 %v285_v39, %v282_v36  ;;  %v7134_v56 = vpack.c.bf16 %v3864_v44, %v3861_v43  ;;  %v3860_v57 = vld [vmem:[%s9386_s1 + $0x4e0] sm:$0xff] }
  0x45   : > { %4757 = vmatpush1.bf16.msra.mxu0 %v7052_v1  ;;  %9856 = vst [vmem:[#allocation41_spill] sm:$0xff] %v7128_v48  ;;  %v3863_v60 = vld [vmem:[%s9386_s1 + $0x4f8] sm:$0xff]  ;;  %v288_v61 = vld [vmem:[%s9386_s1 + $0x70] sm:$0xff]  ;;  %v7146_v62 = vpack.c.bf16 %v339_v47, %v336_v45  ;;  %v291_v63 = vld [vmem:[%s9386_s1 + $0x88] sm:$0xff] }
  0x46   : > { %4821 = vmatpush3.bf16.msra.mxu1 %v7056_v5  ;;  %4759 = vmatprep.subr.bf16.mxu0 %v7058_v6  ;;  %9857 = vst [vmem:[#allocation42_spill] sm:$0xff] %v7132_v53  ;;  %9858 = vst [vmem:[#allocation43_spill] sm:$0xff] %v7134_v56  ;;  %v3867_v0 = vld [vmem:[%s9386_s1 + $0x518] sm:$0xff]  ;;  %v3870_v7 = vld [vmem:[%s9386_s1 + $0x530] sm:$0xff]  ;;  %v7164_v12 = vpack.c.bf16 %v3863_v60, %v3860_v57  ;;  %v7168_v13 = vpack.c.bf16 %v291_v63, %v288_v61 }
  0x47   : > { %4887 = vmatprep.subr.bf16.mxu1 %v7070_v11  ;;  %9859 = vst [vmem:[#allocation44_spill] sm:$0xff] %v7146_v62  ;;  %v342_v9 = vld [vmem:[%s9386_s1 + $0x220] sm:$0xff]  ;;  %v345_v10 = vld [vmem:[%s9386_s1 + $0x238] sm:$0xff]  ;;  %v7170_v17 = vpack.c.bf16 %v3870_v7, %v3867_v0  ;;  %v3866_v18 = vld [vmem:[%s9386_s1 + $0x510] sm:$0xff] }
  0x48   : > { %9860 = vst [vmem:[#allocation45_spill] sm:$0xff] %v7164_v12  ;;  %9861 = vst [vmem:[#allocation46_spill] sm:$0xff] %v7168_v13  ;;  %v3869_v20 = vld [vmem:[%s9386_s1 + $0x528] sm:$0xff]  ;;  %v294_v29 = vld [vmem:[%s9386_s1 + $0xa0] sm:$0xff]  ;;  %v7182_v31 = vpack.c.bf16 %v345_v10, %v342_v9 }
  0x49   : > { %606 = vmatmul.mubr.f32.vlgmr.msra.gmra.mrb[0].mxu1 %v7089_v22  ;;  %4761 = vmatpush1.bf16.msra.mxu0 %v7091_v25  ;;  %9862 = vst [vmem:[#allocation47_spill] sm:$0xff] %v7170_v17  ;;  %v297_v36 = vld [vmem:[%s9386_s1 + $0xb8] sm:$0xff]  ;;  %v3873_v39 = vld [vmem:[%s9386_s1 + $0x548] sm:$0xff]  ;;  %v3876_v43 = vld [vmem:[%s9386_s1 + $0x560] sm:$0xff]  ;;  %v7203_v57 = vpack.c.bf16 %v3869_v20, %v3866_v18 }
  0x4a   : > { %4889 = vmatpush3.bf16.msra.mxu1 %v7095_v26  ;;  %4763 = vmatprep.subr.bf16.mxu0 %v7097_v27  ;;  %9863 = vst [vmem:[#allocation48_spill] sm:$0xff] %v7182_v31  ;;  %v348_v44 = vld [vmem:[%s9386_s1 + $0x250] sm:$0xff]  ;;  %v351_v45 = vld [vmem:[%s9386_s1 + $0x268] sm:$0xff]  ;;  %v7208_v60 = vpack.c.bf16 %v297_v36, %v294_v29  ;;  %v7210_v61 = vpack.c.bf16 %v3876_v43, %v3873_v39  ;;  %v3872_v63 = vld [vmem:[%s9386_s1 + $0x540] sm:$0xff] }
  0x4b   : > { %4891 = vmatprep.subr.bf16.mxu1 %v7109_v38  ;;  %v7200_v47 = vld [vmem:[%s6994_s20 + $0x8] sm:$0xff]  ;;  %9864 = vst [vmem:[#allocation49_spill] sm:$0xff] %v7203_v57  ;;  %v3875_v0 = vld [vmem:[%s9386_s1 + $0x558] sm:$0xff]  ;;  %v300_v7 = vld [vmem:[%s9386_s1 + $0xd0] sm:$0xff]  ;;  %v7222_v9 = vpack.c.bf16 %v351_v45, %v348_v44 }
  0x4c   : > { %746 = vmatprep.mubr.f32.mxu1 %v7200_v47  ;;  %9865 = vst [vmem:[#allocation50_spill] sm:$0xff] %v7208_v60  ;;  %9866 = vst [vmem:[#allocation51_spill] sm:$0xff] %v7210_v61  ;;  %v303_v10 = vld [vmem:[%s9386_s1 + $0xe8] sm:$0xff]  ;;  %v3879_v18 = vld [vmem:[%s9386_s1 + $0x578] sm:$0xff]  ;;  %v7240_v39 = vpack.c.bf16 %v3875_v0, %v3872_v63 }
  0x4d   : > { %4765 = vmatpush1.bf16.msra.mxu0 %v7128_v48  ;;  %9867 = vst [vmem:[#allocation52_spill] sm:$0xff] %v7222_v9  ;;  %v3882_v20 = vld [vmem:[%s9386_s1 + $0x590] sm:$0xff]  ;;  %v354_v29 = vld [vmem:[%s9386_s1 + $0x280] sm:$0xff]  ;;  %v357_v36 = vld [vmem:[%s9386_s1 + $0x298] sm:$0xff]  ;;  %v7244_v43 = vpack.c.bf16 %v303_v10, %v300_v7 }
  0x4e   : > { %4893 = vmatpush3.bf16.msra.mxu1 %v7132_v53  ;;  %4767 = vmatprep.subr.bf16.mxu0 %v7134_v56  ;;  %9868 = vst [vmem:[#allocation53_spill] sm:$0xff] %v7240_v39  ;;  %v7246_v44 = vpack.c.bf16 %v3882_v20, %v3879_v18  ;;  %v3878_v45 = vld [vmem:[%s9386_s1 + $0x570] sm:$0xff]  ;;  %v306_v63 = vld [vmem:[%s9386_s1 + $0x100] sm:$0xff]  ;;  %v7258_v0 = vpack.c.bf16 %v357_v36, %v354_v29  ;;  %v309_v7 = vld [vmem:[%s9386_s1 + $0x118] sm:$0xff] }
  0x4f   : > { %4895 = vmatprep.subr.bf16.mxu1 %v7146_v62  ;;  %9869 = vst [vmem:[#allocation54_spill] sm:$0xff] %v7244_v43  ;;  %v3885_v10 = vld [vmem:[%s9386_s1 + $0x5a8] sm:$0xff]  ;;  %v3888_v18 = vld [vmem:[%s9386_s1 + $0x5c0] sm:$0xff]  ;;  %v360_v20 = vld [vmem:[%s9386_s1 + $0x2b0] sm:$0xff] }
  0x50   : > { %9870 = vst [vmem:[#allocation55_spill] sm:$0xff] %v7246_v44  ;;  %9871 = vst [vmem:[#allocation56_spill] sm:$0xff] %v7258_v0  ;;  %v363_v29 = vld [vmem:[%s9386_s1 + $0x2c8] sm:$0xff]  ;;  %v3887_v62 = vld [vmem:[%s9386_s1 + $0x5b8] sm:$0xff] }
  0x51   : > { %4769 = vmatpush1.bf16.msra.mxu0 %v7164_v12  ;;  %v3890_v53 = vld [vmem:[%s9386_s1 + $0x5d0] sm:$0xff]  ;;  %v3893_v38 = vld [vmem:[%s9386_s1 + $0x5e8] sm:$0xff]  ;;  %v274_v26 = vld [vmem:[%s9386_s1] sm:$0xff] }
  0x52   : > { %4897 = vmatpush3.bf16.msra.mxu1 %v7168_v13  ;;  %4771 = vmatprep.subr.bf16.mxu0 %v7170_v17  ;;  %v3884_v13 = vld [vmem:[%s9386_s1 + $0x5a0] sm:$0xff]  ;;  %v277_v11 = vld [vmem:[%s9386_s1 + $0x18] sm:$0xff]  ;;  %v280_v58 = vld [vmem:[%s9386_s1 + $0x30] sm:$0xff] }
  0x53   : > { %4899 = vmatprep.subr.bf16.mxu1 %v7182_v31  ;;  %v3881_v31 = vld [vmem:[%s9386_s1 + $0x588] sm:$0xff]  ;;  %v289_v40 = vld [vmem:[%s9386_s1 + $0x78] sm:$0xff] }
  0x54   : > { %v7276_v36 = vpack.c.bf16 %v3881_v31, %v3878_v45  ;;  %v312_v31 = vld [vmem:[%s9386_s1 + $0x130] sm:$0xff]  ;;  %v7294_v45 = vpack.c.bf16 %v363_v29, %v360_v20  ;;  %v369_v20 = vld [vmem:[%s9386_s1 + $0x2f8] sm:$0xff]  ;;  %v7312_v29 = vpack.c.bf16 %v3887_v62, %v3884_v13  ;;  %v318_v62 = vld [vmem:[%s9386_s1 + $0x160] sm:$0xff] }
  0x55   : > { %4773 = vmatpush1.bf16.msra.mxu0 %v7203_v57  ;;  %v283_v51 = vld [vmem:[%s9386_s1 + $0x48] sm:$0xff] }
  0x56   : > { %4901 = vmatpush3.bf16.msra.mxu1 %v7208_v60  ;;  %4775 = vmatprep.subr.bf16.mxu0 %v7210_v61  ;;  %9872 = vst [vmem:[#allocation57_spill] sm:$0xff] %v7276_v36  ;;  %v7282_v60 = vpack.c.bf16 %v3888_v18, %v3885_v10  ;;  %9875 = vst [vmem:[#allocation60_spill] sm:$0xff] %v7294_v45  ;;  %v3894_v10 = vld [vmem:[%s9386_s1 + $0x5f0] sm:$0xff]  ;;  %v366_v18 = vld [vmem:[%s9386_s1 + $0x2e0] sm:$0xff] }
  0x57   : > { %4903 = vmatprep.subr.bf16.mxu1 %v7222_v9  ;;  %v7280_v9 = vpack.c.bf16 %v309_v7, %v306_v63  ;;  %v315_v63 = vld [vmem:[%s9386_s1 + $0x148] sm:$0xff]  ;;  %v3891_v7 = vld [vmem:[%s9386_s1 + $0x5d8] sm:$0xff]  ;;  %9876 = vst [vmem:[#allocation61_spill] sm:$0xff] %v7312_v29  ;;  %v7330_v13 = vpack.c.bf16 %v369_v20, %v366_v18  ;;  %v7348_v20 = vpack.c.bf16 %v3893_v38, %v3890_v53  ;;  %v3900_v38 = vld [vmem:[%s9386_s1 + $0x610] sm:$0xff] }
  0x58   : > { %9874 = vst [vmem:[#allocation59_spill] sm:$0xff] %v7282_v60  ;;  %v3951_v18 = vld [vmem:[%s9386_s1 + $0x7a8] sm:$0xff] }
  0x59   : > { %4777 = vmatpush1.bf16.msra.mxu0 %v7240_v39  ;;  %9873 = vst [vmem:[#allocation58_spill] sm:$0xff] %v7280_v9  ;;  %9879 = vst [vmem:[#allocation64_spill] sm:$0xff] %v7330_v13 }
  0x5a   : > { %4905 = vmatpush3.bf16.msra.mxu1 %v7244_v43  ;;  %4779 = vmatprep.subr.bf16.mxu0 %v7246_v44  ;;  %v7318_v43 = vpack.c.bf16 %v3894_v10, %v3891_v7  ;;  %v278_v7 = vld [vmem:[%s9386_s1 + $0x20] sm:$0xff]  ;;  %v3948_v10 = vld [vmem:[%s9386_s1 + $0x790] sm:$0xff]  ;;  %9880 = vst [vmem:[#allocation65_spill] sm:$0xff] %v7348_v20 }
  0x5b   : > { %4907 = vmatprep.subr.bf16.mxu1 %v7258_v0  ;;  %v7316_v0 = vpack.c.bf16 %v315_v63, %v312_v31  ;;  %v321_v31 = vld [vmem:[%s9386_s1 + $0x178] sm:$0xff]  ;;  %v275_v63 = vld [vmem:[%s9386_s1 + $0x8] sm:$0xff]  ;;  %v7366_v53 = vpack.c.bf16 %v3951_v18, %v3948_v10  ;;  %v7385_v18 = vld [vmem:[%s6994_s20] sm:$0xff] }
  0x5c   : > { %9878 = vst [vmem:[#allocation63_spill] sm:$0xff] %v7318_v43  ;;  %v3957_v10 = vld [vmem:[%s9386_s1 + $0x7d8] sm:$0xff] }
  0x5d   : > { %4781 = vmatpush1.bf16.msra.mxu0 %v7276_v36  ;;  %9877 = vst [vmem:[#allocation62_spill] sm:$0xff] %v7316_v0  ;;  %9883 = vst [vmem:[#allocation68_spill] sm:$0xff] %v7366_v53 }
  0x5e   : > { %4909 = vmatpush3.bf16.msra.mxu1 %v7280_v9  ;;  %4783 = vmatprep.subr.bf16.mxu0 %v7282_v60  ;;  %v7354_v9 = vpack.c.bf16 %v278_v7, %v275_v63  ;;  %v284_v63 = vld [vmem:[%s9386_s1 + $0x50] sm:$0xff]  ;;  %v3954_v7 = vld [vmem:[%s9386_s1 + $0x7c0] sm:$0xff] }
  0x5f   : > { %4911 = vmatprep.subr.bf16.mxu1 %v7294_v45  ;;  %v7352_v45 = vpack.c.bf16 %v321_v31, %v318_v62  ;;  %v3903_v62 = vld [vmem:[%s9386_s1 + $0x628] sm:$0xff]  ;;  %v281_v31 = vld [vmem:[%s9386_s1 + $0x38] sm:$0xff] }
  0x60   : > { %9882 = vst [vmem:[#allocation67_spill] sm:$0xff] %v7354_v9  ;;  %v7393_v5 = vpack.c.bf16 %v284_v63, %v281_v31  ;;  %v290_v31 = vld [vmem:[%s9386_s1 + $0x80] sm:$0xff]  ;;  %v3960_v63 = vld [vmem:[%s9386_s1 + $0x7f0] sm:$0xff] }
  0x61   : > { %4785 = vmatpush1.bf16.msra.mxu0 %v7312_v29  ;;  %9881 = vst [vmem:[#allocation66_spill] sm:$0xff] %v7352_v45 }
  0x62   : > { %4913 = vmatpush3.bf16.msra.mxu1 %v7316_v0  ;;  %4787 = vmatprep.subr.bf16.mxu0 %v7318_v43  ;;  %v7391_v0 = vpack.c.bf16 %v3903_v62, %v3900_v38  ;;  %9886 = vst [vmem:[#allocation71_spill] sm:$0xff] %v7393_v5  ;;  %v3909_v38 = vld [vmem:[%s9386_s1 + $0x658] sm:$0xff]  ;;  %v287_v62 = vld [vmem:[%s9386_s1 + $0x68] sm:$0xff] }
  0x63   : > { %4915 = vmatprep.subr.bf16.mxu1 %v7330_v13  ;;  %v7387_v13 = vpack.c.bf16 %v277_v11, %v274_v26  ;;  %v3906_v11 = vld [vmem:[%s9386_s1 + $0x640] sm:$0xff]  ;;  %v7405_v26 = vpack.c.bf16 %v3957_v10, %v3954_v7  ;;  %v3963_v7 = vld [vmem:[%s9386_s1 + $0x808] sm:$0xff] }
  0x64   : > { %9885 = vst [vmem:[#allocation70_spill] sm:$0xff] %v7391_v0  ;;  %v7424_v10 = vld [vmem:[%s6994_s20 + $0x28] sm:$0xff] }
  0x65   : > { %4789 = vmatpush1.bf16.msra.mxu0 %v7348_v20  ;;  %9884 = vst [vmem:[#allocation69_spill] sm:$0xff] %v7387_v13  ;;  %9887 = vst [vmem:[#allocation72_spill] sm:$0xff] %v7405_v26 }
  0x66   : > { %4917 = vmatpush3.bf16.msra.mxu1 %v7352_v45  ;;  %4823 = vmatprep.subr.bf16.mxu0 %v7354_v9  ;;  %v7434_v45 = vpack.c.bf16 %v290_v31, %v287_v62  ;;  %v286_v9 = vld [vmem:[%s9386_s1 + $0x60] sm:$0xff]  ;;  %v296_v62 = vld [vmem:[%s9386_s1 + $0xb0] sm:$0xff] }
  0x67   : > { %4983 = vmatprep.subr.bf16.mxu1 %v7366_v53  ;;  %v7428_v53 = vpack.c.bf16 %v283_v51, %v280_v58  ;;  %v3912_v51 = vld [vmem:[%s9386_s1 + $0x670] sm:$0xff]  ;;  %v7446_v58 = vpack.c.bf16 %v3963_v7, %v3960_v63  ;;  %v3966_v31 = vld [vmem:[%s9386_s1 + $0x820] sm:$0xff]  ;;  %v3969_v63 = vld [vmem:[%s9386_s1 + $0x838] sm:$0xff]  ;;  %v7466_v7 = vpack.c.bf16 %v289_v40, %v286_v9 }
  0x68   : > { %535 = vmatmul.mubr.f32.vlgmr.msra.gmra.mrb[0].mxu0 %v7089_v22  ;;  %v7432_v22 = vpack.c.bf16 %v3909_v38, %v3906_v11  ;;  %9890 = vst [vmem:[#allocation75_spill] sm:$0xff] %v7434_v45  ;;  %v3915_v11 = vld [vmem:[%s9386_s1 + $0x688] sm:$0xff]  ;;  %v293_v38 = vld [vmem:[%s9386_s1 + $0x98] sm:$0xff]  ;;  %v3918_v40 = vld [vmem:[%s9386_s1 + $0x6a0] sm:$0xff]  ;;  %v7484_v9 = vpack.c.bf16 %v3969_v63, %v3966_v31 }
  0x69   : > { %747 = vmatmul.mubr.f32.vlgmr.msra.gmra.mrb[2].mxu1 %v7385_v18  ;;  %4825 = vmatpush1.bf16.msra.mxu0 %v7387_v13  ;;  %9888 = vst [vmem:[#allocation73_spill] sm:$0xff] %v7428_v53  ;;  %9891 = vst [vmem:[#allocation76_spill] sm:$0xff] %v7446_v58  ;;  %v3975_v31 = vld [vmem:[%s9386_s1 + $0x868] sm:$0xff] }
  0x6a   : > { %4985 = vmatpush3.bf16.msra.mxu1 %v7391_v0  ;;  %4827 = vmatprep.subr.bf16.mxu0 %v7393_v5  ;;  %9889 = vst [vmem:[#allocation74_spill] sm:$0xff] %v7432_v22  ;;  %9892 = vst [vmem:[#allocation77_spill] sm:$0xff] %v7466_v7  ;;  %v7472_v0 = vpack.c.bf16 %v296_v62, %v293_v38  ;;  %v292_v5 = vld [vmem:[%s9386_s1 + $0x90] sm:$0xff]  ;;  %v302_v38 = vld [vmem:[%s9386_s1 + $0xe0] sm:$0xff] }
  0x6b   : > { %4987 = vmatprep.subr.bf16.mxu1 %v7405_v26  ;;  %987 = vmatprep.mubr.f32.mxu1 %v7424_v10  ;;  %v7470_v26 = vpack.c.bf16 %v3915_v11, %v3912_v51  ;;  %9895 = vst [vmem:[#allocation80_spill] sm:$0xff] %v7484_v9  ;;  %v3921_v51 = vld [vmem:[%s9386_s1 + $0x6b8] sm:$0xff]  ;;  %v299_v11 = vld [vmem:[%s9386_s1 + $0xc8] sm:$0xff]  ;;  %v3972_v62 = vld [vmem:[%s9386_s1 + $0x850] sm:$0xff] }
  0x6c   : > { %675 = vmatprep.mubr.f32.mxu0 %v7200_v47  ;;  %9894 = vst [vmem:[#allocation79_spill] sm:$0xff] %v7472_v0  ;;  %v295_v47 = vld [vmem:[%s9386_s1 + $0xa8] sm:$0xff] }
  0x6d   : > { %4829 = vmatpush1.bf16.msra.mxu0 %v7428_v53  ;;  %9893 = vst [vmem:[#allocation78_spill] sm:$0xff] %v7470_v26  ;;  %v7502_v63 = vpack.c.bf16 %v295_v47, %v292_v5  ;;  %v301_v53 = vld [vmem:[%s9386_s1 + $0xd8] sm:$0xff]  ;;  %v3924_v5 = vld [vmem:[%s9386_s1 + $0x6d0] sm:$0xff]  ;;  %v7520_v47 = vpack.c.bf16 %v3975_v31, %v3972_v62 }
  0x6e   : > { %4989 = vmatpush3.bf16.msra.mxu1 %v7432_v22  ;;  %4831 = vmatprep.subr.bf16.mxu0 %v7434_v45  ;;  %v7508_v22 = vpack.c.bf16 %v302_v38, %v299_v11  ;;  %v298_v45 = vld [vmem:[%s9386_s1 + $0xc0] sm:$0xff]  ;;  %v308_v11 = vld [vmem:[%s9386_s1 + $0x110] sm:$0xff]  ;;  %v3981_v62 = vld [vmem:[%s9386_s1 + $0x898] sm:$0xff] }
  0x6f   : > { %4991 = vmatprep.subr.bf16.mxu1 %v7446_v58  ;;  %9896 = vst [vmem:[#allocation81_spill] sm:$0xff] %v7502_v63  ;;  %v7506_v58 = vpack.c.bf16 %v3921_v51, %v3918_v40  ;;  %9899 = vst [vmem:[#allocation84_spill] sm:$0xff] %v7520_v47  ;;  %v3927_v40 = vld [vmem:[%s9386_s1 + $0x6e8] sm:$0xff]  ;;  %v305_v51 = vld [vmem:[%s9386_s1 + $0xf8] sm:$0xff]  ;;  %v7538_v31 = vpack.c.bf16 %v301_v53, %v298_v45 }
  0x70   : > { %9898 = vst [vmem:[#allocation83_spill] sm:$0xff] %v7508_v22  ;;  %v3978_v38 = vld [vmem:[%s9386_s1 + $0x880] sm:$0xff] }
  0x71   : > { %4833 = vmatpush1.bf16.msra.mxu0 %v7466_v7  ;;  %9897 = vst [vmem:[#allocation82_spill] sm:$0xff] %v7506_v58  ;;  %9900 = vst [vmem:[#allocation85_spill] sm:$0xff] %v7538_v31  ;;  %v307_v7 = vld [vmem:[%s9386_s1 + $0x108] sm:$0xff]  ;;  %v3930_v45 = vld [vmem:[%s9386_s1 + $0x700] sm:$0xff]  ;;  %v7556_v53 = vpack.c.bf16 %v3981_v62, %v3978_v38 }
  0x72   : > { %4993 = vmatpush3.bf16.msra.mxu1 %v7470_v26  ;;  %4835 = vmatprep.subr.bf16.mxu0 %v7472_v0  ;;  %v7544_v26 = vpack.c.bf16 %v308_v11, %v305_v51  ;;  %v304_v0 = vld [vmem:[%s9386_s1 + $0xf0] sm:$0xff]  ;;  %v314_v51 = vld [vmem:[%s9386_s1 + $0x140] sm:$0xff]  ;;  %v3987_v38 = vld [vmem:[%s9386_s1 + $0x8c8] sm:$0xff] }
  0x73   : > { %4995 = vmatprep.subr.bf16.mxu1 %v7484_v9  ;;  %v7542_v9 = vpack.c.bf16 %v3927_v40, %v3924_v5  ;;  %9903 = vst [vmem:[#allocation88_spill] sm:$0xff] %v7556_v53  ;;  %v3933_v5 = vld [vmem:[%s9386_s1 + $0x718] sm:$0xff]  ;;  %v311_v40 = vld [vmem:[%s9386_s1 + $0x128] sm:$0xff]  ;;  %v3984_v11 = vld [vmem:[%s9386_s1 + $0x8b0] sm:$0xff]  ;;  %v7574_v62 = vpack.c.bf16 %v307_v7, %v304_v0 }
  0x74   : > { %9902 = vst [vmem:[#allocation87_spill] sm:$0xff] %v7544_v26  ;;  %v3936_v0 = vld [vmem:[%s9386_s1 + $0x730] sm:$0xff]  ;;  %v7592_v7 = vpack.c.bf16 %v3987_v38, %v3984_v11  ;;  %v3993_v11 = vld [vmem:[%s9386_s1 + $0x8f8] sm:$0xff] }
  0x75   : > { %4837 = vmatpush1.bf16.msra.mxu0 %v7502_v63  ;;  %9901 = vst [vmem:[#allocation86_spill] sm:$0xff] %v7542_v9  ;;  %9904 = vst [vmem:[#allocation89_spill] sm:$0xff] %v7574_v62  ;;  %v313_v63 = vld [vmem:[%s9386_s1 + $0x138] sm:$0xff] }
  0x76   : > { %4997 = vmatpush3.bf16.msra.mxu1 %v7506_v58  ;;  %4839 = vmatprep.subr.bf16.mxu0 %v7508_v22  ;;  %v7580_v58 = vpack.c.bf16 %v314_v51, %v311_v40  ;;  %v310_v22 = vld [vmem:[%s9386_s1 + $0x120] sm:$0xff]  ;;  %9907 = vst [vmem:[#allocation92_spill] sm:$0xff] %v7592_v7  ;;  %v320_v40 = vld [vmem:[%s9386_s1 + $0x170] sm:$0xff] }
  0x77   : > { %4999 = vmatprep.subr.bf16.mxu1 %v7520_v47  ;;  %v7578_v47 = vpack.c.bf16 %v3933_v5, %v3930_v45  ;;  %v3939_v45 = vld [vmem:[%s9386_s1 + $0x748] sm:$0xff]  ;;  %v317_v5 = vld [vmem:[%s9386_s1 + $0x158] sm:$0xff]  ;;  %v3990_v51 = vld [vmem:[%s9386_s1 + $0x8e0] sm:$0xff]  ;;  %v7610_v38 = vpack.c.bf16 %v313_v63, %v310_v22 }
  0x78   : > { %9906 = vst [vmem:[#allocation91_spill] sm:$0xff] %v7580_v58  ;;  %v3942_v22 = vld [vmem:[%s9386_s1 + $0x760] sm:$0xff]  ;;  %v7628_v63 = vpack.c.bf16 %v3993_v11, %v3990_v51 }
  0x79   : > { %4841 = vmatpush1.bf16.msra.mxu0 %v7538_v31  ;;  %9905 = vst [vmem:[#allocation90_spill] sm:$0xff] %v7578_v47  ;;  %9908 = vst [vmem:[#allocation93_spill] sm:$0xff] %v7610_v38  ;;  %v319_v31 = vld [vmem:[%s9386_s1 + $0x168] sm:$0xff] }
  0x7a   : > { %5001 = vmatpush3.bf16.msra.mxu1 %v7542_v9  ;;  %4843 = vmatprep.subr.bf16.mxu0 %v7544_v26  ;;  %v7616_v9 = vpack.c.bf16 %v320_v40, %v317_v5  ;;  %v316_v26 = vld [vmem:[%s9386_s1 + $0x150] sm:$0xff]  ;;  %9911 = vst [vmem:[#allocation96_spill] sm:$0xff] %v7628_v63  ;;  %v326_v5 = vld [vmem:[%s9386_s1 + $0x1a0] sm:$0xff] }
  0x7b   : > { %5003 = vmatprep.subr.bf16.mxu1 %v7556_v53  ;;  %v7614_v53 = vpack.c.bf16 %v3939_v45, %v3936_v0  ;;  %v3945_v0 = vld [vmem:[%s9386_s1 + $0x778] sm:$0xff]  ;;  %v323_v45 = vld [vmem:[%s9386_s1 + $0x188] sm:$0xff]  ;;  %v7640_v40 = vpack.c.bf16 %v319_v31, %v316_v26  ;;  %v332_v31 = vld [vmem:[%s9386_s1 + $0x1d0] sm:$0xff] }
  0x7c   : > { %9910 = vst [vmem:[#allocation95_spill] sm:$0xff] %v7616_v9  ;;  %v7644_v51 = vpack.c.bf16 %v3945_v0, %v3942_v22  ;;  %v7646_v11 = vpack.c.bf16 %v326_v5, %v323_v45  ;;  %v329_v26 = vld [vmem:[%s9386_s1 + $0x1b8] sm:$0xff]  ;;  %v7667_v0 = vld [vmem:[%s6994_s20 + $0x20] sm:$0xff]  ;;  %v328_v5 = vld [vmem:[%s9386_s1 + $0x1b0] sm:$0xff] }
  0x7d   : > { %4845 = vmatpush1.bf16.msra.mxu0 %v7574_v62  ;;  %9909 = vst [vmem:[#allocation94_spill] sm:$0xff] %v7614_v53  ;;  %9912 = vst [vmem:[#allocation97_spill] sm:$0xff] %v7640_v40  ;;  %v7669_v45 = vpack.c.bf16 %v332_v31, %v329_v26 }
  0x7e   : > { %5005 = vmatpush3.bf16.msra.mxu1 %v7578_v47  ;;  %4847 = vmatprep.subr.bf16.mxu0 %v7580_v58  ;;  %9913 = vst [vmem:[#allocation98_spill] sm:$0xff] %v7644_v51  ;;  %9914 = vst [vmem:[#allocation99_spill] sm:$0xff] %v7646_v11  ;;  %v325_v47 = vld [vmem:[%s9386_s1 + $0x198] sm:$0xff] }
  0x7f   : > { %5007 = vmatprep.subr.bf16.mxu1 %v7592_v7  ;;  %v322_v7 = vld [vmem:[%s9386_s1 + $0x180] sm:$0xff]  ;;  %9916 = vst [vmem:[#allocation101_spill] sm:$0xff] %v7667_v0  ;;  %9917 = vst [vmem:[#allocation102_spill] sm:$0xff] %v7669_v45 }
  0x80   : > { %v7662_v22 = vpack.c.bf16 %v325_v47, %v322_v7  ;;  %v335_v47 = vld [vmem:[%s9386_s1 + $0x1e8] sm:$0xff]  ;;  %v338_v7 = vld [vmem:[%s9386_s1 + $0x200] sm:$0xff] }
  0x81   : > { %4849 = vmatpush1.bf16.msra.mxu0 %v7610_v38  ;;  %v7690_v31 = vpack.c.bf16 %v338_v7, %v335_v47 }
  0x82   : > { %5009 = vmatpush3.bf16.msra.mxu1 %v7614_v53  ;;  %4851 = vmatprep.subr.bf16.mxu0 %v7616_v9  ;;  %9915 = vst [vmem:[#allocation100_spill] sm:$0xff] %v7662_v22 }
  0x83   : > { %5011 = vmatprep.subr.bf16.mxu1 %v7628_v63  ;;  %v331_v63 = vld [vmem:[%s9386_s1 + $0x1c8] sm:$0xff]  ;;  %9919 = vst [vmem:[#allocation104_spill] sm:$0xff] %v7690_v31 }
  0x84   : > { %v7686_v26 = vpack.c.bf16 %v331_v63, %v328_v5  ;;  %v341_v63 = vld [vmem:[%s9386_s1 + $0x218] sm:$0xff]  ;;  %v344_v5 = vld [vmem:[%s9386_s1 + $0x230] sm:$0xff] }
  0x85   : > { %4853 = vmatpush1.bf16.msra.mxu0 %v7640_v40  ;;  %v7711_v7 = vpack.c.bf16 %v344_v5, %v341_v63 }
  0x86   : > { %5013 = vmatpush3.bf16.msra.mxu1 %v7644_v51  ;;  %4855 = vmatprep.subr.bf16.mxu0 %v7646_v11  ;;  %9918 = vst [vmem:[#allocation103_spill] sm:$0xff] %v7686_v26  ;;  %v337_v51 = vld [vmem:[%s9386_s1 + $0x1f8] sm:$0xff] }
  0x87   : > { %5015 = vmatprep.subr.bf16.mxu1 %v6766_v19  ;;  %v334_v19 = vld [vmem:[%s9386_s1 + $0x1e0] sm:$0xff]  ;;  %9921 = vst [vmem:[#allocation106_spill] sm:$0xff] %v7711_v7 }
  0x88   : > { %v7707_v47 = vpack.c.bf16 %v337_v51, %v334_v19  ;;  %v347_v19 = vld [vmem:[%s9386_s1 + $0x248] sm:$0xff]  ;;  %v350_v51 = vld [vmem:[%s9386_s1 + $0x260] sm:$0xff] }
  0x89   : > { %988 = vmatmul.mubr.f32.vlgmr.msra.gmra.mrb[4].mxu1 %v7667_v0  ;;  %4857 = vmatpush1.bf16.msra.mxu0 %v7662_v22  ;;  %v7731_v5 = vpack.c.bf16 %v350_v51, %v347_v19 }
  0x8a   : > { %5017 = vmatpush1.bf16.msra.mxu1 %v6779_v24  ;;  %4859 = vmatprep.subr.bf16.mxu0 %v7669_v45  ;;  %9920 = vst [vmem:[#allocation105_spill] sm:$0xff] %v7707_v47  ;;  %v343_v24 = vld [vmem:[%s9386_s1 + $0x228] sm:$0xff] }
  0x8b   : > { %5019 = vmatprep.subr.bf16.mxu1 %v6804_v32  ;;  %1066 = vmatprep.mubr.f32.mxu1 %v7424_v10  ;;  %v340_v32 = vld [vmem:[%s9386_s1 + $0x210] sm:$0xff]  ;;  %9923 = vst [vmem:[#allocation108_spill] sm:$0xff] %v7731_v5 }
  0x8c   : > { %v7727_v63 = vpack.c.bf16 %v343_v24, %v340_v32  ;;  %v353_v24 = vld [vmem:[%s9386_s1 + $0x278] sm:$0xff]  ;;  %v356_v32 = vld [vmem:[%s9386_s1 + $0x290] sm:$0xff] }
  0x8d   : > { %4861 = vmatpush1.bf16.msra.mxu0 %v7686_v26  ;;  %v7751_v51 = vpack.c.bf16 %v356_v32, %v353_v24 }
  0x8e   : > { %5021 = vmatpush1.bf16.msra.mxu1 %v6818_v37  ;;  %4863 = vmatprep.subr.bf16.mxu0 %v7690_v31  ;;  %9922 = vst [vmem:[#allocation107_spill] sm:$0xff] %v7727_v63  ;;  %v349_v37 = vld [vmem:[%s9386_s1 + $0x258] sm:$0xff] }
  0x8f   : > { %5023 = vmatprep.subr.bf16.mxu1 %v6833_v42  ;;  %v346_v42 = vld [vmem:[%s9386_s1 + $0x240] sm:$0xff]  ;;  %9925 = vst [vmem:[#allocation110_spill] sm:$0xff] %v7751_v51 }
  0x90   : > { %v7747_v19 = vpack.c.bf16 %v349_v37, %v346_v42  ;;  %v359_v37 = vld [vmem:[%s9386_s1 + $0x2a8] sm:$0xff]  ;;  %v362_v42 = vld [vmem:[%s9386_s1 + $0x2c0] sm:$0xff] }
  0x91   : > { %4865 = vmatpush1.bf16.msra.mxu0 %v7707_v47  ;;  %v7771_v32 = vpack.c.bf16 %v362_v42, %v359_v37 }
  0x92   : > { %5025 = vmatpush1.bf16.msra.mxu1 %v6856_v50  ;;  %4867 = vmatprep.subr.bf16.mxu0 %v7711_v7  ;;  %9924 = vst [vmem:[#allocation109_spill] sm:$0xff] %v7747_v19  ;;  %v355_v50 = vld [vmem:[%s9386_s1 + $0x288] sm:$0xff] }
  0x93   : > { %5027 = vmatprep.subr.bf16.mxu1 %v6871_v55  ;;  %v352_v55 = vld [vmem:[%s9386_s1 + $0x270] sm:$0xff]  ;;  %9927 = vst [vmem:[#allocation112_spill] sm:$0xff] %v7771_v32 }
  0x94   : > { %v7767_v24 = vpack.c.bf16 %v355_v50, %v352_v55  ;;  %v365_v50 = vld [vmem:[%s9386_s1 + $0x2d8] sm:$0xff]  ;;  %v368_v55 = vld [vmem:[%s9386_s1 + $0x2f0] sm:$0xff] }
  0x95   : > { %4869 = vmatpush1.bf16.msra.mxu0 %v7727_v63  ;;  %v7791_v42 = vpack.c.bf16 %v368_v55, %v365_v50 }
  0x96   : > { %5029 = vmatpush1.bf16.msra.mxu1 %v6904_v2  ;;  %4871 = vmatprep.subr.bf16.mxu0 %v7731_v5  ;;  %9926 = vst [vmem:[#allocation111_spill] sm:$0xff] %v7767_v24  ;;  %v361_v2 = vld [vmem:[%s9386_s1 + $0x2b8] sm:$0xff] }
  0x97   : > { %5031 = vmatprep.subr.bf16.mxu1 %v6911_v4  ;;  %v358_v4 = vld [vmem:[%s9386_s1 + $0x2a0] sm:$0xff]  ;;  %9929 = vst [vmem:[#allocation114_spill] sm:$0xff] %v7791_v42 }
  0x98   : > { %v7787_v37 = vpack.c.bf16 %v361_v2, %v358_v4  ;;  %v3899_v2 = vld [vmem:[%s9386_s1 + $0x608] sm:$0xff]  ;;  %v3902_v4 = vld [vmem:[%s9386_s1 + $0x620] sm:$0xff] }
  0x99   : > { %4873 = vmatpush1.bf16.msra.mxu0 %v7747_v19  ;;  %v7811_v55 = vpack.c.bf16 %v3902_v4, %v3899_v2 }
  0x9a   : > { %5033 = vmatpush1.bf16.msra.mxu1 %v6941_v14  ;;  %4875 = vmatprep.subr.bf16.mxu0 %v7751_v51  ;;  %9928 = vst [vmem:[#allocation113_spill] sm:$0xff] %v7787_v37  ;;  %v367_v14 = vld [vmem:[%s9386_s1 + $0x2e8] sm:$0xff] }
  0x9b   : > { %5035 = vmatprep.subr.bf16.mxu1 %v6947_v16  ;;  %v364_v16 = vld [vmem:[%s9386_s1 + $0x2d0] sm:$0xff]  ;;  %9931 = vst [vmem:[#allocation116_spill] sm:$0xff] %v7811_v55 }
  0x9c   : > { %v7807_v50 = vpack.c.bf16 %v367_v14, %v364_v16  ;;  %v3905_v14 = vld [vmem:[%s9386_s1 + $0x638] sm:$0xff]  ;;  %v3908_v16 = vld [vmem:[%s9386_s1 + $0x650] sm:$0xff] }
  0x9d   : > { %4877 = vmatpush1.bf16.msra.mxu0 %v7767_v24  ;;  %v7831_v4 = vpack.c.bf16 %v3908_v16, %v3905_v14 }
  0x9e   : > { %5037 = vmatpush1.bf16.msra.mxu1 %v6977_v30  ;;  %4879 = vmatprep.subr.bf16.mxu0 %v7771_v32  ;;  %9930 = vst [vmem:[#allocation115_spill] sm:$0xff] %v7807_v50  ;;  %v3901_v30 = vld [vmem:[%s9386_s1 + $0x618] sm:$0xff] }
  0x9f   : > { %5039 = vmatprep.subr.bf16.mxu1 %v6986_v35  ;;  %v3898_v35 = vld [vmem:[%s9386_s1 + $0x600] sm:$0xff]  ;;  %9933 = vst [vmem:[#allocation118_spill] sm:$0xff] %v7831_v4 }
  0xa0   : > { %v7827_v2 = vpack.c.bf16 %v3901_v30, %v3898_v35  ;;  %v3911_v30 = vld [vmem:[%s9386_s1 + $0x668] sm:$0xff]  ;;  %v3914_v35 = vld [vmem:[%s9386_s1 + $0x680] sm:$0xff] }
  0xa1   : > { %4881 = vmatpush1.bf16.msra.mxu0 %v7787_v37  ;;  %v7853_v16 = vpack.c.bf16 %v3914_v35, %v3911_v30 }
  0xa2   : > { %5041 = vmatpush1.bf16.msra.mxu1 %v7016_v49  ;;  %4883 = vmatprep.subr.bf16.mxu0 %v7791_v42  ;;  %9932 = vst [vmem:[#allocation117_spill] sm:$0xff] %v7827_v2  ;;  %v3907_v49 = vld [vmem:[%s9386_s1 + $0x648] sm:$0xff] }
  0xa3   : > { %5043 = vmatprep.subr.bf16.mxu1 %v7022_v52  ;;  %v3904_v52 = vld [vmem:[%s9386_s1 + $0x630] sm:$0xff]  ;;  %9935 = vst [vmem:[#allocation120_spill] sm:$0xff] %v7853_v16 }
  0xa4   : > { %v7848_v14 = vpack.c.bf16 %v3907_v49, %v3904_v52  ;;  %v3917_v49 = vld [vmem:[%s9386_s1 + $0x698] sm:$0xff]  ;;  %v3920_v52 = vld [vmem:[%s9386_s1 + $0x6b0] sm:$0xff] }
  0xa5   : > { %4885 = vmatpush1.bf16.msra.mxu0 %v7807_v50  ;;  %v7873_v35 = vpack.c.bf16 %v3920_v52, %v3917_v49 }
  0xa6   : > { %5045 = vmatpush1.bf16.msra.mxu1 %v7052_v1  ;;  %4919 = vmatprep.subr.bf16.mxu0 %v7811_v55  ;;  %9934 = vst [vmem:[#allocation119_spill] sm:$0xff] %v7848_v14 }
  0xa7   : > { %5047 = vmatprep.subr.bf16.mxu1 %v7058_v6  ;;  %v3910_v6 = vld [vmem:[%s9386_s1 + $0x660] sm:$0xff]  ;;  %9937 = vst [vmem:[#allocation122_spill] sm:$0xff] %v7873_v35 }
  0xa8   : > { %676 = vmatmul.mubr.f32.vlgmr.msra.gmra.mrb[0].mxu0 %v7385_v18  ;;  %v3913_v18 = vld [vmem:[%s9386_s1 + $0x678] sm:$0xff] }
  0xa9   : > { %4921 = vmatpush1.bf16.msra.mxu0 %v7827_v2  ;;  %916 = vmatprep.mubr.f32.mxu0 %v7424_v10  ;;  %v7869_v30 = vpack.c.bf16 %v3913_v18, %v3910_v6  ;;  %v3923_v6 = vld [vmem:[%s9386_s1 + $0x6c8] sm:$0xff]  ;;  %v3926_v18 = vld [vmem:[%s9386_s1 + $0x6e0] sm:$0xff] }
  0xaa   : > { %5049 = vmatpush1.bf16.msra.mxu1 %v7091_v25  ;;  %4923 = vmatprep.subr.bf16.mxu0 %v7831_v4  ;;  %v3919_v25 = vld [vmem:[%s9386_s1 + $0x6a8] sm:$0xff]  ;;  %v7893_v52 = vpack.c.bf16 %v3926_v18, %v3923_v6 }
  0xab   : > { %5051 = vmatprep.subr.bf16.mxu1 %v7097_v27  ;;  %9936 = vst [vmem:[#allocation121_spill] sm:$0xff] %v7869_v30  ;;  %v3916_v27 = vld [vmem:[%s9386_s1 + $0x690] sm:$0xff] }
  0xac   : > { %v7889_v49 = vpack.c.bf16 %v3919_v25, %v3916_v27  ;;  %9939 = vst [vmem:[#allocation124_spill] sm:$0xff] %v7893_v52  ;;  %v3929_v25 = vld [vmem:[%s9386_s1 + $0x6f8] sm:$0xff]  ;;  %v3932_v27 = vld [vmem:[%s9386_s1 + $0x710] sm:$0xff] }
  0xad   : > { %4925 = vmatpush1.bf16.msra.mxu0 %v7848_v14  ;;  %v7913_v18 = vpack.c.bf16 %v3932_v27, %v3929_v25 }
  0xae   : > { %5053 = vmatpush1.bf16.msra.mxu1 %v7128_v48  ;;  %4927 = vmatprep.subr.bf16.mxu0 %v7853_v16  ;;  %9938 = vst [vmem:[#allocation123_spill] sm:$0xff] %v7889_v49  ;;  %v3925_v48 = vld [vmem:[%s9386_s1 + $0x6d8] sm:$0xff] }
  0xaf   : > { %5055 = vmatprep.subr.bf16.mxu1 %v7134_v56  ;;  %v3922_v56 = vld [vmem:[%s9386_s1 + $0x6c0] sm:$0xff]  ;;  %9941 = vst [vmem:[#allocation126_spill] sm:$0xff] %v7913_v18 }
  0xb0   : > { %v7909_v6 = vpack.c.bf16 %v3925_v48, %v3922_v56  ;;  %v3935_v48 = vld [vmem:[%s9386_s1 + $0x728] sm:$0xff]  ;;  %v3938_v56 = vld [vmem:[%s9386_s1 + $0x740] sm:$0xff] }
  0xb1   : > { %4929 = vmatpush1.bf16.msra.mxu0 %v7869_v30  ;;  %v7933_v27 = vpack.c.bf16 %v3938_v56, %v3935_v48 }
  0xb2   : > { %5057 = vmatpush1.bf16.msra.mxu1 %v7164_v12  ;;  %4931 = vmatprep.subr.bf16.mxu0 %v7873_v35  ;;  %9940 = vst [vmem:[#allocation125_spill] sm:$0xff] %v7909_v6  ;;  %v3931_v12 = vld [vmem:[%s9386_s1 + $0x708] sm:$0xff] }
  0xb3   : > { %5059 = vmatprep.subr.bf16.mxu1 %v7170_v17  ;;  %v3928_v17 = vld [vmem:[%s9386_s1 + $0x6f0] sm:$0xff]  ;;  %9943 = vst [vmem:[#allocation128_spill] sm:$0xff] %v7933_v27 }
  0xb4   : > { %v7929_v25 = vpack.c.bf16 %v3931_v12, %v3928_v17  ;;  %v3941_v12 = vld [vmem:[%s9386_s1 + $0x758] sm:$0xff]  ;;  %v3944_v17 = vld [vmem:[%s9386_s1 + $0x770] sm:$0xff] }
  0xb5   : > { %4933 = vmatpush1.bf16.msra.mxu0 %v7889_v49  ;;  %v7953_v56 = vpack.c.bf16 %v3944_v17, %v3941_v12 }
  0xb6   : > { %5061 = vmatpush1.bf16.msra.mxu1 %v7203_v57  ;;  %4935 = vmatprep.subr.bf16.mxu0 %v7893_v52  ;;  %9942 = vst [vmem:[#allocation127_spill] sm:$0xff] %v7929_v25  ;;  %v3937_v57 = vld [vmem:[%s9386_s1 + $0x738] sm:$0xff] }
  0xb7   : > { %5063 = vmatprep.subr.bf16.mxu1 %v7210_v61  ;;  %v3934_v61 = vld [vmem:[%s9386_s1 + $0x720] sm:$0xff]  ;;  %9945 = vst [vmem:[#allocation130_spill] sm:$0xff] %v7953_v56 }
  0xb8   : > { %v7949_v48 = vpack.c.bf16 %v3937_v57, %v3934_v61  ;;  %v3947_v57 = vld [vmem:[%s9386_s1 + $0x788] sm:$0xff]  ;;  %v3950_v61 = vld [vmem:[%s9386_s1 + $0x7a0] sm:$0xff] }
  0xb9   : > { %4937 = vmatpush1.bf16.msra.mxu0 %v7909_v6  ;;  %v7973_v17 = vpack.c.bf16 %v3950_v61, %v3947_v57 }
  0xba   : > { %5065 = vmatpush1.bf16.msra.mxu1 %v7240_v39  ;;  %4939 = vmatprep.subr.bf16.mxu0 %v7913_v18  ;;  %9944 = vst [vmem:[#allocation129_spill] sm:$0xff] %v7949_v48  ;;  %v3943_v39 = vld [vmem:[%s9386_s1 + $0x768] sm:$0xff] }
  0xbb   : > { %5067 = vmatprep.subr.bf16.mxu1 %v7246_v44  ;;  %v3940_v44 = vld [vmem:[%s9386_s1 + $0x750] sm:$0xff]  ;;  %9947 = vst [vmem:[#allocation132_spill] sm:$0xff] %v7973_v17 }
  0xbc   : > { %v7969_v12 = vpack.c.bf16 %v3943_v39, %v3940_v44  ;;  %v3953_v39 = vld [vmem:[%s9386_s1 + $0x7b8] sm:$0xff]  ;;  %v3956_v44 = vld [vmem:[%s9386_s1 + $0x7d0] sm:$0xff] }
  0xbd   : > { %4941 = vmatpush1.bf16.msra.mxu0 %v7929_v25  ;;  %v7993_v61 = vpack.c.bf16 %v3956_v44, %v3953_v39 }
  0xbe   : > { %5069 = vmatpush1.bf16.msra.mxu1 %v7276_v36  ;;  %4943 = vmatprep.subr.bf16.mxu0 %v7933_v27  ;;  %9946 = vst [vmem:[#allocation131_spill] sm:$0xff] %v7969_v12  ;;  %v3949_v36 = vld [vmem:[%s9386_s1 + $0x798] sm:$0xff] }
  0xbf   : > { %5071 = vmatprep.subr.bf16.mxu1 %v7282_v60  ;;  %v3946_v60 = vld [vmem:[%s9386_s1 + $0x780] sm:$0xff]  ;;  %9949 = vst [vmem:[#allocation134_spill] sm:$0xff] %v7993_v61 }
  0xc0   : > { %v7989_v57 = vpack.c.bf16 %v3949_v36, %v3946_v60  ;;  %v3959_v60 = vld [vmem:[%s9386_s1 + $0x7e8] sm:$0xff]  ;;  %v3962_v36 = vld [vmem:[%s9386_s1 + $0x800] sm:$0xff] }
  0xc1   : > { %4945 = vmatpush1.bf16.msra.mxu0 %v7949_v48  ;;  %v8014_v44 = vpack.c.bf16 %v3962_v36, %v3959_v60 }
  0xc2   : > { %5073 = vmatpush1.bf16.msra.mxu1 %v7312_v29  ;;  %4947 = vmatprep.subr.bf16.mxu0 %v7953_v56  ;;  %9948 = vst [vmem:[#allocation133_spill] sm:$0xff] %v7989_v57  ;;  %v3955_v29 = vld [vmem:[%s9386_s1 + $0x7c8] sm:$0xff] }
  0xc3   : > { %5075 = vmatprep.subr.bf16.mxu1 %v7318_v43  ;;  %v3952_v43 = vld [vmem:[%s9386_s1 + $0x7b0] sm:$0xff]  ;;  %9951 = vst [vmem:[#allocation136_spill] sm:$0xff] %v8014_v44 }
  0xc4   : > { %v8010_v39 = vpack.c.bf16 %v3955_v29, %v3952_v43  ;;  %v3965_v43 = vld [vmem:[%s9386_s1 + $0x818] sm:$0xff]  ;;  %v3968_v29 = vld [vmem:[%s9386_s1 + $0x830] sm:$0xff] }
  0xc5   : > { %4949 = vmatpush1.bf16.msra.mxu0 %v7969_v12  ;;  %v8035_v36 = vpack.c.bf16 %v3968_v29, %v3965_v43  ;;  %v3970_v29 = vld [vmem:[%s9386_s1 + $0x840] sm:$0xff] }
  0xc6   : > { %5077 = vmatpush1.bf16.msra.mxu1 %v7348_v20  ;;  %4951 = vmatprep.subr.bf16.mxu0 %v7973_v17  ;;  %9950 = vst [vmem:[#allocation135_spill] sm:$0xff] %v8010_v39  ;;  %v3961_v20 = vld [vmem:[%s9386_s1 + $0x7f8] sm:$0xff] }
  0xc7   : > { %5079 = vmatprep.subr.bf16.mxu1 %v6777_v23  ;;  %v3958_v23 = vld [vmem:[%s9386_s1 + $0x7e0] sm:$0xff]  ;;  %9953 = vst [vmem:[#allocation138_spill] sm:$0xff] %v8035_v36 }
  0xc8   : > { %v8031_v60 = vpack.c.bf16 %v3961_v20, %v3958_v23  ;;  %v3971_v23 = vld [vmem:[%s9386_s1 + $0x848] sm:$0xff]  ;;  %v3974_v20 = vld [vmem:[%s9386_s1 + $0x860] sm:$0xff] }
  0xc9   : > { %4953 = vmatpush1.bf16.msra.mxu0 %v7989_v57  ;;  %1067 = vmatmul.mubr.f32.vlgmr.msra.gmra.mrb[6].mxu1 %v7667_v0  ;;  %v8055_v43 = vpack.c.bf16 %v3974_v20, %v3971_v23 }
  0xca   : > { %5081 = vmatpush3.bf16.msra.mxu1 %v6791_v28  ;;  %4955 = vmatprep.subr.bf16.mxu0 %v7993_v61  ;;  %9952 = vst [vmem:[#allocation137_spill] sm:$0xff] %v8031_v60  ;;  %v3967_v28 = vld [vmem:[%s9386_s1 + $0x828] sm:$0xff] }
  0xcb   : > { %5083 = vmatprep.subr.bf16.mxu1 %v6806_v33  ;;  %1137 = vmatprep.mubr.f32.mxu1 %v7424_v10  ;;  %v3964_v33 = vld [vmem:[%s9386_s1 + $0x810] sm:$0xff]  ;;  %9955 = vst [vmem:[#allocation140_spill] sm:$0xff] %v8055_v43 }
  0xcc   : > { %v8051_v10 = vpack.c.bf16 %v3967_v28, %v3964_v33  ;;  %v3977_v28 = vld [vmem:[%s9386_s1 + $0x878] sm:$0xff]  ;;  %v3980_v33 = vld [vmem:[%s9386_s1 + $0x890] sm:$0xff] }
  0xcd   : > { %4957 = vmatpush1.bf16.msra.mxu0 %v8010_v39  ;;  %v8075_v20 = vpack.c.bf16 %v3980_v33, %v3977_v28 }
  0xce   : > { %5085 = vmatpush3.bf16.msra.mxu1 %v6831_v41  ;;  %4959 = vmatprep.subr.bf16.mxu0 %v8014_v44  ;;  %9954 = vst [vmem:[#allocation139_spill] sm:$0xff] %v8051_v10  ;;  %v9962_v41 = vld [vmem:[#allocation28_spill] sm:$0xff] }
  0xcf   : > { %5087 = vmatprep.subr.bf16.mxu1 %v6844_v46  ;;  %v3973_v46 = vld [vmem:[%s9386_s1 + $0x858] sm:$0xff]  ;;  %9957 = vst [vmem:[#allocation142_spill] sm:$0xff] %v8075_v20 }
  0xd0   : > { %v8071_v23 = vpack.c.bf16 %v3973_v46, %v3970_v29  ;;  %v3983_v46 = vld [vmem:[%s9386_s1 + $0x8a8] sm:$0xff]  ;;  %v3986_v29 = vld [vmem:[%s9386_s1 + $0x8c0] sm:$0xff] }
  0xd1   : > { %4961 = vmatpush1.bf16.msra.mxu0 %v8031_v60  ;;  %v8095_v33 = vpack.c.bf16 %v3986_v29, %v3983_v46 }
  0xd2   : > { %5089 = vmatpush3.bf16.msra.mxu1 %v6869_v54  ;;  %4963 = vmatprep.subr.bf16.mxu0 %v8035_v36  ;;  %9956 = vst [vmem:[#allocation141_spill] sm:$0xff] %v8071_v23  ;;  %v3979_v54 = vld [vmem:[%s9386_s1 + $0x888] sm:$0xff] }
  0xd3   : > { %5091 = vmatprep.subr.bf16.mxu1 %v6883_v59  ;;  %v3976_v59 = vld [vmem:[%s9386_s1 + $0x870] sm:$0xff]  ;;  %9959 = vst [vmem:[#allocation144_spill] sm:$0xff] %v8095_v33 }
  0xd4   : > { %v8091_v28 = vpack.c.bf16 %v3979_v54, %v3976_v59  ;;  %v3989_v54 = vld [vmem:[%s9386_s1 + $0x8d8] sm:$0xff]  ;;  %v3992_v59 = vld [vmem:[%s9386_s1 + $0x8f0] sm:$0xff] }
  0xd5   : > { %4965 = vmatpush1.bf16.msra.mxu0 %v8051_v10  ;;  %v8115_v29 = vpack.c.bf16 %v3992_v59, %v3989_v54  ;;  %v9965_v54 = vld [vmem:[#allocation32_spill] sm:$0xff]  ;;  %v9966_v59 = vld [vmem:[#allocation34_spill] sm:$0xff] }
  0xd6   : > { %5093 = vmatpush3.bf16.msra.mxu1 %v6909_v3  ;;  %4967 = vmatprep.subr.bf16.mxu0 %v8055_v43  ;;  %9958 = vst [vmem:[#allocation143_spill] sm:$0xff] %v8091_v28  ;;  %v3985_v3 = vld [vmem:[%s9386_s1 + $0x8b8] sm:$0xff] }
  0xd7   : > { %5095 = vmatprep.subr.bf16.mxu1 %v6923_v8  ;;  %v3982_v8 = vld [vmem:[%s9386_s1 + $0x8a0] sm:$0xff]  ;;  %9961 = vst [vmem:[#allocation146_spill] sm:$0xff] %v8115_v29 }
  0xd8   : > { %v8111_v46 = vpack.c.bf16 %v3985_v3, %v3982_v8  ;;  %v9964_v8 = vld [vmem:[#allocation30_spill] sm:$0xff] }
  0xd9   : > { %4969 = vmatpush1.bf16.msra.mxu0 %v8071_v23 }
  0xda   : > { %5097 = vmatpush3.bf16.msra.mxu1 %v6945_v15  ;;  %4971 = vmatprep.subr.bf16.mxu0 %v8075_v20  ;;  %9960 = vst [vmem:[#allocation145_spill] sm:$0xff] %v8111_v46  ;;  %v3991_v15 = vld [vmem:[%s9386_s1 + $0x8e8] sm:$0xff] }
  0xdb   : > { %5099 = vmatprep.subr.bf16.mxu1 %v6959_v21  ;;  %v3988_v21 = vld [vmem:[%s9386_s1 + $0x8d0] sm:$0xff] }
  0xdc   : > { %v8125_v3 = vpack.c.bf16 %v3991_v15, %v3988_v21  ;;  %v9969_v15 = vld [vmem:[#allocation38_spill] sm:$0xff]  ;;  %v9970_v21 = vld [vmem:[#allocation40_spill] sm:$0xff] }
  0xdd   : > { %4973 = vmatpush1.bf16.msra.mxu0 %v8091_v28 }
  0xde   : > { %5101 = vmatpush3.bf16.msra.mxu1 %v6984_v34  ;;  %4975 = vmatprep.subr.bf16.mxu0 %v8095_v33  ;;  %9963 = vst [vmem:[#allocation147_spill] sm:$0xff] %v8125_v3  ;;  %v9967_v34 = vld [vmem:[#allocation36_spill] sm:$0xff]  ;;  %v9968_v33 = vld [vmem:[#allocation67_spill] sm:$0xff] }
  0xdf   : > { %5103 = vmatprep.subr.bf16.mxu1 %v9962_v41  ;;  %v9973_v41 = vld [vmem:[#allocation73_spill] sm:$0xff] }
  0xe1   : > { %4977 = vmatpush1.bf16.msra.mxu0 %v8111_v46 }
  0xe2   : > { %5105 = vmatpush3.bf16.msra.mxu1 %v9964_v8  ;;  %4979 = vmatprep.subr.bf16.mxu0 %v8115_v29  ;;  %v9971_v8 = vld [vmem:[#allocation71_spill] sm:$0xff] }
  0xe3   : > { %5107 = vmatprep.subr.bf16.mxu1 %v9965_v54  ;;  %v6642_v54 = vld [vmem:[%s6994_s20 + $0x18] sm:$0xff] }
  0xe5   : > { %4981 = vmatpush1.bf16.msra.mxu0 %v8125_v3  ;;  %v9981_v3 = vld [vmem:[#allocation81_spill] sm:$0xff] }
  0xe6   : > { %5109 = vmatpush3.bf16.msra.mxu1 %v9966_v59  ;;  %5175 = vmatprep.subr.bf16.mxu0 %v9967_v34  ;;  %v9972_v59 = vld [vmem:[#allocation42_spill] sm:$0xff]  ;;  %v9975_v34 = vld [vmem:[#allocation75_spill] sm:$0xff] }
  0xe7   : > { %5111 = vmatprep.subr.bf16.mxu1 %v9968_v33  ;;  %v9974_v33 = vld [vmem:[#allocation44_spill] sm:$0xff] }
  0xe8   : > { %917 = vmatmul.mubr.f32.vlgmr.msra.gmra.mrb[0].mxu0 %v7667_v0 }
  0xe9   : > { %1138 = vmatmul.mubr.f32.vlgmr.msra.gmra.mrb[8].mxu1 %v7667_v0  ;;  %5177 = vmatpush3.bf16.msra.mxu0 %v9969_v15  ;;  %v9976_v0 = vld [vmem:[#allocation46_spill] sm:$0xff]  ;;  %v9977_v15 = vld [vmem:[#allocation77_spill] sm:$0xff] }
  0xea   : > { %5113 = vmatpush1.bf16.msra.mxu1 %v7387_v13  ;;  %5179 = vmatprep.subr.bf16.mxu0 %v9970_v21  ;;  %v9978_v13 = vld [vmem:[#allocation48_spill] sm:$0xff]  ;;  %v9979_v21 = vld [vmem:[#allocation79_spill] sm:$0xff] }
  0xeb   : > { %5115 = vmatprep.subr.bf16.mxu1 %v9971_v8  ;;  %1278 = vmatprep.mubr.f32.mxu0 %v6642_v54  ;;  %v9980_v8 = vld [vmem:[#allocation50_spill] sm:$0xff] }
  0xec   : > { %1207 = vmatprep.mubr.f32.mxu1 %v6642_v54  ;;  %v9982_v54 = vld [vmem:[#allocation52_spill] sm:$0xff] }
  0xed   : > { %5181 = vmatpush3.bf16.msra.mxu0 %v9972_v59  ;;  %v9983_v59 = vld [vmem:[#allocation83_spill] sm:$0xff] }
  0xee   : > { %5117 = vmatpush1.bf16.msra.mxu1 %v9973_v41  ;;  %5183 = vmatprep.subr.bf16.mxu0 %v9974_v33  ;;  %v9984_v41 = vld [vmem:[#allocation54_spill] sm:$0xff] }
  0xef   : > { %5119 = vmatprep.subr.bf16.mxu1 %v9975_v34  ;;  %v9985_v34 = vld [vmem:[#allocation85_spill] sm:$0xff] }
  0xf1   : > { %5185 = vmatpush3.bf16.msra.mxu0 %v9976_v0  ;;  %v9986_v0 = vld [vmem:[#allocation56_spill] sm:$0xff] }
  0xf2   : > { %5121 = vmatpush1.bf16.msra.mxu1 %v9977_v15  ;;  %5187 = vmatprep.subr.bf16.mxu0 %v9978_v13  ;;  %v9987_v15 = vld [vmem:[#allocation87_spill] sm:$0xff]  ;;  %v9988_v13 = vld [vmem:[#allocation58_spill] sm:$0xff] }
  0xf3   : > { %5123 = vmatprep.subr.bf16.mxu1 %v9979_v21  ;;  %v9989_v21 = vld [vmem:[#allocation60_spill] sm:$0xff] }
  0xf5   : > { %5189 = vmatpush3.bf16.msra.mxu0 %v9980_v8 }
  0xf6   : > { %5125 = vmatpush1.bf16.msra.mxu1 %v9981_v3  ;;  %5191 = vmatprep.subr.bf16.mxu0 %v9982_v54  ;;  %v9990_v3 = vld [vmem:[#allocation62_spill] sm:$0xff] }
  0xf7   : > { %5127 = vmatprep.subr.bf16.mxu1 %v9983_v59  ;;  %v9991_v59 = vld [vmem:[#allocation64_spill] sm:$0xff] }
  0xf9   : > { %5193 = vmatpush3.bf16.msra.mxu0 %v9984_v41 }
  0xfa   : > { %5129 = vmatpush1.bf16.msra.mxu1 %v9985_v34  ;;  %5195 = vmatprep.subr.bf16.mxu0 %v9986_v0  ;;  %v9992_v34 = vld [vmem:[#allocation66_spill] sm:$0xff] }
  0xfb   : > { %5131 = vmatprep.subr.bf16.mxu1 %v9987_v15  ;;  %v9993_v15 = vld [vmem:[#allocation68_spill] sm:$0xff] }
  0xfd   : > { %5197 = vmatpush3.bf16.msra.mxu0 %v9988_v13  ;;  %v8169_v13 = vld [vmem:[%s6994_s20 + $0x38] sm:$0xff] }
  0xfe   : > { %5133 = vmatpush1.bf16.msra.mxu1 %v7574_v62  ;;  %5199 = vmatprep.subr.bf16.mxu0 %v9989_v21  ;;  %9994 = vst [vmem:[#allocation148_spill] sm:$0xff] %v8169_v13  ;;  %v6643_v62 = vld [vmem:[%s6994_s20 + $0x10] sm:$0xff] }
  0xff   : > { %5135 = vmatprep.subr.bf16.mxu1 %v7580_v58  ;;  %v9995_v58 = vld [vmem:[#allocation70_spill] sm:$0xff] }
 0x101   : > { %5201 = vmatpush3.bf16.msra.mxu0 %v9990_v3 }
 0x102   : > { %5137 = vmatpush1.bf16.msra.mxu1 %v7610_v38  ;;  %5203 = vmatprep.subr.bf16.mxu0 %v9991_v59  ;;  %v9996_v38 = vld [vmem:[#allocation72_spill] sm:$0xff] }
 0x103   : > { %5139 = vmatprep.subr.bf16.mxu1 %v7616_v9  ;;  %v9997_v9 = vld [vmem:[#allocation74_spill] sm:$0xff] }
 0x105   : > { %5205 = vmatpush3.bf16.msra.mxu0 %v9992_v34 }
 0x106   : > { %5141 = vmatpush1.bf16.msra.mxu1 %v7640_v40  ;;  %5271 = vmatprep.subr.bf16.mxu0 %v9993_v15  ;;  %v9998_v40 = vld [vmem:[#allocation76_spill] sm:$0xff] }
 0x107   : > { %5143 = vmatprep.subr.bf16.mxu1 %v7646_v11  ;;  %v9999_v11 = vld [vmem:[#allocation78_spill] sm:$0xff] }
 0x108   : > { %1279 = vmatmul.mubr.f32.vlgmr.msra.gmra.mrb[2].mxu0 %v6643_v62 }
 0x109   : > { %5273 = vmatpush3.bf16.msra.mxu0 %v9995_v58  ;;  %1422 = vmatprep.mubr.f32.mxu0 %v8169_v13  ;;  %v10000_v58 = vld [vmem:[#allocation80_spill] sm:$0xff] }
 0x10a   : > { %5145 = vmatpush1.bf16.msra.mxu1 %v7662_v22  ;;  %5275 = vmatprep.subr.bf16.mxu0 %v9996_v38  ;;  %v10001_v22 = vld [vmem:[#allocation82_spill] sm:$0xff] }
 0x10b   : > { %5147 = vmatprep.subr.bf16.mxu1 %v7669_v45  ;;  %v10002_v45 = vld [vmem:[#allocation84_spill] sm:$0xff] }
 0x10d   : > { %5277 = vmatpush3.bf16.msra.mxu0 %v9997_v9 }
 0x10e   : > { %5149 = vmatpush1.bf16.msra.mxu1 %v7686_v26  ;;  %5279 = vmatprep.subr.bf16.mxu0 %v9998_v40  ;;  %v10003_v26 = vld [vmem:[#allocation86_spill] sm:$0xff] }
 0x10f   : > { %5151 = vmatprep.subr.bf16.mxu1 %v7690_v31  ;;  %v10004_v31 = vld [vmem:[#allocation88_spill] sm:$0xff] }
 0x111   : > { %5281 = vmatpush3.bf16.msra.mxu0 %v9999_v11 }
 0x112   : > { %5153 = vmatpush1.bf16.msra.mxu1 %v7707_v47  ;;  %5283 = vmatprep.subr.bf16.mxu0 %v10000_v58 }
 0x113   : > { %5155 = vmatprep.subr.bf16.mxu1 %v7711_v7  ;;  %v10005_v7 = vld [vmem:[#allocation90_spill] sm:$0xff] }
 0x115   : > { %5285 = vmatpush3.bf16.msra.mxu0 %v10001_v22 }
 0x116   : > { %5157 = vmatpush1.bf16.msra.mxu1 %v7727_v63  ;;  %5287 = vmatprep.subr.bf16.mxu0 %v10002_v45  ;;  %v10006_v63 = vld [vmem:[#allocation92_spill] sm:$0xff] }
 0x117   : > { %5159 = vmatprep.subr.bf16.mxu1 %v7731_v5  ;;  %v8204_v5 = vld [vmem:[%s6994_s20 + $0x30] sm:$0xff] }
 0x118   : > { %10009 = vst [vmem:[#allocation149_spill] sm:$0xff] %v8204_v5 }
 0x119   : > { %5289 = vmatpush3.bf16.msra.mxu0 %v10003_v26 }
 0x11a   : > { %5161 = vmatpush1.bf16.msra.mxu1 %v7747_v19  ;;  %5291 = vmatprep.subr.bf16.mxu0 %v10004_v31  ;;  %v10007_v19 = vld [vmem:[#allocation96_spill] sm:$0xff] }
 0x11b   : > { %5163 = vmatprep.subr.bf16.mxu1 %v7751_v51  ;;  %v10008_v51 = vld [vmem:[#allocation98_spill] sm:$0xff] }
 0x11c   : > { %v4102_v47 = vpop.f32.mrb[0].mxu1 }
 0x11d   : > { %v4103_v58 = vpop.f32.mrb[1].mxu1  ;;  %5293 = vmatpush3.bf16.msra.mxu0 %v10005_v7 }
 0x11e   : > { %v4104_v22 = vadd.f32 %v4103_v58, %v4102_v47  ;;  %5165 = vmatpush1.bf16.msra.mxu1 %v7767_v24  ;;  %5295 = vmatprep.subr.bf16.mxu0 %v10006_v63  ;;  %v10010_v58 = vld [vmem:[#allocation3_spill] sm:$0xff]  ;;  %v10011_v47 = vld [vmem:[#allocation5_spill] sm:$0xff] }
 0x11f   : > { %5167 = vmatprep.subr.bf16.mxu1 %v7771_v32  ;;  %v10018_v32 = vld [vmem:[#allocation19_spill] sm:$0xff] }
 0x121   : > { %5297 = vmatpush3.bf16.msra.mxu0 %v7614_v53 }
 0x122   : > { %5169 = vmatpush1.bf16.msra.mxu1 %v7787_v37  ;;  %5299 = vmatprep.subr.bf16.mxu0 %v10007_v19  ;;  %v10012_v37 = vld [vmem:[#allocation7_spill] sm:$0xff] }
 0x123   : > { %5171 = vmatprep.subr.bf16.mxu1 %v7791_v42  ;;  %v10017_v42 = vld [vmem:[#allocation17_spill] sm:$0xff] }
 0x125   : > { %5301 = vmatpush3.bf16.msra.mxu0 %v10008_v51 }
 0x126   : > { %5173 = vmatpush1.bf16.msra.mxu1 %v7807_v50  ;;  %5303 = vmatprep.subr.bf16.mxu0 %v10010_v58  ;;  %v10013_v50 = vld [vmem:[#allocation9_spill] sm:$0xff] }
 0x127   : > { %5207 = vmatprep.subr.bf16.mxu1 %v7811_v55  ;;  %v10014_v55 = vld [vmem:[#allocation11_spill] sm:$0xff] }
 0x128   : > { %1423 = vmatmul.mubr.f32.vlgmr.msra.gmra.mrb[4].mxu0 %v8204_v5 }
 0x129   : > { %1208 = vmatmul.mubr.f32.vlgmr.msra.gmra.mrb[6].mxu1 %v6643_v62  ;;  %5305 = vmatpush1.bf16.msra.mxu0 %v10011_v47  ;;  %v10015_v62 = vld [vmem:[#allocation13_spill] sm:$0xff] }
 0x12a   : > { %5209 = vmatpush1.bf16.msra.mxu1 %v7827_v2  ;;  %5307 = vmatprep.subr.bf16.mxu0 %v10012_v37  ;;  %v10016_v2 = vld [vmem:[#allocation15_spill] sm:$0xff] }
 0x12b   : > { %5211 = vmatprep.subr.bf16.mxu1 %v7831_v4  ;;  %1351 = vmatprep.mubr.f32.mxu1 %v8169_v13  ;;  %v248_v4 = vlaneseq }
 0x12c   : > { %1561 = vmatprep.mubr.f32.mxu0 %v8169_v13 }
 0x12d   : > { %5309 = vmatpush1.bf16.msra.mxu0 %v10013_v50 }
 0x12e   : > { %5213 = vmatpush1.bf16.msra.mxu1 %v7848_v14  ;;  %5311 = vmatprep.subr.bf16.mxu0 %v10014_v55  ;;  %v8228_v14 = vshrl.u32 %v248_v4, 7 }
 0x12f   : > { %5215 = vmatprep.subr.bf16.mxu1 %v7853_v16  ;;  %v10020_v16 = vld [vmem:[#allocation21_spill] sm:$0xff] }
 0x130   : > { %10019 = vst [vmem:[#allocation150_spill] sm:$0xff] %v8228_v14  ;;  %v254_v24 = vsub.s32 1, %v8228_v14 }
 0x131   : > { %5313 = vmatpush1.bf16.msra.mxu0 %v10015_v62 }
 0x132   : > { %5217 = vmatpush1.bf16.msra.mxu1 %v7869_v30  ;;  %5315 = vmatprep.subr.bf16.mxu0 %v10016_v2  ;;  %v10021_v30 = vld [vmem:[#allocation23_spill] sm:$0xff] }
 0x133   : > { %5219 = vmatprep.subr.bf16.mxu1 %v7873_v35 }
 0x135   : > { %5317 = vmatpush1.bf16.msra.mxu0 %v10017_v42 }
 0x136   : > { %5221 = vmatpush1.bf16.msra.mxu1 %v7889_v49  ;;  %5319 = vmatprep.subr.bf16.mxu0 %v10018_v32  ;;  %v8238_v49 = vld [vmem:[%s9388_s3] ss:$8 sm:$0x7] }
 0x137   : > { %5223 = vmatprep.subr.bf16.mxu1 %v7893_v52  ;;  %10022 = vst [vmem:[#allocation151_spill] sm:$0xff] %v8238_v49  ;;  %v8241_v52 = vrot.slane %v8238_v49, %v254_v24  ;;  %v10024_v32 = vld [vmem:[#allocation25_spill] sm:$0xff]  ;;  %v10028_v24 = vld [vmem:[#allocation35_spill] sm:$0xff] }
 0x138   : > { %v10034_v49 = vld [vmem:[#allocation47_spill] sm:$0xff] }
 0x139   : > { %5321 = vmatpush1.bf16.msra.mxu0 %v10020_v16  ;;  %10023 = vst [vmem:[#allocation152_spill] sm:$0xff] %v8241_v52  ;;  %v10033_v52 = vld [vmem:[#allocation45_spill] sm:$0xff] }
 0x13a   : > { %5225 = vmatpush1.bf16.msra.mxu1 %v7909_v6  ;;  %5323 = vmatprep.subr.bf16.mxu0 %v10021_v30  ;;  %v10025_v6 = vld [vmem:[#allocation27_spill] sm:$0xff] }
 0x13b   : > { %5227 = vmatprep.subr.bf16.mxu1 %v7913_v18  ;;  %v10026_v18 = vld [vmem:[#allocation29_spill] sm:$0xff]  ;;  %v10027_v30 = vld [vmem:[#allocation31_spill] sm:$0xff] }
 0x13c   : > { %v4137_v35 = vpop.f32.mrb[2].mxu1 }
 0x13d   : > { %v4138_v4 = vpop.f32.mrb[3].mxu1  ;;  %5325 = vmatpush1.bf16.msra.mxu0 %v10024_v32 }
 0x13e   : > { %v4139_v16 = vadd.f32 %v4138_v4, %v4137_v35  ;;  %5229 = vmatpush1.bf16.msra.mxu1 %v7929_v25  ;;  %5327 = vmatprep.subr.bf16.mxu0 %v10025_v6  ;;  %v10029_v35 = vld [vmem:[#allocation37_spill] sm:$0xff]  ;;  %v10032_v4 = vld [vmem:[#allocation43_spill] sm:$0xff] }
 0x13f   : > { %5231 = vmatprep.subr.bf16.mxu1 %v7933_v27 }
 0x140   : > { %v749_v14 = vadd.f32 %v4139_v16, %v4104_v22  ;;  %v10030_v22 = vld [vmem:[#allocation39_spill] sm:$0xff]  ;;  %v10031_v16 = vld [vmem:[#allocation41_spill] sm:$0xff] }
 0x141   : > { %5329 = vmatpush1.bf16.msra.mxu0 %v10026_v18 }
 0x142   : > { %5233 = vmatpush1.bf16.msra.mxu1 %v7949_v48  ;;  %5331 = vmatprep.subr.bf16.mxu0 %v10027_v30  ;;  %v10043_v48 = vld [vmem:[#allocation61_spill] sm:$0xff] }
 0x143   : > { %5235 = vmatprep.subr.bf16.mxu1 %v7953_v56  ;;  %v10041_v56 = vld [vmem:[#allocation144_spill] sm:$0xff] }
 0x145   : > { %5333 = vmatpush1.bf16.msra.mxu0 %v7052_v1 }
 0x146   : > { %5237 = vmatpush1.bf16.msra.mxu1 %v7969_v12  ;;  %5335 = vmatprep.subr.bf16.mxu0 %v10028_v24  ;;  %v10039_v12 = vld [vmem:[#allocation57_spill] sm:$0xff] }
 0x147   : > { %5239 = vmatprep.subr.bf16.mxu1 %v7973_v17 }
 0x149   : > { %5337 = vmatpush1.bf16.msra.mxu0 %v10029_v35 }
 0x14a   : > { %5241 = vmatpush1.bf16.msra.mxu1 %v7989_v57  ;;  %5339 = vmatprep.subr.bf16.mxu0 %v10030_v22  ;;  %v10035_v57 = vld [vmem:[#allocation49_spill] sm:$0xff] }
 0x14b   : > { %5243 = vmatprep.subr.bf16.mxu1 %v7993_v61  ;;  %v10036_v61 = vld [vmem:[#allocation51_spill] sm:$0xff] }
 0x14d   : > { %5341 = vmatpush1.bf16.msra.mxu0 %v10031_v16 }
 0x14e   : > { %5245 = vmatpush1.bf16.msra.mxu1 %v8010_v39  ;;  %5343 = vmatprep.subr.bf16.mxu0 %v10032_v4  ;;  %v10037_v39 = vld [vmem:[#allocation53_spill] sm:$0xff] }
 0x14f   : > { %5247 = vmatprep.subr.bf16.mxu1 %v8014_v44  ;;  %v10038_v44 = vld [vmem:[#allocation55_spill] sm:$0xff] }
 0x151   : > { %5345 = vmatpush1.bf16.msra.mxu0 %v10033_v52 }
 0x152   : > { %5249 = vmatpush1.bf16.msra.mxu1 %v8031_v60  ;;  %5347 = vmatprep.subr.bf16.mxu0 %v10034_v49 }
 0x153   : > { %5251 = vmatprep.subr.bf16.mxu1 %v8035_v36 }
 0x155   : > { %5349 = vmatpush1.bf16.msra.mxu0 %v10035_v57 }
 0x156   : > { %5253 = vmatpush1.bf16.msra.mxu1 %v8051_v10  ;;  %5351 = vmatprep.subr.bf16.mxu0 %v10036_v61  ;;  %v10040_v10 = vld [vmem:[#allocation59_spill] sm:$0xff] }
 0x157   : > { %5255 = vmatprep.subr.bf16.mxu1 %v8055_v43 }
 0x159   : > { %5353 = vmatpush1.bf16.msra.mxu0 %v10037_v39 }
 0x15a   : > { %5257 = vmatpush1.bf16.msra.mxu1 %v8071_v23  ;;  %5355 = vmatprep.subr.bf16.mxu0 %v10038_v44  ;;  %v10044_v23 = vld [vmem:[#allocation63_spill] sm:$0xff] }
 0x15b   : > { %5259 = vmatprep.subr.bf16.mxu1 %v8075_v20  ;;  %v10045_v20 = vld [vmem:[#allocation65_spill] sm:$0xff] }
 0x15c   : > { %v4172_v60 = vpop.f32.mrb[4].mxu1 }
 0x15d   : > { %v4173_v17 = vpop.f32.mrb[5].mxu1  ;;  %5357 = vmatpush1.bf16.msra.mxu0 %v10039_v12 }
 0x15e   : > { %v4174_v36 = vadd.f32 %v4173_v17, %v4172_v60  ;;  %5261 = vmatpush1.bf16.msra.mxu1 %v8091_v28  ;;  %5359 = vmatprep.subr.bf16.mxu0 %v10040_v10  ;;  %v10046_v17 = vld [vmem:[#allocation147_spill] sm:$0xff]  ;;  %v10047_v60 = vld [vmem:[#allocation4_spill] sm:$0xff] }
 0x15f   : > { %5263 = vmatprep.subr.bf16.mxu1 %v10041_v56  ;;  %v10048_v28 = vld [vmem:[#allocation36_spill] sm:$0xff]  ;;  %v10054_v56 = vld [vmem:[#allocation42_spill] sm:$0xff] }
 0x160   : > { %v8279_v43 = vadd.f32 %v4174_v36, %v749_v14  ;;  %v10049_v14 = vld [vmem:[#allocation6_spill] sm:$0xff] }
 0x161   : > { %5361 = vmatpush1.bf16.msra.mxu0 %v10043_v48  ;;  %v10050_v36 = vld [vmem:[#allocation38_spill] sm:$0xff] }
 0x162   : > { %10042 = vst [vmem:[#allocation153_spill] sm:$0xff] %v8279_v43  ;;  %5265 = vmatpush1.bf16.msra.mxu1 %v8111_v46  ;;  %5363 = vmatprep.subr.bf16.mxu0 %v10044_v23  ;;  %v10051_v46 = vld [vmem:[#allocation8_spill] sm:$0xff] }
 0x163   : > { %5267 = vmatprep.subr.bf16.mxu1 %v8115_v29  ;;  %v10052_v43 = vld [vmem:[#allocation40_spill] sm:$0xff] }
 0x164   : > { %v6644_v29 = vld [vmem:[%s6994_s20 + $0x28] sm:$0xff] }
 0x165   : > { %5365 = vmatpush1.bf16.msra.mxu0 %v10045_v20 }
 0x166   : > { %5269 = vmatpush1.bf16.msra.mxu1 %v10046_v17  ;;  %5367 = vmatprep.subr.bf16.mxu0 %v10047_v60  ;;  %v10053_v17 = vld [vmem:[#allocation10_spill] sm:$0xff] }
 0x167   : > { %5463 = vmatprep.subr.bf16.mxu1 %v10048_v28  ;;  %v10055_v28 = vld [vmem:[#allocation12_spill] sm:$0xff]  ;;  %v10056_v60 = vld [vmem:[#allocation14_spill] sm:$0xff] }
 0x168   : > { %1562 = vmatmul.mubr.f32.vlgmr.msra.gmra.mrb[6].mxu0 %v8204_v5 }
 0x169   : > { %1352 = vmatmul.mubr.f32.vlgmr.msra.gmra.mrb[6].mxu1 %v8204_v5  ;;  %5369 = vmatpush3.bf16.msra.mxu0 %v10049_v14  ;;  %v10057_v14 = vld [vmem:[#allocation46_spill] sm:$0xff] }
 0x16a   : > { %5465 = vmatpush3.bf16.msra.mxu1 %v10050_v36  ;;  %5371 = vmatprep.subr.bf16.mxu0 %v10051_v46  ;;  %v10058_v36 = vld [vmem:[#allocation16_spill] sm:$0xff] }
 0x16b   : > { %5467 = vmatprep.subr.bf16.mxu1 %v10052_v43  ;;  %1632 = vmatprep.mubr.f32.mxu0 %v8169_v13  ;;  %v10059_v46 = vld [vmem:[#allocation48_spill] sm:$0xff]  ;;  %v10060_v43 = vld [vmem:[#allocation18_spill] sm:$0xff] }
 0x16c   : > { %1773 = vmatprep.mubr.f32.mxu1 %v6644_v29  ;;  %v10061_v13 = vld [vmem:[#allocation20_spill] sm:$0xff] }
 0x16d   : > { %5373 = vmatpush3.bf16.msra.mxu0 %v10053_v17 }
 0x16e   : > { %5469 = vmatpush3.bf16.msra.mxu1 %v10054_v56  ;;  %5375 = vmatprep.subr.bf16.mxu0 %v10055_v28  ;;  %v10062_v56 = vld [vmem:[#allocation22_spill] sm:$0xff] }
 0x16f   : > { %5471 = vmatprep.subr.bf16.mxu1 %v9974_v33  ;;  %v10063_v33 = vld [vmem:[#allocation24_spill] sm:$0xff] }
 0x171   : > { %5377 = vmatpush3.bf16.msra.mxu0 %v10056_v60 }
 0x172   : > { %5473 = vmatpush3.bf16.msra.mxu1 %v10057_v14  ;;  %5379 = vmatprep.subr.bf16.mxu0 %v10058_v36  ;;  %v10064_v14 = vld [vmem:[#allocation26_spill] sm:$0xff] }
 0x173   : > { %5475 = vmatprep.subr.bf16.mxu1 %v10059_v46  ;;  %v10065_v46 = vld [vmem:[#allocation58_spill] sm:$0xff] }
 0x175   : > { %5381 = vmatpush3.bf16.msra.mxu0 %v10060_v43  ;;  %v10066_v43 = vld [vmem:[#allocation28_spill] sm:$0xff] }
 0x176   : > { %5477 = vmatpush3.bf16.msra.mxu1 %v9980_v8  ;;  %5383 = vmatprep.subr.bf16.mxu0 %v10061_v13  ;;  %v10067_v8 = vld [vmem:[#allocation30_spill] sm:$0xff] }
 0x177   : > { %5479 = vmatprep.subr.bf16.mxu1 %v9982_v54  ;;  %v10068_v54 = vld [vmem:[#allocation32_spill] sm:$0xff] }
 0x179   : > { %5385 = vmatpush3.bf16.msra.mxu0 %v10062_v56 }
 0x17a   : > { %5481 = vmatpush3.bf16.msra.mxu1 %v9984_v41  ;;  %5387 = vmatprep.subr.bf16.mxu0 %v10063_v33  ;;  %v10069_v41 = vld [vmem:[#allocation34_spill] sm:$0xff] }
 0x17b   : > { %5483 = vmatprep.subr.bf16.mxu1 %v9986_v0  ;;  %v10070_v0 = vld [vmem:[#allocation67_spill] sm:$0xff] }
 0x17d   : > { %5389 = vmatpush3.bf16.msra.mxu0 %v10064_v14 }
 0x17e   : > { %5485 = vmatpush3.bf16.msra.mxu1 %v10065_v46  ;;  %5391 = vmatprep.subr.bf16.mxu0 %v10066_v43  ;;  %v8327_v46 = vld [vmem:[%s6994_s20 + $0x48] sm:$0xff] }
 0x17f   : > { %5487 = vmatprep.subr.bf16.mxu1 %v9989_v21  ;;  %10071 = vst [vmem:[#allocation154_spill] sm:$0xff] %v8327_v46  ;;  %v10072_v21 = vld [vmem:[#allocation101_spill] sm:$0xff] }
 0x181   : > { %5393 = vmatpush3.bf16.msra.mxu0 %v10067_v8  ;;  %v10073_v8 = vld [vmem:[#allocation69_spill] sm:$0xff] }
 0x182   : > { %5489 = vmatpush3.bf16.msra.mxu1 %v9990_v3  ;;  %5395 = vmatprep.subr.bf16.mxu0 %v10068_v54  ;;  %v10074_v3 = vld [vmem:[#allocation70_spill] sm:$0xff]  ;;  %v10075_v54 = vld [vmem:[#allocation71_spill] sm:$0xff] }
 0x183   : > { %5491 = vmatprep.subr.bf16.mxu1 %v9991_v59  ;;  %v10080_v59 = vld [vmem:[#allocation80_spill] sm:$0xff] }
 0x185   : > { %5397 = vmatpush3.bf16.msra.mxu0 %v10069_v41 }
 0x186   : > { %5493 = vmatpush3.bf16.msra.mxu1 %v9992_v34  ;;  %5399 = vmatprep.subr.bf16.mxu0 %v10070_v0  ;;  %v10076_v34 = vld [vmem:[#allocation73_spill] sm:$0xff] }
 0x187   : > { %5559 = vmatprep.subr.bf16.mxu1 %v9993_v15  ;;  %v10078_v15 = vld [vmem:[#allocation77_spill] sm:$0xff] }
 0x188   : > { %1633 = vmatmul.mubr.f32.vlgmr.msra.gmra.mrb[8].mxu0 %v8204_v5  ;;  %v10077_v5 = vld [vmem:[#allocation75_spill] sm:$0xff] }
 0x189   : > { %1774 = vmatmul.mubr.f32.vlgmr.msra.gmra.mrb[10].mxu1 %v10072_v21  ;;  %5401 = vmatpush1.bf16.msra.mxu0 %v10073_v8 }
 0x18a   : > { %5561 = vmatpush3.bf16.msra.mxu1 %v10074_v3  ;;  %5403 = vmatprep.subr.bf16.mxu0 %v10075_v54  ;;  %v10079_v3 = vld [vmem:[#allocation79_spill] sm:$0xff]  ;;  %v10082_v54 = vld [vmem:[#allocation82_spill] sm:$0xff] }
 0x18b   : > { %5563 = vmatprep.subr.bf16.mxu1 %v9996_v38  ;;  %1917 = vmatprep.mubr.f32.mxu1 %v8327_v46  ;;  %v10081_v38 = vld [vmem:[#allocation81_spill] sm:$0xff] }
 0x18c   : > { %1702 = vmatprep.mubr.f32.mxu0 %v6644_v29  ;;  %v10083_v29 = vld [vmem:[#allocation83_spill] sm:$0xff] }
 0x18d   : > { %5405 = vmatpush1.bf16.msra.mxu0 %v10076_v34 }
 0x18e   : > { %5565 = vmatpush3.bf16.msra.mxu1 %v9997_v9  ;;  %5407 = vmatprep.subr.bf16.mxu0 %v10077_v5  ;;  %v10084_v9 = vld [vmem:[#allocation85_spill] sm:$0xff] }
 0x18f   : > { %5567 = vmatprep.subr.bf16.mxu1 %v9998_v40  ;;  %v10085_v40 = vld [vmem:[#allocation87_spill] sm:$0xff] }
 0x191   : > { %5409 = vmatpush1.bf16.msra.mxu0 %v10078_v15 }
 0x192   : > { %5569 = vmatpush3.bf16.msra.mxu1 %v9999_v11  ;;  %5411 = vmatprep.subr.bf16.mxu0 %v10079_v3  ;;  %v10086_v11 = vld [vmem:[#allocation89_spill] sm:$0xff] }
 0x193   : > { %5571 = vmatprep.subr.bf16.mxu1 %v10080_v59  ;;  %v10087_v59 = vld [vmem:[#allocation91_spill] sm:$0xff] }
 0x195   : > { %5413 = vmatpush1.bf16.msra.mxu0 %v10081_v38 }
 0x196   : > { %5573 = vmatpush3.bf16.msra.mxu1 %v10082_v54  ;;  %5415 = vmatprep.subr.bf16.mxu0 %v10083_v29  ;;  %v10088_v54 = vld [vmem:[#allocation93_spill] sm:$0xff] }
 0x197   : > { %5575 = vmatprep.subr.bf16.mxu1 %v10002_v45  ;;  %v10089_v45 = vld [vmem:[#allocation95_spill] sm:$0xff] }
 0x199   : > { %5417 = vmatpush1.bf16.msra.mxu0 %v10084_v9 }
 0x19a   : > { %5577 = vmatpush3.bf16.msra.mxu1 %v10003_v26  ;;  %5419 = vmatprep.subr.bf16.mxu0 %v10085_v40  ;;  %v10090_v26 = vld [vmem:[#allocation97_spill] sm:$0xff] }
 0x19b   : > { %5579 = vmatprep.subr.bf16.mxu1 %v10004_v31  ;;  %v10091_v31 = vld [vmem:[#allocation99_spill] sm:$0xff] }
 0x19d   : > { %5421 = vmatpush1.bf16.msra.mxu0 %v10086_v11  ;;  %v8363_v11 = vld [vmem:[%s6994_s20 + $0x40] sm:$0xff] }
 0x19e   : > { %5581 = vmatpush3.bf16.msra.mxu1 %v10005_v7  ;;  %5423 = vmatprep.subr.bf16.mxu0 %v10087_v59  ;;  %10092 = vst [vmem:[#allocation101_spill] sm:$0xff] %v8363_v11  ;;  %v10098_v7 = vld [vmem:[#allocation106_spill] sm:$0xff] }
 0x19f   : > { %5583 = vmatprep.subr.bf16.mxu1 %v10006_v63  ;;  %v10093_v63 = vld [vmem:[#allocation100_spill] sm:$0xff] }
 0x1a1   : > { %5425 = vmatpush1.bf16.msra.mxu0 %v10088_v54 }
 0x1a2   : > { %5585 = vmatpush3.bf16.msra.mxu1 %v7614_v53  ;;  %5427 = vmatprep.subr.bf16.mxu0 %v10089_v45  ;;  %v10094_v53 = vld [vmem:[#allocation102_spill] sm:$0xff] }
 0x1a3   : > { %5587 = vmatprep.subr.bf16.mxu1 %v10007_v19  ;;  %v10095_v19 = vld [vmem:[#allocation103_spill] sm:$0xff] }
 0x1a5   : > { %5429 = vmatpush1.bf16.msra.mxu0 %v10090_v26 }
 0x1a6   : > { %5589 = vmatpush3.bf16.msra.mxu1 %v10008_v51  ;;  %5431 = vmatprep.subr.bf16.mxu0 %v10091_v31  ;;  %v10096_v51 = vld [vmem:[#allocation104_spill] sm:$0xff] }
 0x1a7   : > { %5591 = vmatprep.subr.bf16.mxu1 %v10010_v58  ;;  %v10097_v58 = vld [vmem:[#allocation105_spill] sm:$0xff] }
 0x1a9   : > { %1918 = vmatmul.mubr.f32.vlgmr.msra.gmra.mrb[12].mxu1 %v8363_v11  ;;  %5433 = vmatpush1.bf16.msra.mxu0 %v10093_v63 }
 0x1aa   : > { %5593 = vmatpush1.bf16.msra.mxu1 %v10011_v47  ;;  %5435 = vmatprep.subr.bf16.mxu0 %v10094_v53  ;;  %v10099_v47 = vld [vmem:[#allocation107_spill] sm:$0xff] }
 0x1ab   : > { %5595 = vmatprep.subr.bf16.mxu1 %v10012_v37  ;;  %1996 = vmatprep.mubr.f32.mxu1 %v8327_v46  ;;  %v10100_v37 = vld [vmem:[#allocation108_spill] sm:$0xff]  ;;  %v10106_v53 = vld [vmem:[#allocation111_spill] sm:$0xff] }
 0x1ad   : > { %5437 = vmatpush1.bf16.msra.mxu0 %v10095_v19  ;;  %v10101_v19 = vld [vmem:[#allocation19_spill] sm:$0xff] }
 0x1ae   : > { %5597 = vmatpush1.bf16.msra.mxu1 %v10013_v50  ;;  %5439 = vmatprep.subr.bf16.mxu0 %v10096_v51  ;;  %v10102_v50 = vld [vmem:[#allocation109_spill] sm:$0xff] }
 0x1af   : > { %5599 = vmatprep.subr.bf16.mxu1 %v10014_v55  ;;  %v10103_v51 = vld [vmem:[#allocation21_spill] sm:$0xff]  ;;  %v10104_v55 = vld [vmem:[#allocation110_spill] sm:$0xff] }
 0x1b1   : > { %5441 = vmatpush1.bf16.msra.mxu0 %v10097_v58 }
 0x1b2   : > { %5601 = vmatpush1.bf16.msra.mxu1 %v10015_v62  ;;  %5443 = vmatprep.subr.bf16.mxu0 %v10098_v7  ;;  %v10105_v62 = vld [vmem:[#allocation23_spill] sm:$0xff] }
 0x1b3   : > { %5603 = vmatprep.subr.bf16.mxu1 %v10016_v2 }
 0x1b5   : > { %5445 = vmatpush1.bf16.msra.mxu0 %v10099_v47 }
 0x1b6   : > { %5605 = vmatpush1.bf16.msra.mxu1 %v10017_v42  ;;  %5447 = vmatprep.subr.bf16.mxu0 %v10100_v37 }
 0x1b7   : > { %5607 = vmatprep.subr.bf16.mxu1 %v10101_v19  ;;  %v10107_v19 = vld [vmem:[#allocation112_spill] sm:$0xff] }
 0x1b9   : > { %5449 = vmatpush1.bf16.msra.mxu0 %v10102_v50 }
 0x1ba   : > { %5609 = vmatpush1.bf16.msra.mxu1 %v10103_v51  ;;  %5451 = vmatprep.subr.bf16.mxu0 %v10104_v55  ;;  %v10108_v51 = vld [vmem:[#allocation113_spill] sm:$0xff]  ;;  %v10109_v55 = vld [vmem:[#allocation114_spill] sm:$0xff] }
 0x1bb   : > { %v8387_v58 = vpop.f32.mrb[0].mxu0  ;;  %5611 = vmatprep.subr.bf16.mxu1 %v10105_v62  ;;  %v10110_v62 = vld [vmem:[#allocation115_spill] sm:$0xff] }
 0x1bc   : > { %v4207_v7 = vpop.f32.mrb[8].mxu1  ;;  %v8390_v2 = vpop.f32.mrb[1].mxu0 }
 0x1bd   : > { %v4208_v47 = vpop.f32.mrb[9].mxu1  ;;  %5453 = vmatpush1.bf16.msra.mxu0 %v10106_v53  ;;  %v10111_v53 = vld [vmem:[#allocation116_spill] sm:$0xff] }
 0x1be   : > { %v4209_v42 = vadd.f32 %v4208_v47, %v4207_v7  ;;  %5613 = vmatpush1.bf16.msra.mxu1 %v10024_v32  ;;  %5455 = vmatprep.subr.bf16.mxu0 %v10107_v19  ;;  %v10112_v7 = vld [vmem:[#allocation117_spill] sm:$0xff]  ;;  %v10113_v47 = vld [vmem:[#allocation118_spill] sm:$0xff] }
 0x1bf   : > { %5615 = vmatprep.subr.bf16.mxu1 %v10025_v6  ;;  %v10139_v32 = vld [vmem:[#allocation141_spill] sm:$0xff] }
 0x1c1   : > { %5457 = vmatpush1.bf16.msra.mxu0 %v10108_v51 }
 0x1c2   : > { %5617 = vmatpush1.bf16.msra.mxu1 %v10026_v18  ;;  %5459 = vmatprep.subr.bf16.mxu0 %v10109_v55 }
 0x1c3   : > { %5619 = vmatprep.subr.bf16.mxu1 %v10027_v30  ;;  %v10114_v30 = vld [vmem:[#allocation119_spill] sm:$0xff] }
 0x1c5   : > { %5461 = vmatpush1.bf16.msra.mxu0 %v10110_v62 }
 0x1c6   : > { %5621 = vmatpush1.bf16.msra.mxu1 %v7052_v1  ;;  %5495 = vmatprep.subr.bf16.mxu0 %v10111_v53  ;;  %v10115_v1 = vld [vmem:[#allocation120_spill] sm:$0xff] }
 0x1c7   : > { %5623 = vmatprep.subr.bf16.mxu1 %v10028_v24  ;;  %v10116_v24 = vld [vmem:[#allocation121_spill] sm:$0xff] }
 0x1c8   : > { %1703 = vmatmul.mubr.f32.vlgmr.msra.gmra.mrb[6].mxu0 %v10072_v21  ;;  %v10117_v21 = vld [vmem:[#allocation122_spill] sm:$0xff] }
 0x1c9   : > { %5497 = vmatpush1.bf16.msra.mxu0 %v10112_v7  ;;  %1846 = vmatprep.mubr.f32.mxu0 %v8327_v46 }
 0x1ca   : > { %5625 = vmatpush1.bf16.msra.mxu1 %v10029_v35  ;;  %5499 = vmatprep.subr.bf16.mxu0 %v10113_v47  ;;  %v10118_v35 = vld [vmem:[#allocation123_spill] sm:$0xff] }
 0x1cb   : > { %5627 = vmatprep.subr.bf16.mxu1 %v10030_v22  ;;  %v10119_v22 = vld [vmem:[#allocation124_spill] sm:$0xff] }
 0x1cd   : > { %5501 = vmatpush1.bf16.msra.mxu0 %v10114_v30 }
 0x1ce   : > { %5629 = vmatpush1.bf16.msra.mxu1 %v10031_v16  ;;  %5503 = vmatprep.subr.bf16.mxu0 %v10115_v1  ;;  %v10120_v16 = vld [vmem:[#allocation125_spill] sm:$0xff] }
 0x1cf   : > { %5631 = vmatprep.subr.bf16.mxu1 %v10032_v4  ;;  %v10121_v4 = vld [vmem:[#allocation126_spill] sm:$0xff] }
 0x1d1   : > { %5505 = vmatpush1.bf16.msra.mxu0 %v10116_v24 }
 0x1d2   : > { %5633 = vmatpush1.bf16.msra.mxu1 %v10033_v52  ;;  %5507 = vmatprep.subr.bf16.mxu0 %v10117_v21 }
 0x1d3   : > { %5635 = vmatprep.subr.bf16.mxu1 %v10034_v49  ;;  %v10138_v49 = vld [vmem:[#allocation150_spill] sm:$0xff] }
 0x1d5   : > { %5509 = vmatpush1.bf16.msra.mxu0 %v10118_v35 }
 0x1d6   : > { %5637 = vmatpush1.bf16.msra.mxu1 %v10035_v57  ;;  %5511 = vmatprep.subr.bf16.mxu0 %v10119_v22 }
 0x1d7   : > { %5639 = vmatprep.subr.bf16.mxu1 %v10036_v61  ;;  %v10122_v61 = vld [vmem:[#allocation129_spill] sm:$0xff] }
 0x1d9   : > { %5513 = vmatpush1.bf16.msra.mxu0 %v10120_v16 }
 0x1da   : > { %5641 = vmatpush1.bf16.msra.mxu1 %v10037_v39  ;;  %5515 = vmatprep.subr.bf16.mxu0 %v10121_v4  ;;  %v10123_v39 = vld [vmem:[#allocation130_spill] sm:$0xff] }
 0x1db   : > { %v4242_v18 = vpop.f32.mrb[2].mxu0  ;;  %5643 = vmatprep.subr.bf16.mxu1 %v10038_v44  ;;  %v10124_v44 = vld [vmem:[#allocation131_spill] sm:$0xff] }
 0x1dc   : > { %v4243_v52 = vpop.f32.mrb[3].mxu0 }
 0x1dd   : > { %v4244_v6 = vadd.f32 %v4243_v52, %v4242_v18  ;;  %5517 = vmatpush1.bf16.msra.mxu0 %v7929_v25  ;;  %v10125_v52 = vld [vmem:[#allocation132_spill] sm:$0xff] }
 0x1de   : > { %5645 = vmatpush1.bf16.msra.mxu1 %v10039_v12  ;;  %5519 = vmatprep.subr.bf16.mxu0 %v7933_v27  ;;  %v10126_v18 = vld [vmem:[#allocation4_spill] sm:$0xff]  ;;  %v10127_v12 = vld [vmem:[#allocation133_spill] sm:$0xff] }
 0x1df   : > { %v1281_v57 = vadd.f32 %v4244_v6, %v4209_v42  ;;  %5647 = vmatprep.subr.bf16.mxu1 %v10040_v10  ;;  %v10128_v42 = vld [vmem:[#allocation6_spill] sm:$0xff] }
 0x1e0   : > { %v10129_v6 = vld [vmem:[#allocation134_spill] sm:$0xff] }
 0x1e1   : > { %5521 = vmatpush1.bf16.msra.mxu0 %v10122_v61  ;;  %v10134_v10 = vld [vmem:[#allocation138_spill] sm:$0xff] }
 0x1e2   : > { %5649 = vmatpush1.bf16.msra.mxu1 %v10043_v48  ;;  %5523 = vmatprep.subr.bf16.mxu0 %v10123_v39  ;;  %v10130_v48 = vld [vmem:[#allocation8_spill] sm:$0xff] }
 0x1e3   : > { %5651 = vmatprep.subr.bf16.mxu1 %v10044_v23  ;;  %v10131_v23 = vld [vmem:[#allocation135_spill] sm:$0xff] }
 0x1e5   : > { %5525 = vmatpush1.bf16.msra.mxu0 %v10124_v44 }
 0x1e6   : > { %5653 = vmatpush1.bf16.msra.mxu1 %v10045_v20  ;;  %5527 = vmatprep.subr.bf16.mxu0 %v10125_v52  ;;  %v10132_v20 = vld [vmem:[#allocation136_spill] sm:$0xff] }
 0x1e7   : > { %5655 = vmatprep.subr.bf16.mxu1 %v10126_v18  ;;  %v10133_v18 = vld [vmem:[#allocation137_spill] sm:$0xff] }
 0x1e9   : > { %5529 = vmatpush1.bf16.msra.mxu0 %v10127_v12  ;;  %1997 = vmatmul.mubr.f32.vlgmr.msra.gmra.mrb[14].mxu1 %v8363_v11 }
 0x1ea   : > { %5657 = vmatpush3.bf16.msra.mxu1 %v10128_v42  ;;  %5531 = vmatprep.subr.bf16.mxu0 %v10129_v6  ;;  %v10135_v42 = vld [vmem:[#allocation139_spill] sm:$0xff] }
 0x1eb   : > { %5659 = vmatprep.subr.bf16.mxu1 %v10130_v48  ;;  %2067 = vmatprep.mubr.f32.mxu1 %v8327_v46  ;;  %v10136_v48 = vld [vmem:[#allocation18_spill] sm:$0xff]  ;;  %v10137_v46 = vld [vmem:[#allocation140_spill] sm:$0xff] }
 0x1ed   : > { %5533 = vmatpush1.bf16.msra.mxu0 %v10131_v23 }
 0x1ee   : > { %5661 = vmatpush3.bf16.msra.mxu1 %v10053_v17  ;;  %5535 = vmatprep.subr.bf16.mxu0 %v10132_v20  ;;  %v258_v17 = vsub.s32 2, %v10138_v49  ;;  %v10147_v20 = vld [vmem:[#allocation30_spill] sm:$0xff] }
 0x1ef   : > { %5663 = vmatprep.subr.bf16.mxu1 %v10055_v28  ;;  %v10140_v28 = vld [vmem:[#allocation142_spill] sm:$0xff] }
 0x1f1   : > { %5537 = vmatpush1.bf16.msra.mxu0 %v10133_v18  ;;  %v10143_v18 = vld [vmem:[#allocation143_spill] sm:$0xff] }
 0x1f2   : > { %5665 = vmatpush3.bf16.msra.mxu1 %v10056_v60  ;;  %5539 = vmatprep.subr.bf16.mxu0 %v10134_v10  ;;  %v10141_v60 = vld [vmem:[#allocation151_spill] sm:$0xff] }
 0x1f3   : > { %5667 = vmatprep.subr.bf16.mxu1 %v10058_v36  ;;  %v8461_v10 = vrot.slane %v10141_v60, %v258_v17 }
 0x1f5   : > { %5541 = vmatpush1.bf16.msra.mxu0 %v10135_v42  ;;  %10142 = vst [vmem:[#allocation150_spill] sm:$0xff] %v8461_v10 }
 0x1f6   : > { %5669 = vmatpush3.bf16.msra.mxu1 %v10136_v48  ;;  %5543 = vmatprep.subr.bf16.mxu0 %v10137_v46  ;;  %v10144_v46 = vld [vmem:[#allocation144_spill] sm:$0xff] }
 0x1f7   : > { %5671 = vmatprep.subr.bf16.mxu1 %v10061_v13  ;;  %v10145_v13 = vld [vmem:[#allocation153_spill] sm:$0xff] }
 0x1f9   : > { %5545 = vmatpush1.bf16.msra.mxu0 %v10139_v32  ;;  %v998_v32 = vadd.f32 %v10145_v13, %v8461_v10  ;;  %v10152_v13 = vld [vmem:[#allocation36_spill] sm:$0xff] }
 0x1fa   : > { %5673 = vmatpush3.bf16.msra.mxu1 %v10062_v56  ;;  %5547 = vmatprep.subr.bf16.mxu0 %v10140_v28  ;;  %v10146_v28 = vld [vmem:[#allocation145_spill] sm:$0xff] }
 0x1fb   : > { %v4277_v36 = vpop.f32.mrb[4].mxu0  ;;  %5675 = vmatprep.subr.bf16.mxu1 %v10063_v33  ;;  %v10148_v33 = vld [vmem:[#allocation146_spill] sm:$0xff] }
 0x1fc   : > { %v4278_v42 = vpop.f32.mrb[5].mxu0 }
 0x1fd   : > { %v4279_v48 = vadd.f32 %v4278_v42, %v4277_v36  ;;  %5549 = vmatpush1.bf16.msra.mxu0 %v10143_v18  ;;  %v1001_v36 = vmax.f32 %v998_v32, 0.0  ;;  %v10149_v18 = vld [vmem:[#allocation32_spill] sm:$0xff] }
 0x1fe   : > { %5677 = vmatpush3.bf16.msra.mxu1 %v10064_v14  ;;  %5551 = vmatprep.subr.bf16.mxu0 %v10144_v46  ;;  %v10150_v14 = vld [vmem:[#allocation147_spill] sm:$0xff]  ;;  %v10154_v32 = vld [vmem:[#allocation40_spill] sm:$0xff] }
 0x1ff   : > { %v1430_v56 = vadd.f32 %v4279_v48, %v1281_v57  ;;  %5679 = vmatprep.subr.bf16.mxu1 %v10066_v43  ;;  %v10153_v48 = vld [vmem:[#allocation38_spill] sm:$0xff]  ;;  %v10156_v57 = vld [vmem:[#allocation148_spill] sm:$0xff] }
 0x200   : > { %v10181_v43 = vld [vmem:[#allocation78_spill] sm:$0xff] }
 0x201   : > { %v1433_v17 = vadd.f32 %v1430_v56, %v8461_v10  ;;  %5553 = vmatpush1.bf16.msra.mxu0 %v10146_v28  ;;  %v10155_v56 = vld [vmem:[#allocation71_spill] sm:$0xff]  ;;  %v250_v10 = vsub.s32 0, %v10138_v49 }
 0x202   : > { %5681 = vmatpush3.bf16.msra.mxu1 %v10147_v20  ;;  %5555 = vmatprep.subr.bf16.mxu0 %v10148_v33  ;;  %v10180_v20 = vld [vmem:[#allocation104_spill] sm:$0xff] }
 0x203   : > { %v1436_v42 = vmax.f32 %v1433_v17, 0.0  ;;  %5683 = vmatprep.subr.bf16.mxu1 %v10149_v18  ;;  %v10157_v17 = vld [vmem:[#allocation42_spill] sm:$0xff]  ;;  %v10178_v18 = vld [vmem:[#allocation103_spill] sm:$0xff] }
 0x205   : > { %5557 = vmatpush1.bf16.msra.mxu0 %v10150_v14  ;;  %v8476_v46 = vmax.f32 %v1001_v36, %v1436_v42  ;;  %v10158_v36 = vld [vmem:[#allocation44_spill] sm:$0xff]  ;;  %v10159_v42 = vld [vmem:[#allocation46_spill] sm:$0xff] }
 0x206   : > { %5685 = vmatpush3.bf16.msra.mxu1 %v10069_v41  ;;  %5751 = vmatprep.subr.bf16.mxu0 %v10152_v13  ;;  %v10169_v13 = vld [vmem:[#allocation64_spill] sm:$0xff]  ;;  %v10174_v41 = vld [vmem:[#allocation70_spill] sm:$0xff] }
 0x207   : > { %10151 = vst [vmem:[#allocation151_spill] sm:$0xff] %v8476_v46  ;;  %5687 = vmatprep.subr.bf16.mxu1 %v10070_v0  ;;  %v10182_v46 = vld [vmem:[#allocation105_spill] sm:$0xff] }
 0x208   : > { %1847 = vmatmul.mubr.f32.vlgmr.msra.gmra.mrb[6].mxu0 %v8363_v11 }
 0x209   : > { %2068 = vmatmul.mubr.f32.vlgmr.msra.gmra.mrb[16].mxu1 %v8363_v11  ;;  %5753 = vmatpush3.bf16.msra.mxu0 %v10153_v48  ;;  %v10160_v48 = vld [vmem:[#allocation48_spill] sm:$0xff]  ;;  %v10184_v11 = vld [vmem:[#allocation106_spill] sm:$0xff] }
 0x20a   : > { %5689 = vmatpush1.bf16.msra.mxu1 %v10073_v8  ;;  %5755 = vmatprep.subr.bf16.mxu0 %v10154_v32  ;;  %v10161_v32 = vld [vmem:[#allocation50_spill] sm:$0xff] }
 0x20b   : > { %5691 = vmatprep.subr.bf16.mxu1 %v10155_v56  ;;  %2208 = vmatprep.mubr.f32.mxu0 %v10156_v57 }
 0x20c   : > { %2137 = vmatprep.mubr.f32.mxu1 %v10156_v57  ;;  %v10162_v57 = vld [vmem:[#allocation52_spill] sm:$0xff] }
 0x20d   : > { %5757 = vmatpush3.bf16.msra.mxu0 %v10157_v17  ;;  %v10163_v17 = vld [vmem:[#allocation54_spill] sm:$0xff] }
 0x20e   : > { %5693 = vmatpush1.bf16.msra.mxu1 %v10076_v34  ;;  %5759 = vmatprep.subr.bf16.mxu0 %v10158_v36  ;;  %v10166_v36 = vld [vmem:[#allocation89_spill] sm:$0xff] }
 0x20f   : > { %5695 = vmatprep.subr.bf16.mxu1 %v10077_v5 }
 0x211   : > { %5761 = vmatpush3.bf16.msra.mxu0 %v10159_v42  ;;  %v10164_v42 = vld [vmem:[#allocation56_spill] sm:$0xff] }
 0x212   : > { %5697 = vmatpush1.bf16.msra.mxu1 %v10078_v15  ;;  %5763 = vmatprep.subr.bf16.mxu0 %v10160_v48  ;;  %v10165_v48 = vld [vmem:[#allocation58_spill] sm:$0xff] }
 0x213   : > { %5699 = vmatprep.subr.bf16.mxu1 %v10079_v3 }
 0x215   : > { %5765 = vmatpush3.bf16.msra.mxu0 %v10161_v32  ;;  %v10167_v32 = vld [vmem:[#allocation60_spill] sm:$0xff] }
 0x216   : > { %5701 = vmatpush1.bf16.msra.mxu1 %v10081_v38  ;;  %5767 = vmatprep.subr.bf16.mxu0 %v10162_v57  ;;  %v10168_v57 = vld [vmem:[#allocation62_spill] sm:$0xff] }
 0x217   : > { %5703 = vmatprep.subr.bf16.mxu1 %v10083_v29 }
 0x219   : > { %5769 = vmatpush3.bf16.msra.mxu0 %v10163_v17  ;;  %v10170_v17 = vld [vmem:[#allocation66_spill] sm:$0xff] }
 0x21a   : > { %5705 = vmatpush1.bf16.msra.mxu1 %v10084_v9  ;;  %5771 = vmatprep.subr.bf16.mxu0 %v10164_v42  ;;  %v10171_v42 = vld [vmem:[#allocation68_spill] sm:$0xff] }
 0x21b   : > { %5707 = vmatprep.subr.bf16.mxu1 %v10085_v40 }
 0x21d   : > { %5773 = vmatpush3.bf16.msra.mxu0 %v10165_v48  ;;  %v8517_v48 = vld [vmem:[%s6994_s20 + $0x58] sm:$0xff] }
 0x21e   : > { %5709 = vmatpush1.bf16.msra.mxu1 %v10166_v36  ;;  %5775 = vmatprep.subr.bf16.mxu0 %v10167_v32  ;;  %10172 = vst [vmem:[#allocation153_spill] sm:$0xff] %v8517_v48  ;;  %v10173_v32 = vld [vmem:[#allocation149_spill] sm:$0xff] }
 0x21f   : > { %5711 = vmatprep.subr.bf16.mxu1 %v10087_v59 }
 0x221   : > { %5777 = vmatpush3.bf16.msra.mxu0 %v10168_v57  ;;  %v10176_v57 = vld [vmem:[#allocation102_spill] sm:$0xff] }
 0x222   : > { %5713 = vmatpush1.bf16.msra.mxu1 %v10088_v54  ;;  %5779 = vmatprep.subr.bf16.mxu0 %v10169_v13  ;;  %v10175_v13 = vld [vmem:[#allocation72_spill] sm:$0xff] }
 0x223   : > { %5715 = vmatprep.subr.bf16.mxu1 %v10089_v45 }
 0x225   : > { %5781 = vmatpush3.bf16.msra.mxu0 %v10170_v17  ;;  %v10177_v17 = vld [vmem:[#allocation74_spill] sm:$0xff] }
 0x226   : > { %5717 = vmatpush1.bf16.msra.mxu1 %v10090_v26  ;;  %5847 = vmatprep.subr.bf16.mxu0 %v10171_v42  ;;  %v10179_v42 = vld [vmem:[#allocation76_spill] sm:$0xff] }
 0x227   : > { %5719 = vmatprep.subr.bf16.mxu1 %v10091_v31 }
 0x228   : > { %2209 = vmatmul.mubr.f32.vlgmr.msra.gmra.mrb[10].mxu0 %v10173_v32 }
 0x229   : > { %5849 = vmatpush3.bf16.msra.mxu0 %v10174_v41  ;;  %2352 = vmatprep.mubr.f32.mxu0 %v8517_v48  ;;  %v10183_v41 = vld [vmem:[#allocation80_spill] sm:$0xff] }
 0x22a   : > { %5721 = vmatpush1.bf16.msra.mxu1 %v10093_v63  ;;  %5851 = vmatprep.subr.bf16.mxu0 %v10175_v13  ;;  %v10185_v13 = vld [vmem:[#allocation82_spill] sm:$0xff] }
 0x22b   : > { %5723 = vmatprep.subr.bf16.mxu1 %v10176_v57  ;;  %v10186_v57 = vld [vmem:[#allocation107_spill] sm:$0xff] }
 0x22d   : > { %5853 = vmatpush3.bf16.msra.mxu0 %v10177_v17  ;;  %v10187_v17 = vld [vmem:[#allocation84_spill] sm:$0xff] }
 0x22e   : > { %5725 = vmatpush1.bf16.msra.mxu1 %v10178_v18  ;;  %5855 = vmatprep.subr.bf16.mxu0 %v10179_v42  ;;  %v8539_v42 = vrot.slane %v10141_v60, %v250_v10  ;;  %v10196_v18 = vld [vmem:[#allocation94_spill] sm:$0xff] }
 0x22f   : > { %5727 = vmatprep.subr.bf16.mxu1 %v10180_v20 }
 0x230   : > { %10188 = vst [vmem:[#allocation148_spill] sm:$0xff] %v8539_v42  ;;  %v996_v49 = vadd.f32 %v8387_v58, %v8539_v42 }
 0x231   : > { %5857 = vmatpush3.bf16.msra.mxu0 %v10181_v43  ;;  %v10189_v43 = vld [vmem:[#allocation86_spill] sm:$0xff] }
 0x232   : > { %5729 = vmatpush1.bf16.msra.mxu1 %v10182_v46  ;;  %5859 = vmatprep.subr.bf16.mxu0 %v10183_v41  ;;  %v10190_v41 = vld [vmem:[#allocation88_spill] sm:$0xff]  ;;  %v10193_v46 = vld [vmem:[#allocation90_spill] sm:$0xff] }
 0x233   : > { %5731 = vmatprep.subr.bf16.mxu1 %v10184_v11  ;;  %v10191_v11 = vld [vmem:[#allocation110_spill] sm:$0xff] }
 0x235   : > { %5861 = vmatpush3.bf16.msra.mxu0 %v10185_v13  ;;  %v10192_v13 = vld [vmem:[#allocation152_spill] sm:$0xff] }
 0x236   : > { %5733 = vmatpush1.bf16.msra.mxu1 %v10186_v57  ;;  %5863 = vmatprep.subr.bf16.mxu0 %v10187_v17  ;;  %v997_v57 = vadd.f32 %v8390_v2, %v10192_v13 }
 0x237   : > { %5735 = vmatprep.subr.bf16.mxu1 %v10100_v37  ;;  %v999_v37 = vmax.f32 %v996_v49, 0.0  ;;  %v8566_v49 = vld [vmem:[%s6994_s20 + $0x50] sm:$0xff] }
 0x239   : > { %5865 = vmatpush3.bf16.msra.mxu0 %v10189_v43 }
 0x23a   : > { %5737 = vmatpush1.bf16.msra.mxu1 %v10102_v50  ;;  %5867 = vmatprep.subr.bf16.mxu0 %v10190_v41  ;;  %v10194_v50 = vld [vmem:[#allocation111_spill] sm:$0xff]  ;;  %v10195_v41 = vld [vmem:[#allocation92_spill] sm:$0xff] }
 0x23b   : > { %5739 = vmatprep.subr.bf16.mxu1 %v10191_v11  ;;  %v1000_v11 = vmax.f32 %v997_v57, 0.0 }
 0x23c   : > { %v1353_v17 = vpop.f32.mrb[6].mxu1 }
 0x23d   : > { %v1431_v10 = vadd.f32 %v1353_v17, %v8539_v42  ;;  %v1355_v60 = vpop.f32.mrb[7].mxu1  ;;  %5869 = vmatpush3.bf16.msra.mxu0 %v10193_v46  ;;  %v10198_v46 = vld [vmem:[#allocation96_spill] sm:$0xff]  ;;  %v10209_v42 = vld [vmem:[#allocation3_spill] sm:$0xff] }
 0x23e   : > { %v1432_v43 = vadd.f32 %v1355_v60, %v10192_v13  ;;  %5741 = vmatpush1.bf16.msra.mxu1 %v10194_v50  ;;  %5871 = vmatprep.subr.bf16.mxu0 %v10195_v41  ;;  %v10199_v60 = vld [vmem:[#allocation98_spill] sm:$0xff]  ;;  %v10207_v41 = vld [vmem:[#allocation143_spill] sm:$0xff] }
 0x23f   : > { %v1434_v58 = vmax.f32 %v1431_v10, 0.0  ;;  %5743 = vmatprep.subr.bf16.mxu1 %v10107_v19 }
 0x240   : > { %v1435_v20 = vmax.f32 %v1432_v43, 0.0 }
 0x241   : > { %v8556_v2 = vmax.f32 %v999_v37, %v1434_v58  ;;  %5873 = vmatpush3.bf16.msra.mxu0 %v10196_v18  ;;  %v10200_v58 = vld [vmem:[#allocation136_spill] sm:$0xff] }
 0x242   : > { %v8559_v17 = vmax.f32 %v1000_v11, %v1435_v20  ;;  %5745 = vmatpush1.bf16.msra.mxu1 %v10108_v51  ;;  %5875 = vmatprep.subr.bf16.mxu0 %v10198_v46 }
 0x243   : > { %5747 = vmatprep.subr.bf16.mxu1 %v10109_v55 }
 0x244   : > { %10197 = vst [vmem:[#allocation149_spill] sm:$0xff] %v8559_v17  ;;  %v10208_v17 = vld [vmem:[#allocation144_spill] sm:$0xff] }
 0x245   : > { %5877 = vmatpush3.bf16.msra.mxu0 %v10199_v60 }
 0x246   : > { %5749 = vmatpush1.bf16.msra.mxu1 %v10110_v62 }
 0x247   : > { %5783 = vmatprep.subr.bf16.mxu1 %v10111_v53 }
 0x248   : > { %2353 = vmatmul.mubr.f32.vlgmr.msra.gmra.mrb[12].mxu0 %v8566_v49 }
 0x249   : > { %2138 = vmatmul.mubr.f32.vlgmr.msra.gmra.mrb[14].mxu1 %v10173_v32 }
 0x24a   : > { %5785 = vmatpush1.bf16.msra.mxu1 %v10112_v7  ;;  %2281 = vmatprep.mubr.f32.mxu1 %v8517_v48 }
 0x24b   : > { %5787 = vmatprep.subr.bf16.mxu1 %v10113_v47 }
 0x24e   : > { %5789 = vmatpush1.bf16.msra.mxu1 %v10114_v30 }
 0x24f   : > { %5791 = vmatprep.subr.bf16.mxu1 %v10115_v1 }
 0x252   : > { %5793 = vmatpush1.bf16.msra.mxu1 %v10116_v24 }
 0x253   : > { %5795 = vmatprep.subr.bf16.mxu1 %v10117_v21 }
 0x256   : > { %5797 = vmatpush1.bf16.msra.mxu1 %v10118_v35 }
 0x257   : > { %5799 = vmatprep.subr.bf16.mxu1 %v10119_v22 }
 0x25a   : > { %5801 = vmatpush1.bf16.msra.mxu1 %v10120_v16 }
 0x25b   : > { %v4312_v11 = vpop.f32.mrb[8].mxu0  ;;  %5803 = vmatprep.subr.bf16.mxu1 %v10121_v4 }
 0x25c   : > { %v4347_v37 = vpop.f32.mrb[10].mxu1  ;;  %v4313_v43 = vpop.f32.mrb[9].mxu0 }
 0x25d   : > { %v4314_v20 = vadd.f32 %v4313_v43, %v4312_v11  ;;  %v4348_v32 = vpop.f32.mrb[11].mxu1  ;;  %v10201_v11 = vld [vmem:[#allocation137_spill] sm:$0xff]  ;;  %v10203_v43 = vld [vmem:[#allocation139_spill] sm:$0xff] }
 0x25e   : > { %v4349_v57 = vadd.f32 %v4348_v32, %v4347_v37  ;;  %5805 = vmatpush1.bf16.msra.mxu1 %v7929_v25  ;;  %v10202_v37 = vld [vmem:[#allocation138_spill] sm:$0xff]  ;;  %v10205_v32 = vld [vmem:[#allocation141_spill] sm:$0xff] }
 0x25f   : > { %5807 = vmatprep.subr.bf16.mxu1 %v7933_v27 }
 0x260   : > { %v1776_v10 = vadd.f32 %v4349_v57, %v4314_v20  ;;  %v10204_v20 = vld [vmem:[#allocation140_spill] sm:$0xff]  ;;  %v10206_v57 = vld [vmem:[#allocation142_spill] sm:$0xff] }
 0x262   : > { %5809 = vmatpush1.bf16.msra.mxu1 %v10122_v61 }
 0x263   : > { %5811 = vmatprep.subr.bf16.mxu1 %v10123_v39 }
 0x266   : > { %5813 = vmatpush1.bf16.msra.mxu1 %v10124_v44 }
 0x267   : > { %5815 = vmatprep.subr.bf16.mxu1 %v10125_v52 }
 0x26a   : > { %5817 = vmatpush1.bf16.msra.mxu1 %v10127_v12 }
 0x26b   : > { %5819 = vmatprep.subr.bf16.mxu1 %v10129_v6 }
 0x26e   : > { %5821 = vmatpush1.bf16.msra.mxu1 %v10131_v23 }
 0x26f   : > { %5823 = vmatprep.subr.bf16.mxu1 %v10200_v58 }
 0x272   : > { %5825 = vmatpush1.bf16.msra.mxu1 %v10201_v11 }
 0x273   : > { %5827 = vmatprep.subr.bf16.mxu1 %v10202_v37 }
 0x276   : > { %5829 = vmatpush1.bf16.msra.mxu1 %v10203_v43 }
 0x277   : > { %5831 = vmatprep.subr.bf16.mxu1 %v10204_v20 }
 0x27a   : > { %5833 = vmatpush1.bf16.msra.mxu1 %v10205_v32 }
 0x27b   : > { %5835 = vmatprep.subr.bf16.mxu1 %v10206_v57  ;;  %v10210_v57 = vld [vmem:[#allocation5_spill] sm:$0xff] }
 0x27c   : > { %v4382_v60 = vpop.f32.mrb[12].mxu1 }
 0x27d   : > { %v4383_v46 = vpop.f32.mrb[13].mxu1 }
 0x27e   : > { %v4384_v18 = vadd.f32 %v4383_v46, %v4382_v60  ;;  %5837 = vmatpush1.bf16.msra.mxu1 %v10207_v41  ;;  %v10211_v46 = vld [vmem:[#allocation7_spill] sm:$0xff]  ;;  %v10212_v60 = vld [vmem:[#allocation9_spill] sm:$0xff] }
 0x27f   : > { %5839 = vmatprep.subr.bf16.mxu1 %v10208_v17  ;;  %v10219_v17 = vld [vmem:[#allocation23_spill] sm:$0xff] }
 0x280   : > { %v8601_v13 = vadd.f32 %v4384_v18, %v1776_v10  ;;  %v10213_v18 = vld [vmem:[#allocation11_spill] sm:$0xff]  ;;  %v10214_v10 = vld [vmem:[#allocation13_spill] sm:$0xff] }
 0x282   : > { %5841 = vmatpush1.bf16.msra.mxu1 %v10146_v28  ;;  %v10215_v28 = vld [vmem:[#allocation15_spill] sm:$0xff] }
 0x283   : > { %5843 = vmatprep.subr.bf16.mxu1 %v10148_v33  ;;  %v10216_v33 = vld [vmem:[#allocation17_spill] sm:$0xff] }
 0x286   : > { %5845 = vmatpush1.bf16.msra.mxu1 %v10150_v14  ;;  %v10217_v14 = vld [vmem:[#allocation19_spill] sm:$0xff] }
 0x287   : > { %5963 = vmatprep.subr.bf16.mxu1 %v10209_v42  ;;  %v10218_v42 = vld [vmem:[#allocation21_spill] sm:$0xff] }
 0x289   : > { %2282 = vmatmul.mubr.f32.vlgmr.msra.gmra.mrb[14].mxu1 %v8566_v49 }
 0x28a   : > { %5965 = vmatpush1.bf16.msra.mxu1 %v10210_v57  ;;  %2637 = vmatprep.mubr.f32.mxu1 %v8517_v48  ;;  %v10220_v57 = vld [vmem:[#allocation25_spill] sm:$0xff]  ;;  %v10221_v48 = vld [vmem:[#allocation27_spill] sm:$0xff] }
 0x28b   : > { %5967 = vmatprep.subr.bf16.mxu1 %v10211_v46  ;;  %v10222_v46 = vld [vmem:[#allocation29_spill] sm:$0xff] }
 0x28e   : > { %5969 = vmatpush1.bf16.msra.mxu1 %v10212_v60  ;;  %v10223_v60 = vld [vmem:[#allocation31_spill] sm:$0xff] }
 0x28f   : > { %5971 = vmatprep.subr.bf16.mxu1 %v10213_v18  ;;  %v10224_v18 = vld [vmem:[#allocation33_spill] sm:$0xff] }
 0x292   : > { %5973 = vmatpush1.bf16.msra.mxu1 %v10214_v10  ;;  %v10225_v10 = vld [vmem:[#allocation35_spill] sm:$0xff] }
 0x293   : > { %5975 = vmatprep.subr.bf16.mxu1 %v10215_v28  ;;  %v10226_v28 = vld [vmem:[#allocation37_spill] sm:$0xff] }
 0x296   : > { %5977 = vmatpush1.bf16.msra.mxu1 %v10216_v33  ;;  %v10227_v33 = vld [vmem:[#allocation39_spill] sm:$0xff] }
 0x297   : > { %5979 = vmatprep.subr.bf16.mxu1 %v10217_v14  ;;  %v10228_v14 = vld [vmem:[#allocation41_spill] sm:$0xff] }
 0x29a   : > { %5981 = vmatpush1.bf16.msra.mxu1 %v10218_v42  ;;  %v10229_v42 = vld [vmem:[#allocation43_spill] sm:$0xff] }
 0x29b   : > { %5983 = vmatprep.subr.bf16.mxu1 %v10219_v17  ;;  %v10230_v17 = vld [vmem:[#allocation45_spill] sm:$0xff] }
 0x29e   : > { %5985 = vmatpush1.bf16.msra.mxu1 %v10220_v57  ;;  %v10231_v57 = vld [vmem:[#allocation47_spill] sm:$0xff] }
 0x29f   : > { %5987 = vmatprep.subr.bf16.mxu1 %v10221_v48  ;;  %v10232_v48 = vld [vmem:[#allocation49_spill] sm:$0xff] }
 0x2a2   : > { %5989 = vmatpush1.bf16.msra.mxu1 %v10222_v46  ;;  %v10233_v46 = vld [vmem:[#allocation51_spill] sm:$0xff] }
 0x2a3   : > { %5991 = vmatprep.subr.bf16.mxu1 %v10223_v60  ;;  %v10234_v60 = vld [vmem:[#allocation53_spill] sm:$0xff] }
 0x2a6   : > { %5993 = vmatpush1.bf16.msra.mxu1 %v10224_v18  ;;  %v10235_v18 = vld [vmem:[#allocation55_spill] sm:$0xff] }
 0x2a7   : > { %5995 = vmatprep.subr.bf16.mxu1 %v10225_v10  ;;  %v10236_v10 = vld [vmem:[#allocation57_spill] sm:$0xff] }
 0x2aa   : > { %5997 = vmatpush1.bf16.msra.mxu1 %v10226_v28  ;;  %v10237_v28 = vld [vmem:[#allocation59_spill] sm:$0xff] }
 0x2ab   : > { %5999 = vmatprep.subr.bf16.mxu1 %v10227_v33  ;;  %v10238_v33 = vld [vmem:[#allocation61_spill] sm:$0xff] }
 0x2ae   : > { %6001 = vmatpush1.bf16.msra.mxu1 %v10228_v14  ;;  %v10239_v14 = vld [vmem:[#allocation63_spill] sm:$0xff] }
 0x2af   : > { %6003 = vmatprep.subr.bf16.mxu1 %v10229_v42  ;;  %v10240_v42 = vld [vmem:[#allocation65_spill] sm:$0xff] }
 0x2b2   : > { %6005 = vmatpush1.bf16.msra.mxu1 %v10230_v17 }
 0x2b3   : > { %6007 = vmatprep.subr.bf16.mxu1 %v10231_v57  ;;  %v1485_v57 = vld [vmem:[%s9387_s2 + $0x88] sm:$0xff] }
 0x2b6   : > { %6009 = vmatpush1.bf16.msra.mxu1 %v10232_v48  ;;  %v10312_v48 = vld [vmem:[#allocation98_spill] sm:$0xff] }
 0x2b7   : > { %6011 = vmatprep.subr.bf16.mxu1 %v10233_v46  ;;  %v10241_v46 = vld [vmem:[#allocation154_spill] sm:$0xff] }
 0x2ba   : > { %6013 = vmatpush1.bf16.msra.mxu1 %v10234_v60  ;;  %v10310_v60 = vld [vmem:[#allocation96_spill] sm:$0xff] }
 0x2bb   : > { %6015 = vmatprep.subr.bf16.mxu1 %v10235_v18 }
 0x2be   : > { %6017 = vmatpush1.bf16.msra.mxu1 %v10236_v10  ;;  %v10308_v10 = vld [vmem:[#allocation92_spill] sm:$0xff] }
 0x2bf   : > { %6019 = vmatprep.subr.bf16.mxu1 %v10237_v28 }
 0x2c2   : > { %6021 = vmatpush1.bf16.msra.mxu1 %v10238_v33  ;;  %v10306_v33 = vld [vmem:[#allocation88_spill] sm:$0xff] }
 0x2c3   : > { %6023 = vmatprep.subr.bf16.mxu1 %v10239_v14 }
 0x2c6   : > { %6025 = vmatpush1.bf16.msra.mxu1 %v10240_v42  ;;  %v10304_v42 = vld [vmem:[#allocation84_spill] sm:$0xff] }
 0x2c7   : > { %6059 = vmatprep.subr.bf16.mxu1 %v10070_v0 }
 0x2c9   : > { %2638 = vmatmul.mubr.f32.vlgmr.msra.gmra.mrb[18].mxu1 %v8566_v49 }
 0x2ca   : > { %6061 = vmatpush1.bf16.msra.mxu1 %v10073_v8  ;;  %2778 = vmatprep.mubr.f32.mxu1 %v10241_v46 }
 0x2cb   : > { %6063 = vmatprep.subr.bf16.mxu1 %v10155_v56 }
 0x2ce   : > { %6065 = vmatpush1.bf16.msra.mxu1 %v10076_v34 }
 0x2cf   : > { %6067 = vmatprep.subr.bf16.mxu1 %v10077_v5 }
 0x2d2   : > { %6069 = vmatpush1.bf16.msra.mxu1 %v10078_v15  ;;  %v1471_v15 = vld [vmem:[%s9387_s2 + $0x18] sm:$0xff] }
 0x2d3   : > { %6071 = vmatprep.subr.bf16.mxu1 %v10079_v3  ;;  %v1470_v3 = vld [vmem:[%s9387_s2 + $0x10] sm:$0xff] }
 0x2d6   : > { %6073 = vmatpush1.bf16.msra.mxu1 %v10081_v38 }
 0x2d7   : > { %6075 = vmatprep.subr.bf16.mxu1 %v10083_v29  ;;  %v10244_v29 = vld [vmem:[#allocation104_spill] sm:$0xff] }
 0x2da   : > { %6077 = vmatpush1.bf16.msra.mxu1 %v10084_v9  ;;  %v10243_v9 = vld [vmem:[#allocation103_spill] sm:$0xff] }
 0x2db   : > { %v8652_v0 = vpop.f32.mrb[6].mxu0  ;;  %6079 = vmatprep.subr.bf16.mxu1 %v10085_v40  ;;  %v10242_v40 = vld [vmem:[#allocation102_spill] sm:$0xff] }
 0x2dc   : > { %v4417_v46 = vpop.f32.mrb[16].mxu1  ;;  %v8655_v56 = vpop.f32.mrb[7].mxu0 }
 0x2dd   : > { %v4418_v34 = vpop.f32.mrb[17].mxu1 }
 0x2de   : > { %v4419_v8 = vadd.f32 %v4418_v34, %v4417_v46  ;;  %6081 = vmatpush1.bf16.msra.mxu1 %v10166_v36  ;;  %v10245_v34 = vld [vmem:[#allocation105_spill] sm:$0xff]  ;;  %v10246_v46 = vld [vmem:[#allocation106_spill] sm:$0xff] }
 0x2df   : > { %6083 = vmatprep.subr.bf16.mxu1 %v10087_v59  ;;  %v10247_v59 = vld [vmem:[#allocation107_spill] sm:$0xff] }
 0x2e2   : > { %6085 = vmatpush1.bf16.msra.mxu1 %v10088_v54  ;;  %v10248_v54 = vld [vmem:[#allocation108_spill] sm:$0xff] }
 0x2e3   : > { %6087 = vmatprep.subr.bf16.mxu1 %v10089_v45  ;;  %v10249_v45 = vld [vmem:[#allocation109_spill] sm:$0xff] }
 0x2e6   : > { %6089 = vmatpush1.bf16.msra.mxu1 %v10090_v26 }
 0x2e7   : > { %6091 = vmatprep.subr.bf16.mxu1 %v10091_v31  ;;  %v10250_v31 = vld [vmem:[#allocation110_spill] sm:$0xff] }
 0x2ea   : > { %6093 = vmatpush1.bf16.msra.mxu1 %v10093_v63 }
 0x2eb   : > { %6095 = vmatprep.subr.bf16.mxu1 %v10242_v40  ;;  %v10297_v40 = vld [vmem:[#allocation72_spill] sm:$0xff] }
 0x2ee   : > { %6097 = vmatpush1.bf16.msra.mxu1 %v10243_v9 }
 0x2ef   : > { %6099 = vmatprep.subr.bf16.mxu1 %v10244_v29 }
 0x2f2   : > { %6101 = vmatpush1.bf16.msra.mxu1 %v10245_v34 }
 0x2f3   : > { %6103 = vmatprep.subr.bf16.mxu1 %v10246_v46 }
 0x2f6   : > { %6105 = vmatpush1.bf16.msra.mxu1 %v10247_v59  ;;  %v10296_v59 = vld [vmem:[#allocation70_spill] sm:$0xff] }
 0x2f7   : > { %6107 = vmatprep.subr.bf16.mxu1 %v10248_v54  ;;  %v10251_v54 = vld [vmem:[#allocation101_spill] sm:$0xff] }
 0x2fa   : > { %6109 = vmatpush1.bf16.msra.mxu1 %v10249_v45 }
 0x2fb   : > { %v4452_v26 = vpop.f32.mrb[10].mxu0  ;;  %6111 = vmatprep.subr.bf16.mxu1 %v10250_v31 }
 0x2fc   : > { %v4453_v63 = vpop.f32.mrb[11].mxu0 }
 0x2fd   : > { %v4454_v36 = vadd.f32 %v4453_v63, %v4452_v26 }
 0x2fe   : > { %6113 = vmatpush1.bf16.msra.mxu1 %v10194_v50  ;;  %v1469_v50 = vld [vmem:[%s9387_s2 + $0x8] sm:$0xff] }
 0x2ff   : > { %v2211_v9 = vadd.f32 %v4454_v36, %v4419_v8  ;;  %6115 = vmatprep.subr.bf16.mxu1 %v10107_v19  ;;  %v10252_v36 = vld [vmem:[#allocation150_spill] sm:$0xff]  ;;  %v1468_v19 = vld [vmem:[%s9387_s2] sm:$0xff] }
 0x300   : > { %v5921_v29 = vpack.c.bf16 %v1469_v50, %v1468_v19  ;;  %v10299_v19 = vld [vmem:[#allocation76_spill] sm:$0xff]  ;;  %v10300_v50 = vmov 0.0|0.0  }
 0x302   : > { %6117 = vmatpush1.bf16.msra.mxu1 %v10108_v51  ;;  %v10295_v51 = vld [vmem:[#allocation68_spill] sm:$0xff] }
 0x303   : > { %6119 = vmatprep.subr.bf16.mxu1 %v10109_v55  ;;  %v10294_v55 = vld [vmem:[#allocation66_spill] sm:$0xff] }
 0x306   : > { %6121 = vmatpush1.bf16.msra.mxu1 %v10110_v62  ;;  %v10293_v62 = vld [vmem:[#allocation64_spill] sm:$0xff] }
 0x307   : > { %6155 = vmatprep.subr.bf16.mxu1 %v10111_v53  ;;  %v10292_v53 = vld [vmem:[#allocation62_spill] sm:$0xff] }
 0x309   : > { %2779 = vmatmul.mubr.f32.vlgmr.msra.gmra.mrb[18].mxu1 %v10251_v54 }
 0x30a   : > { %6157 = vmatpush1.bf16.msra.mxu1 %v10112_v7  ;;  %v10291_v7 = vld [vmem:[#allocation60_spill] sm:$0xff] }
 0x30b   : > { %6159 = vmatprep.subr.bf16.mxu1 %v10113_v47  ;;  %v10290_v47 = vld [vmem:[#allocation58_spill] sm:$0xff] }
 0x30e   : > { %6161 = vmatpush1.bf16.msra.mxu1 %v10114_v30  ;;  %v10289_v30 = vld [vmem:[#allocation56_spill] sm:$0xff] }
 0x30f   : > { %6163 = vmatprep.subr.bf16.mxu1 %v10115_v1  ;;  %v1928_v1 = vadd.f32 %v8601_v13, %v10252_v36  ;;  %v10259_v13 = vld [vmem:[#allocation4_spill] sm:$0xff] }
 0x312   : > { %6165 = vmatpush1.bf16.msra.mxu1 %v10116_v24  ;;  %v10288_v24 = vld [vmem:[#allocation54_spill] sm:$0xff] }
 0x313   : > { %6167 = vmatprep.subr.bf16.mxu1 %v10117_v21 }
 0x316   : > { %6169 = vmatpush1.bf16.msra.mxu1 %v10118_v35 }
 0x317   : > { %6171 = vmatprep.subr.bf16.mxu1 %v10119_v22  ;;  %v1931_v22 = vmax.f32 %v1928_v1, 0.0  ;;  %v10253_v1 = vld [vmem:[#allocation151_spill] sm:$0xff] }
 0x31a   : > { %6173 = vmatpush1.bf16.msra.mxu1 %v10120_v16 }
 0x31b   : > { %v4487_v26 = vpop.f32.mrb[12].mxu0  ;;  %6175 = vmatprep.subr.bf16.mxu1 %v10121_v4  ;;  %v10287_v4 = vld [vmem:[#allocation52_spill] sm:$0xff] }
 0x31c   : > { %v4488_v63 = vpop.f32.mrb[13].mxu0 }
 0x31d   : > { %v4489_v8 = vadd.f32 %v4488_v63, %v4487_v26  ;;  %v10260_v26 = vld [vmem:[#allocation148_spill] sm:$0xff] }
 0x31e   : > { %6177 = vmatpush1.bf16.msra.mxu1 %v7929_v25  ;;  %v1926_v63 = vadd.f32 %v8652_v0, %v10260_v26  ;;  %v4001_v0 = vld [vmem:[%s9387_s2 + $0xf0] sm:$0xff]  ;;  %v10286_v25 = vld [vmem:[#allocation50_spill] sm:$0xff] }
 0x31f   : > { %v2360_v54 = vadd.f32 %v4489_v8, %v2211_v9  ;;  %6179 = vmatprep.subr.bf16.mxu1 %v7933_v27  ;;  %v10254_v9 = vld [vmem:[#allocation142_spill] sm:$0xff]  ;;  %v10261_v8 = vld [vmem:[#allocation152_spill] sm:$0xff] }
 0x320   : > { %v10285_v27 = vld [vmem:[#allocation48_spill] sm:$0xff] }
 0x321   : > { %v2363_v21 = vadd.f32 %v2360_v54, %v10252_v36  ;;  %v1927_v54 = vadd.f32 %v8655_v56, %v10261_v8  ;;  %v4002_v56 = vld [vmem:[%s9387_s2 + $0xf8] sm:$0xff] }
 0x322   : > { %6181 = vmatpush1.bf16.msra.mxu1 %v10122_v61  ;;  %v10284_v61 = vld [vmem:[#allocation46_spill] sm:$0xff] }
 0x323   : > { %v2366_v35 = vmax.f32 %v2363_v21, 0.0  ;;  %6183 = vmatprep.subr.bf16.mxu1 %v10123_v39  ;;  %v10258_v21 = vld [vmem:[#allocation147_spill] sm:$0xff]  ;;  %v10283_v39 = vld [vmem:[#allocation44_spill] sm:$0xff] }
 0x325   : > { %v2369_v16 = vmax.f32 %v1931_v22, %v2366_v35  ;;  %v10255_v35 = vld [vmem:[#allocation144_spill] sm:$0xff]  ;;  %v10256_v22 = vld [vmem:[#allocation145_spill] sm:$0xff] }
 0x326   : > { %6185 = vmatpush1.bf16.msra.mxu1 %v10124_v44  ;;  %v10282_v44 = vld [vmem:[#allocation42_spill] sm:$0xff] }
 0x327   : > { %2377 = vrot.lane.b32.xlu1 %v2369_v16, %s6673_s15  ;;  %6187 = vmatprep.subr.bf16.mxu1 %v10125_v52  ;;  %v10257_v16 = vld [vmem:[#allocation146_spill] sm:$0xff]  ;;  %v10281_v52 = vld [vmem:[#allocation40_spill] sm:$0xff] }
 0x32a   : > { %6189 = vmatpush1.bf16.msra.mxu1 %v10127_v12  ;;  %v10280_v12 = vld [vmem:[#allocation153_spill] sm:$0xff] }
 0x32b   : > { %1443 = vrot.lane.b32.xlu1 %v8556_v2, %s6673_s15  ;;  %6191 = vmatprep.subr.bf16.mxu1 %v10129_v6  ;;  %v10279_v6 = vld [vmem:[#allocation38_spill] sm:$0xff] }
 0x32e   : > { %6193 = vmatpush1.bf16.msra.mxu1 %v10131_v23  ;;  %v10278_v23 = vld [vmem:[#allocation36_spill] sm:$0xff] }
 0x32f   : > { %1447 = vrot.lane.b32.xlu1 %v10253_v1, %s6673_s15  ;;  %6195 = vmatprep.subr.bf16.mxu1 %v10200_v58  ;;  %v10277_v58 = vld [vmem:[#allocation34_spill] sm:$0xff] }
 0x332   : > { %6197 = vmatpush1.bf16.msra.mxu1 %v10201_v11  ;;  %v10276_v11 = vld [vmem:[#allocation32_spill] sm:$0xff] }
 0x333   : > { %6199 = vmatprep.subr.bf16.mxu1 %v10202_v37  ;;  %v10275_v37 = vld [vmem:[#allocation30_spill] sm:$0xff] }
 0x336   : > { %6201 = vmatpush1.bf16.msra.mxu1 %v10203_v43  ;;  %v10274_v43 = vld [vmem:[#allocation28_spill] sm:$0xff] }
 0x337   : > { %6203 = vmatprep.subr.bf16.mxu1 %v10204_v20 }
 0x33a   : > { %6205 = vmatpush1.bf16.msra.mxu1 %v10205_v32  ;;  %v1930_v32 = vmax.f32 %v1927_v54, 0.0  ;;  %v10262_v54 = vld [vmem:[#allocation149_spill] sm:$0xff] }
 0x33b   : > { %6207 = vmatprep.subr.bf16.mxu1 %v10254_v9  ;;  %v1929_v9 = vmax.f32 %v1926_v63, 0.0  ;;  %v4007_v63 = vld [vmem:[%s9387_s2 + $0x120] sm:$0xff] }
 0x33e   : > { %6209 = vmatpush1.bf16.msra.mxu1 %v10207_v41 }
 0x33f   : > { %6211 = vmatprep.subr.bf16.mxu1 %v10255_v35 }
 0x342   : > { %6213 = vmatpush1.bf16.msra.mxu1 %v10256_v22 }
 0x343   : > { %6215 = vmatprep.subr.bf16.mxu1 %v10257_v16 }
 0x346   : > { %6217 = vmatpush1.bf16.msra.mxu1 %v10258_v21  ;;  %v4000_v21 = vld [vmem:[%s9387_s2 + $0xe8] sm:$0xff] }
 0x347   : > { %6315 = vmatprep.subr.bf16.mxu1 %v10259_v13 }
 0x35c   : > { %v2283_v1 = vpop.f32.mrb[14].mxu1 }
 0x35d   : > { %v2361_v36 = vadd.f32 %v2283_v1, %v10260_v26  ;;  %v2285_v41 = vpop.f32.mrb[15].mxu1  ;;  %v10273_v26 = vld [vmem:[#allocation26_spill] sm:$0xff] }
 0x35e   : > { %v2362_v35 = vadd.f32 %v2285_v41, %v10261_v8  ;;  %v9784_v41 = vmov 0.0|0.0   ;;  %v10272_v8 = vld [vmem:[#allocation24_spill] sm:$0xff] }
 0x35f   : > { %v2364_v22 = vmax.f32 %v2361_v36, 0.0  ;;  %5878 = vmatprep.subr.bf16.mxu0 %v9784_v41  ;;  %v5879_v36 = vpack.c.bf16 %v4001_v0, %v4000_v21  ;;  %v4006_v21 = vld [vmem:[%s9387_s2 + $0x118] sm:$0xff] }
 0x360   : > { %v2365_v16 = vmax.f32 %v2362_v35, 0.0  ;;  %v5888_v0 = vpack.c.bf16 %v4007_v63, %v4006_v21  ;;  %v4013_v21 = vld [vmem:[%s9387_s2 + $0x150] sm:$0xff] }
 0x361   : > { %v8726_v20 = vmax.f32 %v1929_v9, %v2364_v22  ;;  %v4003_v9 = vld [vmem:[%s9387_s2 + $0x100] sm:$0xff]  ;;  %5880 = vmatpush1.bf16.msra.mxu0 %v5879_v36  ;;  %v4005_v22 = vld [vmem:[%s9387_s2 + $0x110] sm:$0xff] }
 0x362   : > { %v8737_v1 = vmax.f32 %v1930_v32, %v2365_v16  ;;  %v5882_v35 = vpack.c.bf16 %v4003_v9, %v4002_v56  ;;  %5881 = vmatprep.subr.bf16.mxu0 %v9784_v41  ;;  %v4004_v32 = vld [vmem:[%s9387_s2 + $0x108] sm:$0xff]  ;;  %v4009_v36 = vld [vmem:[%s9387_s2 + $0x130] sm:$0xff] }
 0x363   : > { %2373 = vrot.lane.b32.xlu0 %v8726_v20, %s6673_s15  ;;  %v5885_v16 = vpack.c.bf16 %v4005_v22, %v4004_v32  ;;  %v4008_v56 = vld [vmem:[%s9387_s2 + $0x128] sm:$0xff]  ;;  %v4011_v32 = vld [vmem:[%s9387_s2 + $0x140] sm:$0xff] }
 0x364   : > { %v5891_v9 = vpack.c.bf16 %v4009_v36, %v4008_v56  ;;  %v4015_v56 = vld [vmem:[%s9387_s2 + $0x160] sm:$0xff] }
 0x365   : > { %5883 = vmatpush1.bf16.msra.mxu0 %v5882_v35  ;;  %v4010_v35 = vld [vmem:[%s9387_s2 + $0x138] sm:$0xff] }
 0x366   : > { %5884 = vmatprep.subr.bf16.mxu0 %v9784_v41  ;;  %v5894_v22 = vpack.c.bf16 %v4011_v32, %v4010_v35  ;;  %v4017_v35 = vld [vmem:[%s9387_s2 + $0x170] sm:$0xff] }
 0x367   : > { %2375 = vrot.lane.b32.xlu0 %v8737_v1, %s6673_s15 }
 0x369   : > { %5886 = vmatpush1.bf16.msra.mxu0 %v5885_v16  ;;  %v4012_v16 = vld [vmem:[%s9387_s2 + $0x148] sm:$0xff] }
 0x36a   : > { %5887 = vmatprep.subr.bf16.mxu0 %v9784_v41  ;;  %v5897_v63 = vpack.c.bf16 %v4013_v21, %v4012_v16  ;;  %v4019_v16 = vld [vmem:[%s9387_s2 + $0x180] sm:$0xff] }
 0x36b   : > { %1445 = vrot.lane.b32.xlu0 %v10262_v54, %s6673_s15 }
 0x36d   : > { %5889 = vmatpush1.bf16.msra.mxu0 %v5888_v0  ;;  %v4014_v0 = vld [vmem:[%s9387_s2 + $0x158] sm:$0xff] }
 0x36e   : > { %5890 = vmatprep.subr.bf16.mxu0 %v9784_v41  ;;  %v5900_v36 = vpack.c.bf16 %v4015_v56, %v4014_v0  ;;  %v4021_v0 = vld [vmem:[%s9387_s2 + $0x190] sm:$0xff] }
 0x371   : > { %5892 = vmatpush1.bf16.msra.mxu0 %v5891_v9  ;;  %v4016_v9 = vld [vmem:[%s9387_s2 + $0x168] sm:$0xff] }
 0x372   : > { %5893 = vmatprep.subr.bf16.mxu0 %v9784_v41  ;;  %v5903_v32 = vpack.c.bf16 %v4017_v35, %v4016_v9  ;;  %v4023_v9 = vld [vmem:[%s9387_s2 + $0x1a0] sm:$0xff] }
 0x375   : > { %5895 = vmatpush1.bf16.msra.mxu0 %v5894_v22  ;;  %v4018_v22 = vld [vmem:[%s9387_s2 + $0x178] sm:$0xff] }
 0x376   : > { %5896 = vmatprep.subr.bf16.mxu0 %v9784_v41  ;;  %v5906_v21 = vpack.c.bf16 %v4019_v16, %v4018_v22  ;;  %v4025_v22 = vld [vmem:[%s9387_s2 + $0x1b0] sm:$0xff] }
 0x379   : > { %5898 = vmatpush1.bf16.msra.mxu0 %v5897_v63  ;;  %v4020_v63 = vld [vmem:[%s9387_s2 + $0x188] sm:$0xff] }
 0x37a   : > { %5899 = vmatprep.subr.bf16.mxu0 %v9784_v41  ;;  %v5909_v56 = vpack.c.bf16 %v4021_v0, %v4020_v63  ;;  %v4027_v63 = vld [vmem:[%s9387_s2 + $0x1c0] sm:$0xff] }
 0x37d   : > { %5901 = vmatpush1.bf16.msra.mxu0 %v5900_v36  ;;  %v4022_v36 = vld [vmem:[%s9387_s2 + $0x198] sm:$0xff] }
 0x37e   : > { %5902 = vmatprep.subr.bf16.mxu0 %v9784_v41  ;;  %v5912_v35 = vpack.c.bf16 %v4023_v9, %v4022_v36  ;;  %v4028_v36 = vld [vmem:[%s9387_s2 + $0x1c8] sm:$0xff] }
 0x381   : > { %5904 = vmatpush1.bf16.msra.mxu0 %v5903_v32  ;;  %v4024_v32 = vld [vmem:[%s9387_s2 + $0x1a8] sm:$0xff] }
 0x382   : > { %5905 = vmatprep.subr.bf16.mxu0 %v9784_v41  ;;  %v5915_v16 = vpack.c.bf16 %v4025_v22, %v4024_v32 }
 0x385   : > { %5907 = vmatpush1.bf16.msra.mxu0 %v5906_v21  ;;  %v4026_v21 = vld [vmem:[%s9387_s2 + $0x1b8] sm:$0xff] }
 0x386   : > { %5908 = vmatprep.subr.bf16.mxu0 %v9784_v41  ;;  %v5918_v0 = vpack.c.bf16 %v4027_v63, %v4026_v21 }
 0x389   : > { %5910 = vmatpush1.bf16.msra.mxu0 %v5909_v56  ;;  %v9782_v56 = vmov 0.0  }
 0x38a   : > { %5911 = vmatprep.subr.bf16.mxu0 %v9784_v41 }
 0x38d   : > { %5913 = vmatpush1.bf16.msra.mxu0 %v5912_v35 }
 0x38e   : > { %5914 = vmatprep.subr.bf16.mxu0 %v9784_v41 }
 0x391   : > { %5916 = vmatpush1.bf16.msra.mxu0 %v5915_v16 }
 0x392   : > { %5917 = vmatprep.subr.bf16.mxu0 %v9784_v41 }
 0x395   : > { %5919 = vmatpush1.bf16.msra.mxu0 %v5918_v0 }
 0x396   : > { %2486 = vmatprep.subr.mxu0 %v9782_v56 }
 0x399   : > { %v2378_v9 = vpop.permute.xlu1 %2377  ;;  %2487 = vmatpush1.msra.mxu0 %v4028_v36 }
 0x39a   : > { %5920 = vmatprep.subr.bf16.mxu0 %v9784_v41  ;;  %v10271_v41 = vld [vmem:[#allocation22_spill] sm:$0xff] }
 0x39d   : > { %v1444_v32 = vpop.permute.xlu1 %1443 }
 0x3a1   : > { %v1448_v56 = vpop.permute.xlu1 %1447 }
 0x3d5   : > { %v2374_v35 = vpop.permute.xlu0 %2373 }
 0x3d9   : > { %v2376_v22 = vpop.permute.xlu0 %2375 }
 0x3da   : > { %v2379_v16 = vsel %vm1449_vm0, %v2374_v35, %v2376_v22  ;;  %v2380_v21 = vsel %vm1449_vm0, %v2376_v22, %v2378_v9 }
 0x3db   : > { %v8842_v63 = vmax.f32 %v8726_v20, %v2379_v16  ;;  %v8845_v0 = vmax.f32 %v8737_v1, %v2380_v21  ;;  %v8864_v1 = vld [vmem:[%s6994_s20 + $0x68] sm:$0xff]  ;;  %v8868_v16 = vld [vmem:[%s6994_s20 + $0x60] sm:$0xff]  ;;  %v10267_v21 = vld [vmem:[#allocation14_spill] sm:$0xff] }
 0x3dc   : > { %2922 = vmatprep.mubr.f32.mxu1 %v8864_v1 }
 0x3dd   : > { %2389 = vrot.lane.b32.xlu1 %v8845_v0, %s6676_s30  ;;  %2387 = vrot.lane.b32.xlu0 %v8842_v63, %s6676_s30  ;;  %v1446_v36 = vpop.permute.xlu0 %1445 }
 0x3de   : > { %v1450_v35 = vsel %vm1449_vm0, %v1444_v32, %v1446_v36  ;;  %v1451_v9 = vsel %vm1449_vm0, %v1446_v36, %v1448_v56  ;;  %2923 = vmatmul.mubr.f32.vlgmr.msra.gmra.mrb[18].mxu1 %v8868_v16  ;;  %v10263_v56 = vld [vmem:[#allocation6_spill] sm:$0xff]  ;;  %v10266_v32 = vld [vmem:[#allocation12_spill] sm:$0xff] }
 0x3df   : > { %v8854_v22 = vmax.f32 %v8556_v2, %v1450_v35  ;;  %v8857_v20 = vmax.f32 %v10262_v54, %v1451_v9  ;;  %6317 = vmatpush3.bf16.msra.mxu1 %v10263_v56  ;;  %3143 = vmatprep.mubr.f32.mxu1 %v8864_v1  ;;  %v10264_v2 = vld [vmem:[#allocation8_spill] sm:$0xff]  ;;  %v10265_v54 = vld [vmem:[#allocation10_spill] sm:$0xff] }
 0x3e0   : > { %6319 = vmatprep.subr.bf16.mxu1 %v10264_v2  ;;  %v10268_v36 = vld [vmem:[#allocation16_spill] sm:$0xff]  ;;  %v10269_v35 = vld [vmem:[#allocation18_spill] sm:$0xff] }
 0x3e1   : > { %1460 = vrot.lane.b32.xlu1 %v8857_v20, %s6676_s30  ;;  %1458 = vrot.lane.b32.xlu0 %v8854_v22, %s6676_s30  ;;  %v10270_v9 = vld [vmem:[#allocation20_spill] sm:$0xff] }
 0x3e3   : > { %6321 = vmatpush3.bf16.msra.mxu1 %v10265_v54 }
 0x3e4   : > { %6323 = vmatprep.subr.bf16.mxu1 %v10266_v32 }
 0x3e7   : > { %6325 = vmatpush3.bf16.msra.mxu1 %v10267_v21 }
 0x3e8   : > { %6327 = vmatprep.subr.bf16.mxu1 %v10268_v36 }
 0x3eb   : > { %6329 = vmatpush3.bf16.msra.mxu1 %v10269_v35 }
 0x3ec   : > { %6331 = vmatprep.subr.bf16.mxu1 %v10270_v9 }
 0x3ef   : > { %6333 = vmatpush3.bf16.msra.mxu1 %v10271_v41 }
 0x3f0   : > { %6335 = vmatprep.subr.bf16.mxu1 %v10272_v8 }
 0x3f3   : > { %6337 = vmatpush3.bf16.msra.mxu1 %v10273_v26 }
 0x3f4   : > { %6339 = vmatprep.subr.bf16.mxu1 %v10274_v43 }
 0x3f7   : > { %6341 = vmatpush3.bf16.msra.mxu1 %v10275_v37 }
 0x3f8   : > { %6343 = vmatprep.subr.bf16.mxu1 %v10276_v11 }
 0x3fb   : > { %6345 = vmatpush3.bf16.msra.mxu1 %v10277_v58 }
 0x3fc   : > { %6411 = vmatprep.subr.bf16.mxu1 %v10278_v23 }
 0x3fe   : > { %3144 = vmatmul.mubr.f32.vlgmr.msra.gmra.mrb[20].mxu1 %v8868_v16 }
 0x3ff   : > { %6413 = vmatpush3.bf16.msra.mxu1 %v10279_v6  ;;  %3284 = vmatprep.mubr.f32.mxu1 %v10280_v12 }
 0x400   : > { %6415 = vmatprep.subr.bf16.mxu1 %v10281_v52 }
 0x403   : > { %6417 = vmatpush3.bf16.msra.mxu1 %v10282_v44 }
 0x404   : > { %6419 = vmatprep.subr.bf16.mxu1 %v10283_v39 }
 0x407   : > { %6421 = vmatpush3.bf16.msra.mxu1 %v10284_v61 }
 0x408   : > { %6423 = vmatprep.subr.bf16.mxu1 %v10285_v27 }
 0x40b   : > { %6425 = vmatpush3.bf16.msra.mxu1 %v10286_v25 }
 0x40c   : > { %6427 = vmatprep.subr.bf16.mxu1 %v10287_v4 }
 0x40f   : > { %6429 = vmatpush3.bf16.msra.mxu1 %v10288_v24 }
 0x410   : > { %6431 = vmatprep.subr.bf16.mxu1 %v10289_v30 }
 0x413   : > { %6433 = vmatpush3.bf16.msra.mxu1 %v10290_v47 }
 0x414   : > { %6435 = vmatprep.subr.bf16.mxu1 %v10291_v7 }
 0x417   : > { %6437 = vmatpush3.bf16.msra.mxu1 %v10292_v53 }
 0x418   : > { %6439 = vmatprep.subr.bf16.mxu1 %v10293_v62 }
 0x41b   : > { %6441 = vmatpush3.bf16.msra.mxu1 %v10294_v55 }
 0x41c   : > { %6507 = vmatprep.subr.bf16.mxu1 %v10295_v51 }
 0x41e   : > { %3285 = vmatmul.mubr.f32.vlgmr.msra.gmra.mrb[22].mxu1 %v8566_v49 }
 0x41f   : > { %6509 = vmatpush3.bf16.msra.mxu1 %v10296_v59 }
 0x420   : > { %6511 = vmatprep.subr.bf16.mxu1 %v10297_v40 }
 0x44f   : > { %v2390_v31 = vpop.permute.xlu1 %2389  ;;  %v2388_v45 = vpop.permute.xlu0 %2387 }
 0x450   : > { %v2395_v46 = vmax.f32 %v8845_v0, %v2390_v31  ;;  %v2391_v34 = vsel %vm1462_vm1, %v2388_v45, %v2390_v31  ;;  %v10298_v0 = vld [vmem:[#allocation74_spill] sm:$0xff]  ;;  %v5924_v31 = vpack.c.bf16 %v1471_v15, %v1470_v3  ;;  %v1474_v3 = vld [vmem:[%s9387_s2 + $0x30] sm:$0xff] }
 0x451   : > { %v2394_v38 = vmax.f32 %v8842_v63, %v2391_v34  ;;  %6513 = vmatpush3.bf16.msra.mxu1 %v10298_v0  ;;  %v1472_v34 = vld [vmem:[%s9387_s2 + $0x20] sm:$0xff]  ;;  %v1475_v15 = vld [vmem:[%s9387_s2 + $0x38] sm:$0xff] }
 0x452   : > { %4029 = vmatprep.mubr.msk.f32.mxu0 %vm2426_vm2, %v2395_v46  ;;  %6515 = vmatprep.subr.bf16.mxu1 %v10299_v19  ;;  %v1473_v46 = vld [vmem:[%s9387_s2 + $0x28] sm:$0xff] }
 0x453   : > { %v8925_v5 = vpop.permute.xlu1 %1460  ;;  %2495 = vmatmul.mubr.f32.vlgmr.msra.gmra.mrb[14].mxu0 %v2394_v38  ;;  %v10301_v38 = vld [vmem:[#allocation78_spill] sm:$0xff]  ;;  %v5927_v63 = vpack.c.bf16 %v1473_v46, %v1472_v34  ;;  %v1477_v34 = vld [vmem:[%s9387_s2 + $0x48] sm:$0xff] }
 0x454   : > { %v1467_v45 = vmax.f32 %v8857_v20, %v8925_v5  ;;  %5922 = vmatpush1.bf16.msra.mxu0 %v5921_v29  ;;  %v10302_v29 = vld [vmem:[#allocation80_spill] sm:$0xff]  ;;  %v10303_v20 = vld [vmem:[#allocation82_spill] sm:$0xff] }
 0x455   : > { %5923 = vmatprep.subr.bf16.mxu0 %v10300_v50  ;;  %6517 = vmatpush3.bf16.msra.mxu1 %v10301_v38  ;;  %v10305_v46 = vld [vmem:[#allocation86_spill] sm:$0xff] }
 0x456   : > { %4030 = vmatprep.mubr.msk.f32.mxu0 %vm2426_vm2, %v1467_v45  ;;  %6519 = vmatprep.subr.bf16.mxu1 %v10302_v29  ;;  %v5930_v45 = vpack.c.bf16 %v1475_v15, %v1474_v3  ;;  %v1479_v3 = vld [vmem:[%s9387_s2 + $0x58] sm:$0xff] }
 0x457   : > { %v10307_v15 = vld [vmem:[#allocation90_spill] sm:$0xff] }
 0x458   : > { %5925 = vmatpush1.bf16.msra.mxu0 %v5924_v31  ;;  %v1476_v31 = vld [vmem:[%s9387_s2 + $0x40] sm:$0xff] }
 0x459   : > { %5926 = vmatprep.subr.bf16.mxu0 %v10300_v50  ;;  %6521 = vmatpush3.bf16.msra.mxu1 %v10303_v20  ;;  %v5933_v14 = vpack.c.bf16 %v1477_v34, %v1476_v31  ;;  %v1481_v31 = vld [vmem:[%s9387_s2 + $0x68] sm:$0xff]  ;;  %v10309_v34 = vld [vmem:[#allocation94_spill] sm:$0xff] }
 0x45a   : > { %6523 = vmatprep.subr.bf16.mxu1 %v10304_v42 }
 0x45c   : > { %5928 = vmatpush1.bf16.msra.mxu0 %v5927_v63  ;;  %v1478_v63 = vld [vmem:[%s9387_s2 + $0x50] sm:$0xff] }
 0x45d   : > { %5929 = vmatprep.subr.bf16.mxu0 %v10300_v50  ;;  %6525 = vmatpush3.bf16.msra.mxu1 %v10305_v46  ;;  %v5936_v28 = vpack.c.bf16 %v1479_v3, %v1478_v63  ;;  %v1483_v63 = vld [vmem:[%s9387_s2 + $0x78] sm:$0xff] }
 0x45e   : > { %6527 = vmatprep.subr.bf16.mxu1 %v10306_v33  ;;  %v8985_v3 = vld [vmem:[%s6994_s20 + $0x78] sm:$0xff] }
 0x45f   : > { %10311 = vst [vmem:[#allocation154_spill] sm:$0xff] %v8985_v3  ;;  %3428 = vmatprep.mubr.f32.mxu1 %v8985_v3 }
 0x460   : > { %5931 = vmatpush1.bf16.msra.mxu0 %v5930_v45  ;;  %v1480_v45 = vld [vmem:[%s9387_s2 + $0x60] sm:$0xff] }
 0x461   : > { %5932 = vmatprep.subr.bf16.mxu0 %v10300_v50  ;;  %6529 = vmatpush3.bf16.msra.mxu1 %v10307_v15  ;;  %v5939_v18 = vpack.c.bf16 %v1481_v31, %v1480_v45  ;;  %v8990_v45 = vld [vmem:[%s6994_s20 + $0x70] sm:$0xff]  ;;  %v1484_v31 = vld [vmem:[%s9387_s2 + $0x80] sm:$0xff] }
 0x462   : > { %6531 = vmatprep.subr.bf16.mxu1 %v10308_v10  ;;  %10313 = vst [vmem:[#allocation101_spill] sm:$0xff] %v8990_v45  ;;  %v5945_v3 = vpack.c.bf16 %v1485_v57, %v1484_v31  ;;  %v1489_v57 = vld [vmem:[%s9387_s2 + $0xa8] sm:$0xff]  ;;  %v1490_v31 = vld [vmem:[%s9387_s2 + $0xb0] sm:$0xff] }
 0x464   : > { %5934 = vmatpush1.bf16.msra.mxu0 %v5933_v14  ;;  %v1482_v14 = vld [vmem:[%s9387_s2 + $0x70] sm:$0xff] }
 0x465   : > { %5935 = vmatprep.subr.bf16.mxu0 %v10300_v50  ;;  %6533 = vmatpush3.bf16.msra.mxu1 %v10309_v34 }
 0x466   : > { %6535 = vmatprep.subr.bf16.mxu1 %v10310_v60 }
 0x468   : > { %5937 = vmatpush1.bf16.msra.mxu0 %v5936_v28  ;;  %v5942_v28 = vpack.c.bf16 %v1483_v63, %v1482_v14  ;;  %v1487_v14 = vld [vmem:[%s9387_s2 + $0x98] sm:$0xff] }
 0x469   : > { %5938 = vmatprep.subr.bf16.mxu0 %v10300_v50  ;;  %6537 = vmatpush3.bf16.msra.mxu1 %v10312_v48 }
 0x46a   : > { %6538 = vmatprep.subr.bf16.mxu1 %v10300_v50 }
 0x46c   : > { %5940 = vmatpush1.bf16.msra.mxu0 %v5939_v18  ;;  %3429 = vmatmul.mubr.f32.vlgmr.msra.gmra.mrb[24].mxu1 %v8990_v45  ;;  %v1486_v18 = vld [vmem:[%s9387_s2 + $0x90] sm:$0xff]  ;;  %v1488_v45 = vld [vmem:[%s9387_s2 + $0xa0] sm:$0xff] }
 0x46d   : > { %5941 = vmatprep.subr.bf16.mxu0 %v10300_v50  ;;  %v5948_v63 = vpack.c.bf16 %v1487_v14, %v1486_v18  ;;  %v1492_v14 = vld [vmem:[%s9387_s2 + $0xc0] sm:$0xff] }
 0x470   : > { %5943 = vmatpush1.bf16.msra.mxu0 %v5942_v28  ;;  %v5951_v28 = vpack.c.bf16 %v1489_v57, %v1488_v45  ;;  %v1493_v45 = vld [vmem:[%s9387_s2 + $0xc8] sm:$0xff]  ;;  %v1494_v57 = vld [vmem:[%s9387_s2 + $0xd0] sm:$0xff] }
 0x471   : > { %5944 = vmatprep.subr.bf16.mxu0 %v10300_v50 }
 0x474   : > { %5946 = vmatpush1.bf16.msra.mxu0 %v5945_v3  ;;  %v1491_v3 = vld [vmem:[%s9387_s2 + $0xb8] sm:$0xff] }
 0x475   : > { %5947 = vmatprep.subr.bf16.mxu0 %v10300_v50  ;;  %v5954_v18 = vpack.c.bf16 %v1491_v3, %v1490_v31  ;;  %v1459_v3 = vpop.permute.xlu0 %1458 }
 0x476   : > { %v1463_v17 = vsel %vm1462_vm1, %v1459_v3, %v8925_v5  ;;  %v6645_v5 = vld [vmem:[%s6994_s20 + $0x48] sm:$0xff] }
 0x478   : > { %5949 = vmatpush1.bf16.msra.mxu0 %v5948_v63  ;;  %v5957_v63 = vpack.c.bf16 %v1493_v45, %v1492_v14  ;;  %v1496_v14 = vld [vmem:[%s9387_s2 + $0xe0] sm:$0xff]  ;;  %v1466_v45 = vmax.f32 %v8854_v22, %v1463_v17 }
 0x479   : > { %5950 = vmatprep.subr.bf16.mxu0 %v10300_v50  ;;  %v10337_v17 = vld [vmem:[#allocation47_spill] sm:$0xff] }
 0x47a   : > { %v10345_v22 = vld [vmem:[#allocation63_spill] sm:$0xff] }
 0x47c   : > { %5952 = vmatpush1.bf16.msra.mxu0 %v5951_v28  ;;  %v1495_v28 = vld [vmem:[%s9387_s2 + $0xd8] sm:$0xff] }
 0x47d   : > { %5953 = vmatprep.subr.bf16.mxu0 %v10300_v50  ;;  %v5960_v31 = vpack.c.bf16 %v1495_v28, %v1494_v57  ;;  %v10357_v57 = vld [vmem:[#allocation87_spill] sm:$0xff] }
 0x480   : > { %5955 = vmatpush1.bf16.msra.mxu0 %v5954_v18  ;;  %v10314_v18 = vmov 0.0  }
 0x481   : > { %5956 = vmatprep.subr.bf16.mxu0 %v10300_v50 }
 0x484   : > { %5958 = vmatpush1.bf16.msra.mxu0 %v5957_v63  ;;  %v10356_v63 = vld [vmem:[#allocation85_spill] sm:$0xff] }
 0x485   : > { %5959 = vmatprep.subr.bf16.mxu0 %v10300_v50 }
 0x488   : > { %5961 = vmatpush1.bf16.msra.mxu0 %v5960_v31  ;;  %v10358_v31 = vld [vmem:[#allocation89_spill] sm:$0xff] }
 0x489   : > { %2559 = vmatprep.subr.mxu0 %v10314_v18 }
 0x48c   : > { %2560 = vmatpush1.msra.mxu0 %v1496_v14  ;;  %v10359_v14 = vld [vmem:[#allocation91_spill] sm:$0xff] }
 0x48d   : > { %2568 = vmatmul.mubr.f32.vlgmr.msra.gmra.mrb[16].mxu0 %v1466_v45  ;;  %6027 = vmatprep.subr.bf16.mxu0 %v10259_v13  ;;  %v10343_v13 = vld [vmem:[#allocation59_spill] sm:$0xff] }
 0x48e   : > { %6029 = vmatpush3.bf16.msra.mxu0 %v10263_v56  ;;  %2708 = vmatprep.mubr.f32.mxu0 %v10280_v12  ;;  %v10321_v12 = vld [vmem:[#allocation15_spill] sm:$0xff] }
 0x48f   : > { %6031 = vmatprep.subr.bf16.mxu0 %v10264_v2  ;;  %v10347_v56 = vld [vmem:[#allocation67_spill] sm:$0xff] }
 0x492   : > { %6033 = vmatpush3.bf16.msra.mxu0 %v10265_v54  ;;  %v10348_v54 = vld [vmem:[#allocation69_spill] sm:$0xff] }
 0x493   : > { %6035 = vmatprep.subr.bf16.mxu0 %v10266_v32  ;;  %v6647_v32 = vld [vmem:[%s6994_s20 + $0x58] sm:$0xff] }
 0x496   : > { %6037 = vmatpush3.bf16.msra.mxu0 %v10267_v21 }
 0x497   : > { %6039 = vmatprep.subr.bf16.mxu0 %v10268_v36  ;;  %v10349_v36 = vld [vmem:[#allocation71_spill] sm:$0xff] }
 0x49a   : > { %6041 = vmatpush3.bf16.msra.mxu0 %v10269_v35 }
 0x49b   : > { %6043 = vmatprep.subr.bf16.mxu0 %v10270_v9 }
 0x49e   : > { %6045 = vmatpush3.bf16.msra.mxu0 %v10271_v41 }
 0x49f   : > { %6047 = vmatprep.subr.bf16.mxu0 %v10272_v8 }
 0x4a2   : > { %6049 = vmatpush3.bf16.msra.mxu0 %v10273_v26  ;;  %v10344_v26 = vld [vmem:[#allocation61_spill] sm:$0xff] }
 0x4a3   : > { %6051 = vmatprep.subr.bf16.mxu0 %v10274_v43  ;;  %v10341_v43 = vld [vmem:[#allocation55_spill] sm:$0xff] }
 0x4a6   : > { %6053 = vmatpush3.bf16.msra.mxu0 %v10275_v37 }
 0x4a7   : > { %6055 = vmatprep.subr.bf16.mxu0 %v10276_v11  ;;  %v10340_v11 = vld [vmem:[#allocation53_spill] sm:$0xff] }
 0x4aa   : > { %6057 = vmatpush3.bf16.msra.mxu0 %v10277_v58  ;;  %v10339_v58 = vld [vmem:[#allocation51_spill] sm:$0xff] }
 0x4ab   : > { %6123 = vmatprep.subr.bf16.mxu0 %v10278_v23  ;;  %v10325_v23 = vld [vmem:[#allocation23_spill] sm:$0xff] }
 0x4ad   : > { %2709 = vmatmul.mubr.f32.vlgmr.msra.gmra.mrb[18].mxu0 %v8566_v49  ;;  %v10338_v49 = vld [vmem:[#allocation49_spill] sm:$0xff] }
 0x4ae   : > { %6125 = vmatpush3.bf16.msra.mxu0 %v10279_v6  ;;  %2849 = vmatprep.mubr.f32.mxu0 %v6645_v5  ;;  %v10334_v6 = vld [vmem:[#allocation41_spill] sm:$0xff] }
 0x4af   : > { %6127 = vmatprep.subr.bf16.mxu0 %v10281_v52  ;;  %v10333_v52 = vld [vmem:[#allocation39_spill] sm:$0xff] }
 0x4b1   : > { %v9125_v37 = vpop.f32.mrb[18].mxu1 }
 0x4b2   : > { %6129 = vmatpush3.bf16.msra.mxu0 %v10282_v44  ;;  %v10324_v44 = vld [vmem:[#allocation21_spill] sm:$0xff] }
 0x4b3   : > { %6131 = vmatprep.subr.bf16.mxu0 %v10283_v39  ;;  %v10323_v39 = vld [vmem:[#allocation19_spill] sm:$0xff] }
 0x4b6   : > { %6133 = vmatpush3.bf16.msra.mxu0 %v10284_v61  ;;  %v10322_v61 = vld [vmem:[#allocation17_spill] sm:$0xff] }
 0x4b7   : > { %6135 = vmatprep.subr.bf16.mxu0 %v10285_v27  ;;  %v6646_v27 = vld [vmem:[%s6994_s20 + $0x40] sm:$0xff] }
 0x4ba   : > { %6137 = vmatpush3.bf16.msra.mxu0 %v10286_v25  ;;  %v10320_v25 = vld [vmem:[#allocation13_spill] sm:$0xff] }
 0x4bb   : > { %6139 = vmatprep.subr.bf16.mxu0 %v10287_v4  ;;  %v10330_v4 = vld [vmem:[#allocation33_spill] sm:$0xff] }
 0x4be   : > { %6141 = vmatpush3.bf16.msra.mxu0 %v10288_v24  ;;  %v10329_v24 = vld [vmem:[#allocation31_spill] sm:$0xff] }
 0x4bf   : > { %6143 = vmatprep.subr.bf16.mxu0 %v10289_v30  ;;  %v10319_v30 = vld [vmem:[#allocation11_spill] sm:$0xff] }
 0x4c2   : > { %6145 = vmatpush3.bf16.msra.mxu0 %v10290_v47  ;;  %v10332_v47 = vld [vmem:[#allocation37_spill] sm:$0xff] }
 0x4c3   : > { %6147 = vmatprep.subr.bf16.mxu0 %v10291_v7  ;;  %v10331_v7 = vld [vmem:[#allocation35_spill] sm:$0xff] }
 0x4c6   : > { %6149 = vmatpush3.bf16.msra.mxu0 %v10292_v53  ;;  %v10315_v53 = vld [vmem:[#allocation3_spill] sm:$0xff] }
 0x4c7   : > { %6151 = vmatprep.subr.bf16.mxu0 %v10293_v62  ;;  %v10328_v62 = vld [vmem:[#allocation29_spill] sm:$0xff] }
 0x4ca   : > { %6153 = vmatpush3.bf16.msra.mxu0 %v10294_v55  ;;  %v10318_v55 = vld [vmem:[#allocation9_spill] sm:$0xff] }
 0x4cb   : > { %6219 = vmatprep.subr.bf16.mxu0 %v10295_v51  ;;  %v10317_v51 = vld [vmem:[#allocation7_spill] sm:$0xff] }
 0x4cd   : > { %2850 = vmatmul.mubr.f32.vlgmr.msra.gmra.mrb[20].mxu0 %v6646_v27  ;;  %v10360_v27 = vld [vmem:[#allocation93_spill] sm:$0xff] }
 0x4ce   : > { %6221 = vmatpush3.bf16.msra.mxu0 %v10296_v59  ;;  %2993 = vmatprep.mubr.f32.mxu0 %v8864_v1  ;;  %v10327_v59 = vld [vmem:[#allocation27_spill] sm:$0xff] }
 0x4cf   : > { %6223 = vmatprep.subr.bf16.mxu0 %v10297_v40  ;;  %v10316_v40 = vld [vmem:[#allocation5_spill] sm:$0xff] }
 0x4d2   : > { %6225 = vmatpush3.bf16.msra.mxu0 %v10298_v0 }
 0x4d3   : > { %6227 = vmatprep.subr.bf16.mxu0 %v10299_v19 }
 0x4d6   : > { %6229 = vmatpush3.bf16.msra.mxu0 %v10301_v38  ;;  %v10350_v38 = vld [vmem:[#allocation73_spill] sm:$0xff] }
 0x4d7   : > { %6231 = vmatprep.subr.bf16.mxu0 %v10302_v29  ;;  %v10351_v29 = vld [vmem:[#allocation75_spill] sm:$0xff] }
 0x4da   : > { %6233 = vmatpush3.bf16.msra.mxu0 %v10303_v20 }
 0x4db   : > { %6235 = vmatprep.subr.bf16.mxu0 %v10304_v42  ;;  %v10336_v42 = vld [vmem:[#allocation45_spill] sm:$0xff] }
 0x4de   : > { %6237 = vmatpush3.bf16.msra.mxu0 %v10305_v46  ;;  %v10352_v46 = vld [vmem:[#allocation77_spill] sm:$0xff] }
 0x4df   : > { %6239 = vmatprep.subr.bf16.mxu0 %v10306_v33  ;;  %v10326_v33 = vld [vmem:[#allocation25_spill] sm:$0xff] }
 0x4e2   : > { %6241 = vmatpush3.bf16.msra.mxu0 %v10307_v15  ;;  %v10354_v15 = vld [vmem:[#allocation81_spill] sm:$0xff] }
 0x4e3   : > { %6243 = vmatprep.subr.bf16.mxu0 %v10308_v10  ;;  %v10342_v10 = vld [vmem:[#allocation57_spill] sm:$0xff] }
 0x4e6   : > { %6245 = vmatpush3.bf16.msra.mxu0 %v10309_v34  ;;  %v10355_v34 = vld [vmem:[#allocation83_spill] sm:$0xff] }
 0x4e7   : > { %6247 = vmatprep.subr.bf16.mxu0 %v10310_v60  ;;  %v9128_v60 = vpop.f32.mrb[19].mxu1 }
 0x4e8   : > { %v4627_v2 = vpop.f32.mrb[20].mxu1 }
 0x4e9   : > { %v4628_v21 = vpop.f32.mrb[21].mxu1 }
 0x4ea   : > { %6249 = vmatpush3.bf16.msra.mxu0 %v10312_v48  ;;  %v10335_v48 = vld [vmem:[#allocation43_spill] sm:$0xff]  ;;  %v4629_v35 = vadd.f32 %v4628_v21, %v4627_v2  ;;  %v10392_v21 = vld [vmem:[#allocation128_spill] sm:$0xff] }
 0x4eb   : > { %6251 = vmatprep.subr.bf16.mxu0 %v10315_v53  ;;  %v10361_v53 = vld [vmem:[#allocation95_spill] sm:$0xff] }
 0x4ed   : > { %2994 = vmatmul.mubr.f32.vlgmr.msra.gmra.mrb[22].mxu0 %v8868_v16 }
 0x4ee   : > { %6253 = vmatpush1.bf16.msra.mxu0 %v10316_v40  ;;  %3072 = vmatprep.mubr.f32.mxu0 %v8864_v1  ;;  %v10346_v1 = vld [vmem:[#allocation65_spill] sm:$0xff] }
 0x4ef   : > { %6255 = vmatprep.subr.bf16.mxu0 %v10317_v51  ;;  %v10362_v40 = vld [vmem:[#allocation97_spill] sm:$0xff]  ;;  %v10363_v51 = vld [vmem:[#allocation99_spill] sm:$0xff] }
 0x4f1   : > { %v4662_v9 = vpop.f32.mrb[22].mxu1 }
 0x4f2   : > { %6257 = vmatpush1.bf16.msra.mxu0 %v10318_v55  ;;  %v4663_v0 = vpop.f32.mrb[23].mxu1  ;;  %v10364_v55 = vld [vmem:[#allocation100_spill] sm:$0xff] }
 0x4f3   : > { %6259 = vmatprep.subr.bf16.mxu0 %v10319_v30  ;;  %v4664_v19 = vadd.f32 %v4663_v0, %v4662_v9  ;;  %v10365_v30 = vld [vmem:[#allocation102_spill] sm:$0xff]  ;;  %v10395_v9 = vld [vmem:[#allocation131_spill] sm:$0xff]  ;;  %v10396_v0 = vld [vmem:[#allocation132_spill] sm:$0xff] }
 0x4f5   : > { %v3287_v20 = vadd.f32 %v4664_v19, %v4629_v35  ;;  %v10394_v35 = vld [vmem:[#allocation130_spill] sm:$0xff]  ;;  %v10397_v19 = vld [vmem:[#allocation133_spill] sm:$0xff] }
 0x4f6   : > { %6261 = vmatpush1.bf16.msra.mxu0 %v10320_v25  ;;  %v10366_v25 = vld [vmem:[#allocation103_spill] sm:$0xff] }
 0x4f7   : > { %6263 = vmatprep.subr.bf16.mxu0 %v10321_v12  ;;  %v10367_v12 = vld [vmem:[#allocation104_spill] sm:$0xff] }
 0x4fa   : > { %6265 = vmatpush1.bf16.msra.mxu0 %v10322_v61  ;;  %v10368_v61 = vld [vmem:[#allocation105_spill] sm:$0xff] }
 0x4fb   : > { %6267 = vmatprep.subr.bf16.mxu0 %v10323_v39  ;;  %v10369_v39 = vld [vmem:[#allocation106_spill] sm:$0xff] }
 0x4fe   : > { %6269 = vmatpush1.bf16.msra.mxu0 %v10324_v44  ;;  %v10370_v44 = vld [vmem:[#allocation107_spill] sm:$0xff] }
 0x4ff   : > { %6271 = vmatprep.subr.bf16.mxu0 %v10325_v23  ;;  %v10371_v23 = vld [vmem:[#allocation108_spill] sm:$0xff] }
 0x502   : > { %6273 = vmatpush1.bf16.msra.mxu0 %v10326_v33  ;;  %v10372_v33 = vld [vmem:[#allocation109_spill] sm:$0xff] }
 0x503   : > { %6275 = vmatprep.subr.bf16.mxu0 %v10327_v59  ;;  %v10373_v59 = vld [vmem:[#allocation110_spill] sm:$0xff] }
 0x506   : > { %6277 = vmatpush1.bf16.msra.mxu0 %v10328_v62 }
 0x507   : > { %6279 = vmatprep.subr.bf16.mxu0 %v10329_v24 }
 0x50a   : > { %6281 = vmatpush1.bf16.msra.mxu0 %v10330_v4 }
 0x50b   : > { %6283 = vmatprep.subr.bf16.mxu0 %v10331_v7  ;;  %v10374_v7 = vld [vmem:[#allocation111_spill] sm:$0xff] }
 0x50e   : > { %6285 = vmatpush1.bf16.msra.mxu0 %v10332_v47  ;;  %v10375_v47 = vld [vmem:[#allocation112_spill] sm:$0xff] }
 0x50f   : > { %6287 = vmatprep.subr.bf16.mxu0 %v10333_v52  ;;  %v10376_v52 = vld [vmem:[#allocation113_spill] sm:$0xff] }
 0x512   : > { %6289 = vmatpush1.bf16.msra.mxu0 %v10334_v6  ;;  %v10377_v6 = vld [vmem:[#allocation114_spill] sm:$0xff] }
 0x513   : > { %6291 = vmatprep.subr.bf16.mxu0 %v10335_v48  ;;  %v10378_v48 = vld [vmem:[#allocation115_spill] sm:$0xff] }
 0x516   : > { %6293 = vmatpush1.bf16.msra.mxu0 %v10336_v42  ;;  %v10379_v42 = vld [vmem:[#allocation116_spill] sm:$0xff] }
 0x517   : > { %6295 = vmatprep.subr.bf16.mxu0 %v10337_v17  ;;  %v6648_v17 = vld [vmem:[%s6994_s20 + $0x50] sm:$0xff] }
 0x51a   : > { %6297 = vmatpush1.bf16.msra.mxu0 %v10338_v49  ;;  %v10380_v49 = vld [vmem:[#allocation117_spill] sm:$0xff] }
 0x51b   : > { %6299 = vmatprep.subr.bf16.mxu0 %v10339_v58  ;;  %v10381_v58 = vld [vmem:[#allocation154_spill] sm:$0xff] }
 0x51e   : > { %6301 = vmatpush1.bf16.msra.mxu0 %v10340_v11  ;;  %v10382_v11 = vld [vmem:[#allocation118_spill] sm:$0xff] }
 0x51f   : > { %6303 = vmatprep.subr.bf16.mxu0 %v10341_v43  ;;  %v10383_v43 = vld [vmem:[#allocation119_spill] sm:$0xff] }
 0x522   : > { %6305 = vmatpush1.bf16.msra.mxu0 %v10342_v10  ;;  %v10384_v10 = vld [vmem:[#allocation120_spill] sm:$0xff] }
 0x523   : > { %6307 = vmatprep.subr.bf16.mxu0 %v10343_v13  ;;  %v10385_v13 = vld [vmem:[#allocation121_spill] sm:$0xff] }
 0x526   : > { %6309 = vmatpush1.bf16.msra.mxu0 %v10344_v26  ;;  %v2496_v8 = vpop.f32.mrb[14].mxu0  ;;  %v10386_v26 = vld [vmem:[#allocation122_spill] sm:$0xff] }
 0x527   : > { %v2498_v41 = vpop.f32.mrb[15].mxu0  ;;  %6311 = vmatprep.subr.bf16.mxu0 %v10345_v22  ;;  %v10389_v22 = vld [vmem:[#allocation125_spill] sm:$0xff] }
 0x528   : > { %v10388_v41 = vld [vmem:[#allocation124_spill] sm:$0xff] }
 0x52a   : > { %6313 = vmatpush1.bf16.msra.mxu0 %v10346_v1  ;;  %v10390_v1 = vld [vmem:[#allocation126_spill] sm:$0xff] }
 0x52b   : > { %6347 = vmatprep.subr.bf16.mxu0 %v10347_v56 }
 0x52d   : > { %3073 = vmatmul.mubr.f32.vlgmr.msra.gmra.mrb[24].mxu0 %v8868_v16  ;;  %v10353_v16 = vld [vmem:[#allocation79_spill] sm:$0xff] }
 0x52e   : > { %6349 = vmatpush1.bf16.msra.mxu0 %v10348_v54  ;;  %3213 = vmatprep.mubr.f32.mxu0 %v6647_v32  ;;  %v10391_v32 = vld [vmem:[#allocation127_spill] sm:$0xff] }
 0x52f   : > { %6351 = vmatprep.subr.bf16.mxu0 %v10349_v36  ;;  %v10393_v36 = vld [vmem:[#allocation129_spill] sm:$0xff] }
 0x532   : > { %6353 = vmatpush1.bf16.msra.mxu0 %v10350_v38  ;;  %v10398_v38 = vld [vmem:[#allocation134_spill] sm:$0xff] }
 0x533   : > { %6355 = vmatprep.subr.bf16.mxu0 %v10351_v29  ;;  %v10399_v29 = vld [vmem:[#allocation135_spill] sm:$0xff] }
 0x536   : > { %6357 = vmatpush1.bf16.msra.mxu0 %v10352_v46  ;;  %v10401_v46 = vld [vmem:[#allocation137_spill] sm:$0xff] }
 0x537   : > { %6359 = vmatprep.subr.bf16.mxu0 %v10353_v16  ;;  %v10402_v16 = vld [vmem:[#allocation138_spill] sm:$0xff] }
 0x53a   : > { %6361 = vmatpush1.bf16.msra.mxu0 %v10354_v15  ;;  %v10403_v15 = vld [vmem:[#allocation139_spill] sm:$0xff] }
 0x53b   : > { %6363 = vmatprep.subr.bf16.mxu0 %v10355_v34  ;;  %v10404_v34 = vld [vmem:[#allocation140_spill] sm:$0xff] }
 0x53e   : > { %6365 = vmatpush1.bf16.msra.mxu0 %v10356_v63  ;;  %v10405_v63 = vld [vmem:[#allocation141_spill] sm:$0xff] }
 0x53f   : > { %6367 = vmatprep.subr.bf16.mxu0 %v10357_v57  ;;  %v4697_v28 = vpop.f32.mrb[24].mxu1  ;;  %v10406_v57 = vld [vmem:[#allocation142_spill] sm:$0xff] }
 0x540   : > { %v4698_v3 = vpop.f32.mrb[25].mxu1 }
 0x541   : > { %v4699_v45 = vadd.f32 %v4698_v3, %v4697_v28 }
 0x542   : > { %6369 = vmatpush1.bf16.msra.mxu0 %v10358_v31 }
 0x543   : > { %6371 = vmatprep.subr.bf16.mxu0 %v10359_v14  ;;  %v9150_v5 = vadd.f32 %v4699_v45, %v3287_v20  ;;  %v10400_v20 = vld [vmem:[#allocation136_spill] sm:$0xff]  ;;  %v10407_v14 = vld [vmem:[#allocation143_spill] sm:$0xff] }
 0x544   : > { %v10408_v45 = vld [vmem:[#allocation144_spill] sm:$0xff] }
 0x546   : > { %6373 = vmatpush1.bf16.msra.mxu0 %v10360_v27 }
 0x547   : > { %6375 = vmatprep.subr.bf16.mxu0 %v10361_v53  ;;  %v10409_v53 = vld [vmem:[#allocation145_spill] sm:$0xff] }
 0x54a   : > { %6377 = vmatpush1.bf16.msra.mxu0 %v10362_v40  ;;  %v10410_v40 = vld [vmem:[#allocation146_spill] sm:$0xff] }
 0x54b   : > { %6379 = vmatprep.subr.bf16.mxu0 %v10363_v51  ;;  %v10411_v51 = vld [vmem:[#allocation147_spill] sm:$0xff] }
 0x54e   : > { %6381 = vmatpush1.bf16.msra.mxu0 %v10364_v55  ;;  %v10412_v55 = vld [vmem:[#allocation101_spill] sm:$0xff] }
 0x54f   : > { %6383 = vmatprep.subr.bf16.mxu0 %v10365_v30 }
 0x552   : > { %6385 = vmatpush1.bf16.msra.mxu0 %v10366_v25 }
 0x553   : > { %6387 = vmatprep.subr.bf16.mxu0 %v10367_v12 }
 0x556   : > { %6389 = vmatpush1.bf16.msra.mxu0 %v10368_v61  ;;  %v10413_v61 = vld [vmem:[#allocation150_spill] sm:$0xff] }
 0x557   : > { %6391 = vmatprep.subr.bf16.mxu0 %v10369_v39  ;;  %v3439_v39 = vadd.f32 %v9150_v5, %v10413_v61  ;;  %v4035_v5 = vld [vmem:[%s9387_s2 + $0x1d0] sm:$0xff] }
 0x55a   : > { %6393 = vmatpush1.bf16.msra.mxu0 %v10370_v44 }
 0x55b   : > { %6395 = vmatprep.subr.bf16.mxu0 %v10371_v23 }
 0x55e   : > { %6397 = vmatpush1.bf16.msra.mxu0 %v10372_v33  ;;  %v3442_v33 = vmax.f32 %v3439_v39, 0.0 }
 0x55f   : > { %6399 = vmatprep.subr.bf16.mxu0 %v10373_v59 }
 0x560   : > { %v2569_v62 = vpop.f32.mrb[16].mxu0 }
 0x561   : > { %v9166_v24 = vadd.f32 %v2569_v62, %v2496_v8  ;;  %v2571_v4 = vpop.f32.mrb[17].mxu0  ;;  %v10387_v8 = vld [vmem:[#allocation123_spill] sm:$0xff] }
 0x562   : > { %6401 = vmatpush1.bf16.msra.mxu0 %v10374_v7  ;;  %v10414_v4 = vld [vmem:[#allocation148_spill] sm:$0xff] }
 0x563   : > { %6403 = vmatprep.subr.bf16.mxu0 %v10375_v47  ;;  %v3002_v7 = vadd.f32 %v9125_v37, %v10414_v4  ;;  %v10415_v47 = vld [vmem:[#allocation152_spill] sm:$0xff] }
 0x566   : > { %6405 = vmatpush1.bf16.msra.mxu0 %v10376_v52  ;;  %v3003_v52 = vadd.f32 %v9128_v60, %v10415_v47  ;;  %v4038_v60 = vld [vmem:[%s9387_s2 + $0x1e8] sm:$0xff] }
 0x567   : > { %6407 = vmatprep.subr.bf16.mxu0 %v10377_v6 }
 0x56a   : > { %6409 = vmatpush1.bf16.msra.mxu0 %v10378_v48 }
 0x56b   : > { %6443 = vmatprep.subr.bf16.mxu0 %v10379_v42 }
 0x56d   : > { %3214 = vmatmul.mubr.f32.vlgmr.msra.gmra.mrb[24].mxu0 %v6648_v17  ;;  %v4036_v17 = vld [vmem:[%s9387_s2 + $0x1d8] sm:$0xff] }
 0x56e   : > { %6445 = vmatpush1.bf16.msra.mxu0 %v10380_v49  ;;  %3357 = vmatprep.mubr.f32.mxu0 %v10381_v58  ;;  %v4037_v49 = vld [vmem:[%s9387_s2 + $0x1e0] sm:$0xff]  ;;  %v6539_v58 = vpack.c.bf16 %v4036_v17, %v4035_v5  ;;  %v266_v17 = vld [vmem:[%s9388_s3 + $0x18] sm:$0xff] }
 0x56f   : > { %6447 = vmatprep.subr.bf16.mxu0 %v10382_v11  ;;  %v3005_v11 = vmax.f32 %v3002_v7, 0.0 }
 0x570   : > { %6540 = vmatpush1.bf16.msra.mxu1 %v6539_v58  ;;  %v268_v58 = vld [vmem:[%s9388_s3 + $0x48] sm:$0xff] }
 0x571   : > { %6541 = vmatprep.subr.bf16.mxu1 %v10300_v50 }
 0x572   : > { %6449 = vmatpush1.bf16.msra.mxu0 %v10383_v43 }
 0x573   : > { %6451 = vmatprep.subr.bf16.mxu0 %v10384_v10  ;;  %v3006_v10 = vmax.f32 %v3003_v52, 0.0 }
 0x576   : > { %6453 = vmatpush1.bf16.msra.mxu0 %v10385_v13 }
 0x577   : > { %6455 = vmatprep.subr.bf16.mxu0 %v10386_v26  ;;  %v6542_v26 = vpack.c.bf16 %v4038_v60, %v4037_v49  ;;  %v267_v49 = vld [vmem:[%s9388_s3 + $0x30] sm:$0xff]  ;;  %v269_v60 = vld [vmem:[%s9388_s3 + $0x60] sm:$0xff] }
 0x579   : > { %6543 = vmatpush1.bf16.msra.mxu1 %v6542_v26 }
 0x57a   : > { %6457 = vmatpush1.bf16.msra.mxu0 %v10387_v8  ;;  %6544 = vmatprep.subr.bf16.mxu1 %v10300_v50 }
 0x57b   : > { %6459 = vmatprep.subr.bf16.mxu0 %v10388_v41  ;;  %v4039_v41 = vld [vmem:[%s9387_s2 + $0x1f0] sm:$0xff] }
 0x57e   : > { %6461 = vmatpush1.bf16.msra.mxu0 %v10389_v22  ;;  %v4040_v22 = vld [vmem:[%s9387_s2 + $0x1f8] sm:$0xff] }
 0x57f   : > { %6463 = vmatprep.subr.bf16.mxu0 %v10390_v1 }
 0x580   : > { %v4522_v56 = vpop.f32.mrb[18].mxu0 }
 0x581   : > { %v4523_v2 = vpop.f32.mrb[19].mxu0 }
 0x582   : > { %v4524_v54 = vadd.f32 %v4523_v2, %v4522_v56  ;;  %6465 = vmatpush1.bf16.msra.mxu0 %v10391_v32  ;;  %v6545_v56 = vpack.c.bf16 %v4040_v22, %v4039_v41  ;;  %v4041_v2 = vld [vmem:[%s9387_s2 + $0x200] sm:$0xff]  ;;  %v270_v41 = vld [vmem:[%s9388_s3 + $0x78] sm:$0xff] }
 0x583   : > { %6467 = vmatprep.subr.bf16.mxu0 %v10392_v21  ;;  %v4043_v21 = vld [vmem:[%s9387_s2 + $0x210] sm:$0xff] }
 0x584   : > { %6546 = vmatpush1.bf16.msra.mxu1 %v6545_v56 }
 0x585   : > { %6547 = vmatprep.subr.bf16.mxu1 %v10300_v50 }
 0x586   : > { %6469 = vmatpush1.bf16.msra.mxu0 %v10393_v36  ;;  %v4044_v36 = vld [vmem:[%s9387_s2 + $0x218] sm:$0xff] }
 0x587   : > { %6471 = vmatprep.subr.bf16.mxu0 %v10394_v35  ;;  %v6551_v35 = vpack.c.bf16 %v4044_v36, %v4043_v21 }
 0x58a   : > { %6473 = vmatpush1.bf16.msra.mxu0 %v10395_v9  ;;  %v4045_v9 = vld [vmem:[%s9387_s2 + $0x220] sm:$0xff] }
 0x58b   : > { %6475 = vmatprep.subr.bf16.mxu0 %v10396_v0  ;;  %v4046_v0 = vld [vmem:[%s9387_s2 + $0x228] sm:$0xff] }
 0x58e   : > { %6477 = vmatpush1.bf16.msra.mxu0 %v10397_v19  ;;  %v6554_v19 = vpack.c.bf16 %v4046_v0, %v4045_v9 }
 0x58f   : > { %6479 = vmatprep.subr.bf16.mxu0 %v10398_v38  ;;  %v4047_v38 = vld [vmem:[%s9387_s2 + $0x230] sm:$0xff] }
 0x592   : > { %6481 = vmatpush1.bf16.msra.mxu0 %v10399_v29  ;;  %v4048_v29 = vld [vmem:[%s9387_s2 + $0x238] sm:$0xff] }
 0x593   : > { %6483 = vmatprep.subr.bf16.mxu0 %v10400_v20  ;;  %v6557_v20 = vpack.c.bf16 %v4048_v29, %v4047_v38 }
 0x596   : > { %6485 = vmatpush1.bf16.msra.mxu0 %v10401_v46  ;;  %v4049_v46 = vld [vmem:[%s9387_s2 + $0x240] sm:$0xff] }
 0x597   : > { %6487 = vmatprep.subr.bf16.mxu0 %v10402_v16  ;;  %v4050_v16 = vld [vmem:[%s9387_s2 + $0x248] sm:$0xff] }
 0x59a   : > { %6489 = vmatpush1.bf16.msra.mxu0 %v10403_v15  ;;  %v6560_v15 = vpack.c.bf16 %v4050_v16, %v4049_v46 }
 0x59b   : > { %6491 = vmatprep.subr.bf16.mxu0 %v10404_v34  ;;  %v4051_v34 = vld [vmem:[%s9387_s2 + $0x250] sm:$0xff] }
 0x59e   : > { %6493 = vmatpush1.bf16.msra.mxu0 %v10405_v63  ;;  %v4052_v63 = vld [vmem:[%s9387_s2 + $0x258] sm:$0xff] }
 0x59f   : > { %6495 = vmatprep.subr.bf16.mxu0 %v10406_v57  ;;  %v6563_v57 = vpack.c.bf16 %v4052_v63, %v4051_v34 }
 0x5a0   : > { %v4557_v28 = vpop.f32.mrb[20].mxu0 }
 0x5a1   : > { %v4558_v31 = vpop.f32.mrb[21].mxu0 }
 0x5a2   : > { %v4559_v3 = vadd.f32 %v4558_v31, %v4557_v28  ;;  %6497 = vmatpush1.bf16.msra.mxu0 %v10407_v14  ;;  %v4053_v28 = vld [vmem:[%s9387_s2 + $0x260] sm:$0xff]  ;;  %v4054_v31 = vld [vmem:[%s9387_s2 + $0x268] sm:$0xff]  ;;  %v4055_v14 = vld [vmem:[%s9387_s2 + $0x270] sm:$0xff] }
 0x5a3   : > { %6499 = vmatprep.subr.bf16.mxu0 %v10408_v45  ;;  %v4056_v45 = vld [vmem:[%s9387_s2 + $0x278] sm:$0xff] }
 0x5a4   : > { %v2852_v27 = vadd.f32 %v4559_v3, %v4524_v54  ;;  %v4042_v54 = vld [vmem:[%s9387_s2 + $0x208] sm:$0xff]  ;;  %v6566_v3 = vpack.c.bf16 %v4054_v31, %v4053_v28 }
 0x5a5   : > { %v6548_v32 = vpack.c.bf16 %v4042_v54, %v4041_v2 }
 0x5a6   : > { %6501 = vmatpush1.bf16.msra.mxu0 %v10409_v53  ;;  %v4057_v53 = vld [vmem:[%s9387_s2 + $0x280] sm:$0xff] }
 0x5a7   : > { %6503 = vmatprep.subr.bf16.mxu0 %v10410_v40  ;;  %6549 = vmatpush1.bf16.msra.mxu1 %v6548_v32  ;;  %v4058_v40 = vld [vmem:[%s9387_s2 + $0x288] sm:$0xff]  ;;  %v265_v32 = vld [vmem:[%s9388_s3 + $0x3] ss:$0 sm:$0xff] }
 0x5a8   : > { %6550 = vmatprep.subr.bf16.mxu1 %v10300_v50 }
 0x5aa   : > { %6505 = vmatpush1.bf16.msra.mxu0 %v10411_v51  ;;  %v6572_v51 = vpack.c.bf16 %v4058_v40, %v4057_v53 }
 0x5ab   : > { %6583 = vmatprep.subr.bf16.mxu0 %v10300_v50  ;;  %6552 = vmatpush1.bf16.msra.mxu1 %v6551_v35 }
 0x5ac   : > { %6553 = vmatprep.subr.bf16.mxu1 %v10300_v50 }
 0x5ad   : > { %3358 = vmatmul.mubr.f32.vlgmr.msra.gmra.mrb[24].mxu0 %v10412_v55  ;;  %v4059_v55 = vld [vmem:[%s9387_s2 + $0x290] sm:$0xff] }
 0x5ae   : > { %4723 = vmatprep.mubr.msk.f32.mxu0 %vm6677_vm3, %v10314_v18 }
 0x5af   : > { %6555 = vmatpush1.bf16.msra.mxu1 %v6554_v19 }
 0x5b0   : > { %6556 = vmatprep.subr.bf16.mxu1 %v10300_v50 }
 0x5b3   : > { %6558 = vmatpush1.bf16.msra.mxu1 %v6557_v20 }
 0x5b4   : > { %6559 = vmatprep.subr.bf16.mxu1 %v10300_v50 }
 0x5b7   : > { %6561 = vmatpush1.bf16.msra.mxu1 %v6560_v15 }
 0x5b8   : > { %6562 = vmatprep.subr.bf16.mxu1 %v10300_v50 }
 0x5bb   : > { %6564 = vmatpush1.bf16.msra.mxu1 %v6563_v57 }
 0x5bc   : > { %6565 = vmatprep.subr.bf16.mxu1 %v10300_v50 }
 0x5bf   : > { %6567 = vmatpush1.bf16.msra.mxu1 %v6566_v3 }
 0x5c0   : > { %v4592_v30 = vpop.f32.mrb[22].mxu0  ;;  %6568 = vmatprep.subr.bf16.mxu1 %v10300_v50 }
 0x5c1   : > { %v4593_v25 = vpop.f32.mrb[23].mxu0 }
 0x5c2   : > { %v4594_v12 = vadd.f32 %v4593_v25, %v4592_v30  ;;  %v4060_v30 = vld [vmem:[%s9387_s2 + $0x298] sm:$0xff] }
 0x5c3   : > { %v6575_v25 = vpack.c.bf16 %v4060_v30, %v4059_v55 }
 0x5c4   : > { %v3001_v44 = vadd.f32 %v4594_v12, %v2852_v27  ;;  %v6569_v27 = vpack.c.bf16 %v4056_v45, %v4055_v14  ;;  %v4061_v12 = vld [vmem:[%s9387_s2 + $0x2a0] sm:$0xff] }
 0x5c6   : > { %v3004_v23 = vadd.f32 %v3001_v44, %v10413_v61  ;;  %6570 = vmatpush1.bf16.msra.mxu1 %v6569_v27  ;;  %v4062_v61 = vld [vmem:[%s9387_s2 + $0x2a8] sm:$0xff]  ;;  %v4063_v44 = vld [vmem:[%s9387_s2 + $0x2b0] sm:$0xff] }
 0x5c7   : > { %6571 = vmatprep.subr.bf16.mxu1 %v10300_v50  ;;  %v6578_v39 = vpack.c.bf16 %v4062_v61, %v4061_v12 }
 0x5c8   : > { %v3007_v59 = vmax.f32 %v3004_v23, 0.0 }
 0x5ca   : > { %v3445_v62 = vmax.f32 %v3007_v59, %v3442_v33  ;;  %6573 = vmatpush1.bf16.msra.mxu1 %v6572_v51 }
 0x5cb   : > { %6574 = vmatprep.subr.bf16.mxu1 %v10300_v50 }
 0x5ce   : > { %6576 = vmatpush1.bf16.msra.mxu1 %v6575_v25 }
 0x5cf   : > { %6577 = vmatprep.subr.bf16.mxu1 %v10300_v50 }
 0x5d2   : > { %6579 = vmatpush1.bf16.msra.mxu1 %v6578_v39 }
 0x5d3   : > { %3561 = vmatprep.subr.mxu1 %v10314_v18 }
 0x5d6   : > { %3562 = vmatpush1.msra.mxu1 %v4063_v44 }
 0x5d7   : > { %6580 = vmatprep.subr.bf16.mxu1 %v10300_v50 }
 0x680   : > { %v3359_v6 = vpop.f32.mrb[24].mxu0 }
 0x681   : > { %v3437_v48 = vadd.f32 %v3359_v6, %v10414_v4  ;;  %v3361_v42 = vpop.f32.mrb[25].mxu0 }
 0x682   : > { %v3438_v37 = vadd.f32 %v3361_v42, %v10415_v47 }
 0x683   : > { %v3440_v43 = vmax.f32 %v3437_v48, 0.0 }
 0x684   : > { %v3441_v13 = vmax.f32 %v3438_v37, 0.0  ;;  %v6581_v37 = vpack.c.bf16 %v267_v49, %v266_v17 }
 0x685   : > { %v9230_v8 = vmax.f32 %v3005_v11, %v3440_v43  ;;  %v6584_v11 = vpack.c.bf16 %v269_v60, %v268_v58  ;;  %v263_v43 = vld [vmem:[%s9388_s3 + $0x1] ss:$0 sm:$0xff] }
 0x686   : > { %v9239_v1 = vmax.f32 %v3006_v10, %v3441_v13 }
 0x687   : > { %3449 = vrot.lane.b32.xlu0 %v9230_v8, %s6673_s15  ;;  %6585 = vmatpush3.bf16.msra.mxu0 %v6584_v11 }
 0x688   : > { %3451 = vrot.lane.b32.xlu1 %v9239_v1, %s6673_s15  ;;  %6586 = vmatprep.subr.bf16.mxu0 %v10300_v50  ;;  %v271_v50 = vld [vmem:[%s9388_s3 + $0x90] sm:$0xff] }
 0x689   : > { %v6587_v22 = vpack.c.bf16 %v271_v50, %v270_v41 }
 0x68b   : > { %3453 = vrot.lane.b32.xlu0 %v3445_v62, %s6673_s15  ;;  %6588 = vmatpush3.bf16.msra.mxu0 %v6587_v22 }
 0x6f9   : > { %v3450_v23 = vpop.permute.xlu0 %3449 }
 0x6fa   : > { %v3452_v33 = vpop.permute.xlu1 %3451 }
 0x6fb   : > { %v3455_v59 = vsel %vm1449_vm0, %v3450_v23, %v3452_v33 }
 0x6fc   : > { %v3459_v62 = vmax.f32 %v9230_v8, %v3455_v59 }
 0x6fd   : > { %v3454_v4 = vpop.permute.xlu0 %3453 }
 0x6fe   : > { %v3456_v7 = vsel %vm1449_vm0, %v3452_v33, %v3454_v4  ;;  %3463 = vrot.lane.b32.xlu1 %v3459_v62, %s6676_s30 }
 0x6ff   : > { %v3460_v47 = vmax.f32 %v9239_v1, %v3456_v7 }
 0x701   : > { %3465 = vrot.lane.b32.xlu0 %v3460_v47, %s6676_s30 }
 0x770   : > { %v3464_v52 = vpop.permute.xlu1 %3463 }
 0x773   : > { %v3466_v6 = vpop.permute.xlu0 %3465 }
 0x774   : > { %v3467_v48 = vsel %vm1462_vm1, %v3464_v52, %v3466_v6  ;;  %v3471_v42 = vmax.f32 %v3460_v47, %v3466_v6 }
 0x775   : > { %v3470_v5 = vmax.f32 %v3459_v62, %v3467_v48 }
 0x776   : > { %4064 = vmatprep.mubr.msk.f32.mxu1 %vm2426_vm2, %v3471_v42 }
 0x777   : > { %3570 = vmatmul.mubr.f32.vlgmr.msra.gmra.mrb[26].mxu1 %v3470_v5 }
 0x778   : > { %6582 = vmatpush3.bf16.msra.mxu1 %v6581_v37  ;;  %4712 = vmatprep.mubr.msk.f32.mxu1 %vm6677_vm3, %v10314_v18 }
 0x84a   : > { %v3571_v10 = vpop.f32.mrb[26].mxu1 }
 0x84b   : > { %v3575_v13 = vadd.f32 %v3571_v10, %v9166_v24  ;;  %v3573_v18 = vpop.f32.mrb[27].mxu1  ;;  %v264_v24 = vld [vmem:[%s9388_s3 + $0x2] ss:$0 sm:$0xff] }
 0x84d   : > { %v3576_v26 = vadd.f32 %v3575_v13, %v263_v43 }
 0x84f   : > { %v3577_v8 = vmax.f32 %v3576_v26, 0.0 }
 0x851   : > { %4713 = vmatmul.mubr.msk.f32.vlgmr.msra.gmra.mrb[28].mxu1 %vm3578_vm4, %v3577_v8 }
 0x924   : > { %v3648_v1 = vpop.f32.mrb[28].mxu1 }
 0x925   : > { %v3649_v56 = vadd.f32 %v3648_v1, %v264_v24  ;;  %v4714_v2 = vpop.f32.mrb[29].mxu1 }
 0x927   : > { %v3652_v54 = vmax.f32 %v3649_v56, 0.0 }
 0x929   : > { %4724 = vmatmul.mubr.msk.f32.vlgmr.msra.gmra.mrb[26].mxu0 %vm3653_vm5, %v3652_v54 }
 0x9fc   : > { %v3723_v21 = vpop.f32.mrb[26].mxu0 }
 0x9fd   : > { %v3724_v36 = vadd.f32 %v3723_v21, %v265_v32  ;;  %v4725_v35 = vpop.f32.mrb[27].mxu0 }
 0x9ff   : > { %3728 = vst.msk [vmem:[%s245_s8] sm:$0xff] %vm3727_vm6, %v3724_v36 }
 0xa00 PF: > { %p11_p9 = scmp.ge.s32.totalorder %s6720_s19, 4   ;;  %s10416_s15 = smov %s6667_s16 }
 0xa01   : > { %s10417_s16 = smov %s6729_s22  ;;  %s10418_s17 = smov %s6720_s19 }
 0xa02   :  { %13 = sbr.rel (!%p11_p9) target bundleno = 2 (0x2), region = 105 }

</bundles_post_ra>
